<compile_context>
chip_gen: v7x
topology: tpu7x:2x2x1
jax: 0.10.0
libtpu: 0.0.40
codegen_flags: <defaults>
</compile_context>

<pallas_src>
import math
import functools

import jax
import jax.numpy as jnp
from jax.experimental import pallas as pl
from jax.experimental.pallas import tpu as pltpu

EMBED = 32 * 3            # 96
N_HEADS = 2
HEAD_DIM = EMBED // N_HEADS
DILATIONS = (1, 2, 4, 8, 16)
OUT_PAD = 128             # lane-dense padded fc output width (sliced in the wrapper)


# ---------------------------------------------------------------------------
# Fused kernel
# ---------------------------------------------------------------------------
def make_fused_kernel(L):
    scale = 1.0 / math.sqrt(HEAD_DIM)

    def shifted(a, shift):
        """result[t] = a[t - shift], zero-filled outside [0, L). `shift` is a static int."""
        if shift == 0:
            return a
        if abs(shift) >= L:
            return jnp.zeros_like(a)
        rolled = pltpu.roll(a, shift % L, axis=0)                 # XLU sublane rotate
        rows = jax.lax.broadcasted_iota(jnp.int32, a.shape, 0)
        if shift > 0:
            return jnp.where(rows >= shift, rolled, 0.0)
        return jnp.where(rows < L + shift, rolled, 0.0)

    def kernel(x_ref, w0_ref, b0_ref, winc_ref, binc_ref, wcv_ref, bcv_ref,
               wd_ref, bd_ref, wq_ref, bq_ref, wk_ref, bk_ref, wv_ref, bv_ref,
               wo_ref, bo_ref, wf_ref, bf_ref, o_ref):
        dot = lambda a, b: jnp.dot(a, b, preferred_element_type=jnp.float32)
        x = x_ref[0]                                              # (L, Cin)

        # conv1d(1x1) -> input_linear -> pre_attn_linear collapsed into one affine map.
        h = dot(x, w0_ref[...]) + b0_ref[...]                     # (L, E)

        # ---- 5 residual TCN blocks; activation stays resident across blocks.
        for blk, d in enumerate(DILATIONS):
            # InceptionLayer (k=1 / k=2 pad 1 / k=4 pad 2, cropped to L) as per-tap
            # full-width (E,E) matmuls; output columns = [conv1 | conv2 | conv3].
            incept = binc_ref[blk] + dot(h, winc_ref[4 * blk + 2])          # tap  0
            incept = incept + dot(shifted(h, 2), winc_ref[4 * blk + 0])     # tap -2
            incept = incept + dot(shifted(h, 1), winc_ref[4 * blk + 1])     # tap -1
            incept = incept + dot(shifted(h, -1), winc_ref[4 * blk + 3])    # tap +1
            incept = jnp.maximum(incept, 0.0)
            # TODO(synk): F.dropout(0.5) defaults to training=True in the reference (stochastic); treated as identity.

            # Dilated conv k=2, padding=d, dilation=d, cropped to L:
            #   out[t] = Wc0 . incept[t-d] + Wc1 . incept[t] + bc
            out_c = bcv_ref[blk] + dot(incept, wcv_ref[2 * blk + 1])
            out_c = out_c + dot(shifted(incept, d), wcv_ref[2 * blk + 0])
            out_c = jnp.maximum(out_c, 0.0)

            # Residual always passes through the 1x1 downsample (pre-crop lengths differ).
            h = out_c + dot(h, wd_ref[blk]) + bd_ref[blk]

        # ---- 2-head self-attention over the sequence axis (full-width QKV / out-proj).
        q = dot(h, wq_ref[...]) + bq_ref[...]
        k = dot(h, wk_ref[...]) + bk_ref[...]
        v = dot(h, wv_ref[...]) + bv_ref[...]
        attn = jnp.zeros((L, EMBED), jnp.float32) + bo_ref[...]
        for hh in range(N_HEADS):
            lo = hh * HEAD_DIM
            qh = q[:, lo:lo + HEAD_DIM] * scale
            kh = k[:, lo:lo + HEAD_DIM]
            vh = v[:, lo:lo + HEAD_DIM]
            s = dot(qh, kh.T)                                     # (L, L)
            s = s - jnp.max(s, axis=-1, keepdims=True)
            p = jnp.exp(s)
            p = p * pl.reciprocal(jnp.sum(p, axis=-1, keepdims=True), approx=True)
            attn = attn + dot(dot(p, vh), wo_ref[lo:lo + HEAD_DIM, :])

        # Final fc; output zero-padded to OUT_PAD columns for lane-dense stores.
        o_ref[0] = dot(attn, wf_ref[...]) + bf_ref[...]

    return kernel


# ---------------------------------------------------------------------------
# Wrapper
# ---------------------------------------------------------------------------
def _const_spec(a):
    nd = a.ndim
    return pl.BlockSpec(a.shape, lambda b, _nd=nd: (0,) * _nd)


def network_forward(params, x):
    """x: (B, input_dim, seq_len) in NCL (PyTorch Conv1d layout). Returns (B, seq_len, output_dim)."""
    B, Cin, L = x.shape
    x_nlc = jnp.transpose(x, (0, 2, 1))                           # (B, L, Cin)

    weight_args = (params['w0'], params['b0'], params['winc'], params['binc'],
                   params['wcv'], params['bcv'], params['wd'], params['bd'],
                   params['wq'], params['bq'], params['wk'], params['bk'],
                   params['wv'], params['bv'], params['wo'], params['bo'],
                   params['wf'], params['bf'])

    y = pl.pallas_call(
        make_fused_kernel(L),
        out_shape=jax.ShapeDtypeStruct((B, L, OUT_PAD), jnp.float32),
        grid=(B,),
        in_specs=[pl.BlockSpec((1, L, Cin), lambda b: (b, 0, 0))]
                 + [_const_spec(a) for a in weight_args],
        out_specs=pl.BlockSpec((1, L, OUT_PAD), lambda b: (b, 0, 0)),
        compiler_params=pltpu.CompilerParams(dimension_semantics=("parallel",)),
    )(x_nlc, *weight_args)
    return y[:, :, :params['out_dim']]


# ---------------------------------------------------------------------------
# Deterministic parameter initialization + kernel-friendly packing
# ---------------------------------------------------------------------------
def init_params(key, input_dim, output_dim):
    assert input_dim == EMBED, "per-timestep reading of the module requires input_dim == 96"
    keys = iter(jax.random.split(key, 128))

    def nrm(shape, std=0.05):
        return (std * jax.random.normal(next(keys), shape)).astype(jnp.float32)

    def wn_conv(cout, cin, k):
        # nn.utils.weight_norm: w = g * v / ||v|| (norm over all dims but dim 0)
        v = nrm((cout, cin, k))
        g = 0.5 + jnp.abs(nrm((cout,), 1.0))
        return g[:, None, None] * v / jnp.sqrt(jnp.sum(v * v, axis=(1, 2), keepdims=True))

    p = {}
    # --- pointwise chain: conv1d(1x1) -> input_linear -> pre_attn_linear, fused affine map.
    wc_t = nrm((EMBED, input_dim, 1))[:, :, 0].T                   # (input_dim, E)
    bc = nrm((1, EMBED))
    wi_t = (0.01 * jax.random.normal(next(keys), (EMBED, input_dim))).astype(jnp.float32).T
    bi = jnp.zeros((1, EMBED), jnp.float32)                        # bias zeroed in __init__
    wp_t = nrm((EMBED, EMBED)).T
    bp = nrm((1, EMBED))
    p['w0'] = wc_t @ wi_t @ wp_t                                   # (input_dim, E)
    p['b0'] = (bc @ wi_t + bi) @ wp_t + bp                         # (1, E)

    # --- residual blocks: re-packed per-tap inception weights + dilated conv + downsample.
    winc, binc, wcv, bcv, wd, bd = [], [], [], [], [], []
    for _ in DILATIONS:
        w1 = wn_conv(32, EMBED, 1)
        w2 = wn_conv(32, EMBED, 2)
        w3 = wn_conv(32, EMBED, 4)
        b1, b2, b3 = nrm((1, 32)), nrm((1, 32)), nrm((1, 32))
        # tap offsets [-2, -1, 0, +1]; output columns = [conv1 | conv2 | conv3]
        taps = []
        for o in (-2, -1, 0, 1):
            w = jnp.zeros((EMBED, EMBED), jnp.float32)
            if o == 0:
                w = w.at[:, 0:32].set(w1[:, :, 0].T)
            if o in (-1, 0):
                w = w.at[:, 32:64].set(w2[:, :, o + 1].T)
            w = w.at[:, 64:96].set(w3[:, :, o + 2].T)
            taps.append(w)
        winc.append(jnp.stack(taps))                               # (4, E, E)
        binc.append(jnp.concatenate([b1, b2, b3], axis=-1))        # (1, E)

        wcd = wn_conv(EMBED, 32 * 3, 2)
        wcv.append(jnp.stack([wcd[:, :, 0].T, wcd[:, :, 1].T]))    # (2, E, E)
        bcv.append(nrm((1, EMBED)))
        wds = nrm((EMBED, EMBED, 1))
        wd.append(wds[:, :, 0].T)
        bd.append(nrm((1, EMBED)))

    p['winc'] = jnp.concatenate(winc, axis=0)                      # (5*4, E, E)
    p['binc'] = jnp.stack(binc)                                    # (5, 1, E)
    p['wcv'] = jnp.concatenate(wcv, axis=0)                        # (5*2, E, E)
    p['bcv'] = jnp.stack(bcv)                                      # (5, 1, E)
    p['wd'] = jnp.stack(wd)                                        # (5, E, E)
    p['bd'] = jnp.stack(bd)                                        # (5, 1, E)

    # --- MultiheadAttention(embed_dim=96, num_heads=2): full-width QKV / out-proj weights.
    in_proj_w = nrm((3 * EMBED, EMBED))
    in_proj_b = nrm((3 * EMBED,))
    out_proj_w = nrm((EMBED, EMBED))
    p['wq'] = in_proj_w[:EMBED].T;            p['bq'] = in_proj_b[:EMBED][None, :]
    p['wk'] = in_proj_w[EMBED:2 * EMBED].T;   p['bk'] = in_proj_b[EMBED:2 * EMBED][None, :]
    p['wv'] = in_proj_w[2 * EMBED:].T;        p['bv'] = in_proj_b[2 * EMBED:][None, :]
    p['wo'] = out_proj_w.T                                           # (E, E); rows lo:lo+HD per head
    p['bo'] = nrm((1, EMBED))

    # --- final fc, zero-padded to a lane-dense OUT_PAD-wide output.
    fc_w = nrm((output_dim, EMBED))
    fc_b = nrm((1, output_dim))
    p['wf'] = jnp.zeros((EMBED, OUT_PAD), jnp.float32).at[:, :output_dim].set(fc_w.T)
    p['bf'] = jnp.zeros((1, OUT_PAD), jnp.float32).at[:, :output_dim].set(fc_b)
    p['out_dim'] = output_dim
    return p


# ---------------------------------------------------------------------------
if __name__ == "__main__":
    key = jax.random.PRNGKey(0)
    pkey, xkey = jax.random.split(key)

    B, input_dim, seq_len, output_dim = 2, EMBED, 16, 8
    params = init_params(pkey, input_dim, output_dim)
    x = jax.random.normal(xkey, (B, input_dim, seq_len), jnp.float32)

    fwd = jax.jit(functools.partial(network_forward, params))
    y = jax.block_until_ready(fwd(x))

    assert y.shape == (B, seq_len, output_dim), y.shape
    assert bool(jnp.all(jnp.isfinite(y)))
    print("KERNEL_OK")
</pallas_src>

<mosaic_0001>
module attributes {stable_mosaic.version = 11 : i64} {
  func.func @kernel(%arg0: i32, %arg1: memref<1x16x96xf32, #tpu.memory_space<vmem>>, %arg2: memref<96x96xf32, #tpu.memory_space<vmem>>, %arg3: memref<1x96xf32, #tpu.memory_space<vmem>>, %arg4: memref<20x96x96xf32, #tpu.memory_space<vmem>>, %arg5: memref<5x1x96xf32, #tpu.memory_space<vmem>>, %arg6: memref<10x96x96xf32, #tpu.memory_space<vmem>>, %arg7: memref<5x1x96xf32, #tpu.memory_space<vmem>>, %arg8: memref<5x96x96xf32, #tpu.memory_space<vmem>>, %arg9: memref<5x1x96xf32, #tpu.memory_space<vmem>>, %arg10: memref<96x96xf32, #tpu.memory_space<vmem>>, %arg11: memref<1x96xf32, #tpu.memory_space<vmem>>, %arg12: memref<96x96xf32, #tpu.memory_space<vmem>>, %arg13: memref<1x96xf32, #tpu.memory_space<vmem>>, %arg14: memref<96x96xf32, #tpu.memory_space<vmem>>, %arg15: memref<1x96xf32, #tpu.memory_space<vmem>>, %arg16: memref<96x96xf32, #tpu.memory_space<vmem>>, %arg17: memref<1x96xf32, #tpu.memory_space<vmem>>, %arg18: memref<96x128xf32, #tpu.memory_space<vmem>>, %arg19: memref<1x128xf32, #tpu.memory_space<vmem>>, %arg20: memref<1x16x128xf32, #tpu.memory_space<vmem>>) attributes {dimension_semantics = [#tpu.dimension_semantics<parallel>], iteration_bounds = array<i64: 2>, scalar_prefetch = 0 : i64, scratch_operands = 0 : i64, tpu.core_type = #tpu.core_type<tc>, window_params = [{transform_indices = @transform_0, window_bounds = array<i64: 1, 16, 96>}, {pipeline_mode = #tpu.pipeline_mode<synchronous>, transform_indices = @transform_1, window_bounds = array<i64: 96, 96>}, {pipeline_mode = #tpu.pipeline_mode<synchronous>, transform_indices = @transform_2, window_bounds = array<i64: 1, 96>}, {pipeline_mode = #tpu.pipeline_mode<synchronous>, transform_indices = @transform_3, window_bounds = array<i64: 20, 96, 96>}, {pipeline_mode = #tpu.pipeline_mode<synchronous>, transform_indices = @transform_4, window_bounds = array<i64: 5, 1, 96>}, {pipeline_mode = #tpu.pipeline_mode<synchronous>, transform_indices = @transform_5, window_bounds = array<i64: 10, 96, 96>}, {pipeline_mode = #tpu.pipeline_mode<synchronous>, transform_indices = @transform_6, window_bounds = array<i64: 5, 1, 96>}, {pipeline_mode = #tpu.pipeline_mode<synchronous>, transform_indices = @transform_7, window_bounds = array<i64: 5, 96, 96>}, {pipeline_mode = #tpu.pipeline_mode<synchronous>, transform_indices = @transform_8, window_bounds = array<i64: 5, 1, 96>}, {pipeline_mode = #tpu.pipeline_mode<synchronous>, transform_indices = @transform_9, window_bounds = array<i64: 96, 96>}, {pipeline_mode = #tpu.pipeline_mode<synchronous>, transform_indices = @transform_10, window_bounds = array<i64: 1, 96>}, {pipeline_mode = #tpu.pipeline_mode<synchronous>, transform_indices = @transform_11, window_bounds = array<i64: 96, 96>}, {pipeline_mode = #tpu.pipeline_mode<synchronous>, transform_indices = @transform_12, window_bounds = array<i64: 1, 96>}, {pipeline_mode = #tpu.pipeline_mode<synchronous>, transform_indices = @transform_13, window_bounds = array<i64: 96, 96>}, {pipeline_mode = #tpu.pipeline_mode<synchronous>, transform_indices = @transform_14, window_bounds = array<i64: 1, 96>}, {pipeline_mode = #tpu.pipeline_mode<synchronous>, transform_indices = @transform_15, window_bounds = array<i64: 96, 96>}, {pipeline_mode = #tpu.pipeline_mode<synchronous>, transform_indices = @transform_16, window_bounds = array<i64: 1, 96>}, {pipeline_mode = #tpu.pipeline_mode<synchronous>, transform_indices = @transform_17, window_bounds = array<i64: 96, 128>}, {pipeline_mode = #tpu.pipeline_mode<synchronous>, transform_indices = @transform_18, window_bounds = array<i64: 1, 128>}, {transform_indices = @transform_19, window_bounds = array<i64: 1, 16, 128>}]} {
    %c0 = arith.constant 0 : index
    %c0_0 = arith.constant 0 : index
    %c0_1 = arith.constant 0 : index
    %0 = vector.load %arg1[%c0, %c0_0, %c0_1] : memref<1x16x96xf32, #tpu.memory_space<vmem>>, vector<1x16x96xf32>
    %1 = vector.shape_cast %0 : vector<1x16x96xf32> to vector<16x96xf32>
    %c0_2 = arith.constant 0 : index
    %c0_3 = arith.constant 0 : index
    %2 = vector.load %arg2[%c0_2, %c0_3] : memref<96x96xf32, #tpu.memory_space<vmem>>, vector<96x96xf32>
    %cst = arith.constant dense<0.000000e+00> : vector<16x96xf32>
    %3 = tpu.matmul %1, %2, %cst {dimension_numbers = #tpu.dot_dimension_numbers<[1], [0], [0], [1], [0, 0, 1, 1], [], []>} : vector<16x96xf32>, vector<96x96xf32>, vector<16x96xf32> -> vector<16x96xf32>
    %c0_4 = arith.constant 0 : index
    %c0_5 = arith.constant 0 : index
    %4 = vector.load %arg3[%c0_4, %c0_5] : memref<1x96xf32, #tpu.memory_space<vmem>>, vector<1x96xf32>
    %5 = vector.broadcast %4 : vector<1x96xf32> to vector<16x96xf32>
    %6 = arith.addf %3, %5 : vector<16x96xf32>
    %c0_6 = arith.constant 0 : index
    %c0_7 = arith.constant 0 : index
    %c0_8 = arith.constant 0 : index
    %7 = vector.load %arg5[%c0_6, %c0_7, %c0_8] : memref<5x1x96xf32, #tpu.memory_space<vmem>>, vector<1x1x96xf32>
    %8 = vector.shape_cast %7 : vector<1x1x96xf32> to vector<1x96xf32>
    %c2 = arith.constant 2 : index
    %c0_9 = arith.constant 0 : index
    %c0_10 = arith.constant 0 : index
    %9 = vector.load %arg4[%c2, %c0_9, %c0_10] : memref<20x96x96xf32, #tpu.memory_space<vmem>>, vector<1x96x96xf32>
    %10 = vector.shape_cast %9 : vector<1x96x96xf32> to vector<96x96xf32>
    %cst_11 = arith.constant dense<0.000000e+00> : vector<16x96xf32>
    %11 = tpu.matmul %6, %10, %cst_11 {dimension_numbers = #tpu.dot_dimension_numbers<[1], [0], [0], [1], [0, 0, 1, 1], [], []>} : vector<16x96xf32>, vector<96x96xf32>, vector<16x96xf32> -> vector<16x96xf32>
    %12 = vector.broadcast %8 : vector<1x96xf32> to vector<16x96xf32>
    %13 = arith.addf %12, %11 : vector<16x96xf32>
    %c2_i32 = arith.constant 2 : i32
    %14 = tpu.dynamic_rotate %6 by %c2_i32 dim 0 : vector<16x96xf32>, i32 -> vector<16x96xf32>
    %15 = tpu.iota {dimensions = array<i32: 0>} : vector<16x96xi32>
    %c2_i32_12 = arith.constant 2 : i32
    %16 = vector.broadcast %c2_i32_12 : i32 to vector<16x96xi32>
    %17 = arith.cmpi sge, %15, %16 : vector<16x96xi32>
    %cst_13 = arith.constant 0.000000e+00 : f32
    %18 = vector.broadcast %cst_13 : f32 to vector<16x96xf32>
    %19 = arith.select %17, %14, %18 : vector<16x96xi1>, vector<16x96xf32>
    %c0_14 = arith.constant 0 : index
    %c0_15 = arith.constant 0 : index
    %c0_16 = arith.constant 0 : index
    %20 = vector.load %arg4[%c0_14, %c0_15, %c0_16] : memref<20x96x96xf32, #tpu.memory_space<vmem>>, vector<1x96x96xf32>
    %21 = vector.shape_cast %20 : vector<1x96x96xf32> to vector<96x96xf32>
    %cst_17 = arith.constant dense<0.000000e+00> : vector<16x96xf32>
    %22 = tpu.matmul %19, %21, %cst_17 {dimension_numbers = #tpu.dot_dimension_numbers<[1], [0], [0], [1], [0, 0, 1, 1], [], []>} : vector<16x96xf32>, vector<96x96xf32>, vector<16x96xf32> -> vector<16x96xf32>
    %23 = arith.addf %13, %22 : vector<16x96xf32>
    %c1_i32 = arith.constant 1 : i32
    %24 = tpu.dynamic_rotate %6 by %c1_i32 dim 0 : vector<16x96xf32>, i32 -> vector<16x96xf32>
    %25 = tpu.iota {dimensions = array<i32: 0>} : vector<16x96xi32>
    %c1_i32_18 = arith.constant 1 : i32
    %26 = vector.broadcast %c1_i32_18 : i32 to vector<16x96xi32>
    %27 = arith.cmpi sge, %25, %26 : vector<16x96xi32>
    %cst_19 = arith.constant 0.000000e+00 : f32
    %28 = vector.broadcast %cst_19 : f32 to vector<16x96xf32>
    %29 = arith.select %27, %24, %28 : vector<16x96xi1>, vector<16x96xf32>
    %c1 = arith.constant 1 : index
    %c0_20 = arith.constant 0 : index
    %c0_21 = arith.constant 0 : index
    %30 = vector.load %arg4[%c1, %c0_20, %c0_21] : memref<20x96x96xf32, #tpu.memory_space<vmem>>, vector<1x96x96xf32>
    %31 = vector.shape_cast %30 : vector<1x96x96xf32> to vector<96x96xf32>
    %cst_22 = arith.constant dense<0.000000e+00> : vector<16x96xf32>
    %32 = tpu.matmul %29, %31, %cst_22 {dimension_numbers = #tpu.dot_dimension_numbers<[1], [0], [0], [1], [0, 0, 1, 1], [], []>} : vector<16x96xf32>, vector<96x96xf32>, vector<16x96xf32> -> vector<16x96xf32>
    %33 = arith.addf %23, %32 : vector<16x96xf32>
    %c15_i32 = arith.constant 15 : i32
    %34 = tpu.dynamic_rotate %6 by %c15_i32 dim 0 : vector<16x96xf32>, i32 -> vector<16x96xf32>
    %35 = tpu.iota {dimensions = array<i32: 0>} : vector<16x96xi32>
    %c15_i32_23 = arith.constant 15 : i32
    %36 = vector.broadcast %c15_i32_23 : i32 to vector<16x96xi32>
    %37 = arith.cmpi slt, %35, %36 : vector<16x96xi32>
    %cst_24 = arith.constant 0.000000e+00 : f32
    %38 = vector.broadcast %cst_24 : f32 to vector<16x96xf32>
    %39 = arith.select %37, %34, %38 : vector<16x96xi1>, vector<16x96xf32>
    %c3 = arith.constant 3 : index
    %c0_25 = arith.constant 0 : index
    %c0_26 = arith.constant 0 : index
    %40 = vector.load %arg4[%c3, %c0_25, %c0_26] : memref<20x96x96xf32, #tpu.memory_space<vmem>>, vector<1x96x96xf32>
    %41 = vector.shape_cast %40 : vector<1x96x96xf32> to vector<96x96xf32>
    %cst_27 = arith.constant dense<0.000000e+00> : vector<16x96xf32>
    %42 = tpu.matmul %39, %41, %cst_27 {dimension_numbers = #tpu.dot_dimension_numbers<[1], [0], [0], [1], [0, 0, 1, 1], [], []>} : vector<16x96xf32>, vector<96x96xf32>, vector<16x96xf32> -> vector<16x96xf32>
    %43 = arith.addf %33, %42 : vector<16x96xf32>
    %cst_28 = arith.constant 0.000000e+00 : f32
    %44 = vector.broadcast %cst_28 : f32 to vector<16x96xf32>
    %45 = arith.maximumf %43, %44 : vector<16x96xf32>
    %c0_29 = arith.constant 0 : index
    %c0_30 = arith.constant 0 : index
    %c0_31 = arith.constant 0 : index
    %46 = vector.load %arg7[%c0_29, %c0_30, %c0_31] : memref<5x1x96xf32, #tpu.memory_space<vmem>>, vector<1x1x96xf32>
    %47 = vector.shape_cast %46 : vector<1x1x96xf32> to vector<1x96xf32>
    %c1_32 = arith.constant 1 : index
    %c0_33 = arith.constant 0 : index
    %c0_34 = arith.constant 0 : index
    %48 = vector.load %arg6[%c1_32, %c0_33, %c0_34] : memref<10x96x96xf32, #tpu.memory_space<vmem>>, vector<1x96x96xf32>
    %49 = vector.shape_cast %48 : vector<1x96x96xf32> to vector<96x96xf32>
    %cst_35 = arith.constant dense<0.000000e+00> : vector<16x96xf32>
    %50 = tpu.matmul %45, %49, %cst_35 {dimension_numbers = #tpu.dot_dimension_numbers<[1], [0], [0], [1], [0, 0, 1, 1], [], []>} : vector<16x96xf32>, vector<96x96xf32>, vector<16x96xf32> -> vector<16x96xf32>
    %51 = vector.broadcast %47 : vector<1x96xf32> to vector<16x96xf32>
    %52 = arith.addf %51, %50 : vector<16x96xf32>
    %c1_i32_36 = arith.constant 1 : i32
    %53 = tpu.dynamic_rotate %45 by %c1_i32_36 dim 0 : vector<16x96xf32>, i32 -> vector<16x96xf32>
    %54 = tpu.iota {dimensions = array<i32: 0>} : vector<16x96xi32>
    %c1_i32_37 = arith.constant 1 : i32
    %55 = vector.broadcast %c1_i32_37 : i32 to vector<16x96xi32>
    %56 = arith.cmpi sge, %54, %55 : vector<16x96xi32>
    %cst_38 = arith.constant 0.000000e+00 : f32
    %57 = vector.broadcast %cst_38 : f32 to vector<16x96xf32>
    %58 = arith.select %56, %53, %57 : vector<16x96xi1>, vector<16x96xf32>
    %c0_39 = arith.constant 0 : index
    %c0_40 = arith.constant 0 : index
    %c0_41 = arith.constant 0 : index
    %59 = vector.load %arg6[%c0_39, %c0_40, %c0_41] : memref<10x96x96xf32, #tpu.memory_space<vmem>>, vector<1x96x96xf32>
    %60 = vector.shape_cast %59 : vector<1x96x96xf32> to vector<96x96xf32>
    %cst_42 = arith.constant dense<0.000000e+00> : vector<16x96xf32>
    %61 = tpu.matmul %58, %60, %cst_42 {dimension_numbers = #tpu.dot_dimension_numbers<[1], [0], [0], [1], [0, 0, 1, 1], [], []>} : vector<16x96xf32>, vector<96x96xf32>, vector<16x96xf32> -> vector<16x96xf32>
    %62 = arith.addf %52, %61 : vector<16x96xf32>
    %cst_43 = arith.constant 0.000000e+00 : f32
    %63 = vector.broadcast %cst_43 : f32 to vector<16x96xf32>
    %64 = arith.maximumf %62, %63 : vector<16x96xf32>
    %c0_44 = arith.constant 0 : index
    %c0_45 = arith.constant 0 : index
    %c0_46 = arith.constant 0 : index
    %65 = vector.load %arg8[%c0_44, %c0_45, %c0_46] : memref<5x96x96xf32, #tpu.memory_space<vmem>>, vector<1x96x96xf32>
    %66 = vector.shape_cast %65 : vector<1x96x96xf32> to vector<96x96xf32>
    %cst_47 = arith.constant dense<0.000000e+00> : vector<16x96xf32>
    %67 = tpu.matmul %6, %66, %cst_47 {dimension_numbers = #tpu.dot_dimension_numbers<[1], [0], [0], [1], [0, 0, 1, 1], [], []>} : vector<16x96xf32>, vector<96x96xf32>, vector<16x96xf32> -> vector<16x96xf32>
    %68 = arith.addf %64, %67 : vector<16x96xf32>
    %c0_48 = arith.constant 0 : index
    %c0_49 = arith.constant 0 : index
    %c0_50 = arith.constant 0 : index
    %69 = vector.load %arg9[%c0_48, %c0_49, %c0_50] : memref<5x1x96xf32, #tpu.memory_space<vmem>>, vector<1x1x96xf32>
    %70 = vector.shape_cast %69 : vector<1x1x96xf32> to vector<1x96xf32>
    %71 = vector.broadcast %70 : vector<1x96xf32> to vector<16x96xf32>
    %72 = arith.addf %68, %71 : vector<16x96xf32>
    %c1_51 = arith.constant 1 : index
    %c0_52 = arith.constant 0 : index
    %c0_53 = arith.constant 0 : index
    %73 = vector.load %arg5[%c1_51, %c0_52, %c0_53] : memref<5x1x96xf32, #tpu.memory_space<vmem>>, vector<1x1x96xf32>
    %74 = vector.shape_cast %73 : vector<1x1x96xf32> to vector<1x96xf32>
    %c6 = arith.constant 6 : index
    %c0_54 = arith.constant 0 : index
    %c0_55 = arith.constant 0 : index
    %75 = vector.load %arg4[%c6, %c0_54, %c0_55] : memref<20x96x96xf32, #tpu.memory_space<vmem>>, vector<1x96x96xf32>
    %76 = vector.shape_cast %75 : vector<1x96x96xf32> to vector<96x96xf32>
    %cst_56 = arith.constant dense<0.000000e+00> : vector<16x96xf32>
    %77 = tpu.matmul %72, %76, %cst_56 {dimension_numbers = #tpu.dot_dimension_numbers<[1], [0], [0], [1], [0, 0, 1, 1], [], []>} : vector<16x96xf32>, vector<96x96xf32>, vector<16x96xf32> -> vector<16x96xf32>
    %78 = vector.broadcast %74 : vector<1x96xf32> to vector<16x96xf32>
    %79 = arith.addf %78, %77 : vector<16x96xf32>
    %c2_i32_57 = arith.constant 2 : i32
    %80 = tpu.dynamic_rotate %72 by %c2_i32_57 dim 0 : vector<16x96xf32>, i32 -> vector<16x96xf32>
    %81 = tpu.iota {dimensions = array<i32: 0>} : vector<16x96xi32>
    %c2_i32_58 = arith.constant 2 : i32
    %82 = vector.broadcast %c2_i32_58 : i32 to vector<16x96xi32>
    %83 = arith.cmpi sge, %81, %82 : vector<16x96xi32>
    %cst_59 = arith.constant 0.000000e+00 : f32
    %84 = vector.broadcast %cst_59 : f32 to vector<16x96xf32>
    %85 = arith.select %83, %80, %84 : vector<16x96xi1>, vector<16x96xf32>
    %c4 = arith.constant 4 : index
    %c0_60 = arith.constant 0 : index
    %c0_61 = arith.constant 0 : index
    %86 = vector.load %arg4[%c4, %c0_60, %c0_61] : memref<20x96x96xf32, #tpu.memory_space<vmem>>, vector<1x96x96xf32>
    %87 = vector.shape_cast %86 : vector<1x96x96xf32> to vector<96x96xf32>
    %cst_62 = arith.constant dense<0.000000e+00> : vector<16x96xf32>
    %88 = tpu.matmul %85, %87, %cst_62 {dimension_numbers = #tpu.dot_dimension_numbers<[1], [0], [0], [1], [0, 0, 1, 1], [], []>} : vector<16x96xf32>, vector<96x96xf32>, vector<16x96xf32> -> vector<16x96xf32>
    %89 = arith.addf %79, %88 : vector<16x96xf32>
    %c1_i32_63 = arith.constant 1 : i32
    %90 = tpu.dynamic_rotate %72 by %c1_i32_63 dim 0 : vector<16x96xf32>, i32 -> vector<16x96xf32>
    %91 = tpu.iota {dimensions = array<i32: 0>} : vector<16x96xi32>
    %c1_i32_64 = arith.constant 1 : i32
    %92 = vector.broadcast %c1_i32_64 : i32 to vector<16x96xi32>
    %93 = arith.cmpi sge, %91, %92 : vector<16x96xi32>
    %cst_65 = arith.constant 0.000000e+00 : f32
    %94 = vector.broadcast %cst_65 : f32 to vector<16x96xf32>
    %95 = arith.select %93, %90, %94 : vector<16x96xi1>, vector<16x96xf32>
    %c5 = arith.constant 5 : index
    %c0_66 = arith.constant 0 : index
    %c0_67 = arith.constant 0 : index
    %96 = vector.load %arg4[%c5, %c0_66, %c0_67] : memref<20x96x96xf32, #tpu.memory_space<vmem>>, vector<1x96x96xf32>
    %97 = vector.shape_cast %96 : vector<1x96x96xf32> to vector<96x96xf32>
    %cst_68 = arith.constant dense<0.000000e+00> : vector<16x96xf32>
    %98 = tpu.matmul %95, %97, %cst_68 {dimension_numbers = #tpu.dot_dimension_numbers<[1], [0], [0], [1], [0, 0, 1, 1], [], []>} : vector<16x96xf32>, vector<96x96xf32>, vector<16x96xf32> -> vector<16x96xf32>
    %99 = arith.addf %89, %98 : vector<16x96xf32>
    %c15_i32_69 = arith.constant 15 : i32
    %100 = tpu.dynamic_rotate %72 by %c15_i32_69 dim 0 : vector<16x96xf32>, i32 -> vector<16x96xf32>
    %101 = tpu.iota {dimensions = array<i32: 0>} : vector<16x96xi32>
    %c15_i32_70 = arith.constant 15 : i32
    %102 = vector.broadcast %c15_i32_70 : i32 to vector<16x96xi32>
    %103 = arith.cmpi slt, %101, %102 : vector<16x96xi32>
    %cst_71 = arith.constant 0.000000e+00 : f32
    %104 = vector.broadcast %cst_71 : f32 to vector<16x96xf32>
    %105 = arith.select %103, %100, %104 : vector<16x96xi1>, vector<16x96xf32>
    %c7 = arith.constant 7 : index
    %c0_72 = arith.constant 0 : index
    %c0_73 = arith.constant 0 : index
    %106 = vector.load %arg4[%c7, %c0_72, %c0_73] : memref<20x96x96xf32, #tpu.memory_space<vmem>>, vector<1x96x96xf32>
    %107 = vector.shape_cast %106 : vector<1x96x96xf32> to vector<96x96xf32>
    %cst_74 = arith.constant dense<0.000000e+00> : vector<16x96xf32>
    %108 = tpu.matmul %105, %107, %cst_74 {dimension_numbers = #tpu.dot_dimension_numbers<[1], [0], [0], [1], [0, 0, 1, 1], [], []>} : vector<16x96xf32>, vector<96x96xf32>, vector<16x96xf32> -> vector<16x96xf32>
    %109 = arith.addf %99, %108 : vector<16x96xf32>
    %cst_75 = arith.constant 0.000000e+00 : f32
    %110 = vector.broadcast %cst_75 : f32 to vector<16x96xf32>
    %111 = arith.maximumf %109, %110 : vector<16x96xf32>
    %c1_76 = arith.constant 1 : index
    %c0_77 = arith.constant 0 : index
    %c0_78 = arith.constant 0 : index
    %112 = vector.load %arg7[%c1_76, %c0_77, %c0_78] : memref<5x1x96xf32, #tpu.memory_space<vmem>>, vector<1x1x96xf32>
    %113 = vector.shape_cast %112 : vector<1x1x96xf32> to vector<1x96xf32>
    %c3_79 = arith.constant 3 : index
    %c0_80 = arith.constant 0 : index
    %c0_81 = arith.constant 0 : index
    %114 = vector.load %arg6[%c3_79, %c0_80, %c0_81] : memref<10x96x96xf32, #tpu.memory_space<vmem>>, vector<1x96x96xf32>
    %115 = vector.shape_cast %114 : vector<1x96x96xf32> to vector<96x96xf32>
    %cst_82 = arith.constant dense<0.000000e+00> : vector<16x96xf32>
    %116 = tpu.matmul %111, %115, %cst_82 {dimension_numbers = #tpu.dot_dimension_numbers<[1], [0], [0], [1], [0, 0, 1, 1], [], []>} : vector<16x96xf32>, vector<96x96xf32>, vector<16x96xf32> -> vector<16x96xf32>
    %117 = vector.broadcast %113 : vector<1x96xf32> to vector<16x96xf32>
    %118 = arith.addf %117, %116 : vector<16x96xf32>
    %c2_i32_83 = arith.constant 2 : i32
    %119 = tpu.dynamic_rotate %111 by %c2_i32_83 dim 0 : vector<16x96xf32>, i32 -> vector<16x96xf32>
    %120 = tpu.iota {dimensions = array<i32: 0>} : vector<16x96xi32>
    %c2_i32_84 = arith.constant 2 : i32
    %121 = vector.broadcast %c2_i32_84 : i32 to vector<16x96xi32>
    %122 = arith.cmpi sge, %120, %121 : vector<16x96xi32>
    %cst_85 = arith.constant 0.000000e+00 : f32
    %123 = vector.broadcast %cst_85 : f32 to vector<16x96xf32>
    %124 = arith.select %122, %119, %123 : vector<16x96xi1>, vector<16x96xf32>
    %c2_86 = arith.constant 2 : index
    %c0_87 = arith.constant 0 : index
    %c0_88 = arith.constant 0 : index
    %125 = vector.load %arg6[%c2_86, %c0_87, %c0_88] : memref<10x96x96xf32, #tpu.memory_space<vmem>>, vector<1x96x96xf32>
    %126 = vector.shape_cast %125 : vector<1x96x96xf32> to vector<96x96xf32>
    %cst_89 = arith.constant dense<0.000000e+00> : vector<16x96xf32>
    %127 = tpu.matmul %124, %126, %cst_89 {dimension_numbers = #tpu.dot_dimension_numbers<[1], [0], [0], [1], [0, 0, 1, 1], [], []>} : vector<16x96xf32>, vector<96x96xf32>, vector<16x96xf32> -> vector<16x96xf32>
    %128 = arith.addf %118, %127 : vector<16x96xf32>
    %cst_90 = arith.constant 0.000000e+00 : f32
    %129 = vector.broadcast %cst_90 : f32 to vector<16x96xf32>
    %130 = arith.maximumf %128, %129 : vector<16x96xf32>
    %c1_91 = arith.constant 1 : index
    %c0_92 = arith.constant 0 : index
    %c0_93 = arith.constant 0 : index
    %131 = vector.load %arg8[%c1_91, %c0_92, %c0_93] : memref<5x96x96xf32, #tpu.memory_space<vmem>>, vector<1x96x96xf32>
    %132 = vector.shape_cast %131 : vector<1x96x96xf32> to vector<96x96xf32>
    %cst_94 = arith.constant dense<0.000000e+00> : vector<16x96xf32>
    %133 = tpu.matmul %72, %132, %cst_94 {dimension_numbers = #tpu.dot_dimension_numbers<[1], [0], [0], [1], [0, 0, 1, 1], [], []>} : vector<16x96xf32>, vector<96x96xf32>, vector<16x96xf32> -> vector<16x96xf32>
    %134 = arith.addf %130, %133 : vector<16x96xf32>
    %c1_95 = arith.constant 1 : index
    %c0_96 = arith.constant 0 : index
    %c0_97 = arith.constant 0 : index
    %135 = vector.load %arg9[%c1_95, %c0_96, %c0_97] : memref<5x1x96xf32, #tpu.memory_space<vmem>>, vector<1x1x96xf32>
    %136 = vector.shape_cast %135 : vector<1x1x96xf32> to vector<1x96xf32>
    %137 = vector.broadcast %136 : vector<1x96xf32> to vector<16x96xf32>
    %138 = arith.addf %134, %137 : vector<16x96xf32>
    %c2_98 = arith.constant 2 : index
    %c0_99 = arith.constant 0 : index
    %c0_100 = arith.constant 0 : index
    %139 = vector.load %arg5[%c2_98, %c0_99, %c0_100] : memref<5x1x96xf32, #tpu.memory_space<vmem>>, vector<1x1x96xf32>
    %140 = vector.shape_cast %139 : vector<1x1x96xf32> to vector<1x96xf32>
    %c10 = arith.constant 10 : index
    %c0_101 = arith.constant 0 : index
    %c0_102 = arith.constant 0 : index
    %141 = vector.load %arg4[%c10, %c0_101, %c0_102] : memref<20x96x96xf32, #tpu.memory_space<vmem>>, vector<1x96x96xf32>
    %142 = vector.shape_cast %141 : vector<1x96x96xf32> to vector<96x96xf32>
    %cst_103 = arith.constant dense<0.000000e+00> : vector<16x96xf32>
    %143 = tpu.matmul %138, %142, %cst_103 {dimension_numbers = #tpu.dot_dimension_numbers<[1], [0], [0], [1], [0, 0, 1, 1], [], []>} : vector<16x96xf32>, vector<96x96xf32>, vector<16x96xf32> -> vector<16x96xf32>
    %144 = vector.broadcast %140 : vector<1x96xf32> to vector<16x96xf32>
    %145 = arith.addf %144, %143 : vector<16x96xf32>
    %c2_i32_104 = arith.constant 2 : i32
    %146 = tpu.dynamic_rotate %138 by %c2_i32_104 dim 0 : vector<16x96xf32>, i32 -> vector<16x96xf32>
    %147 = tpu.iota {dimensions = array<i32: 0>} : vector<16x96xi32>
    %c2_i32_105 = arith.constant 2 : i32
    %148 = vector.broadcast %c2_i32_105 : i32 to vector<16x96xi32>
    %149 = arith.cmpi sge, %147, %148 : vector<16x96xi32>
    %cst_106 = arith.constant 0.000000e+00 : f32
    %150 = vector.broadcast %cst_106 : f32 to vector<16x96xf32>
    %151 = arith.select %149, %146, %150 : vector<16x96xi1>, vector<16x96xf32>
    %c8 = arith.constant 8 : index
    %c0_107 = arith.constant 0 : index
    %c0_108 = arith.constant 0 : index
    %152 = vector.load %arg4[%c8, %c0_107, %c0_108] : memref<20x96x96xf32, #tpu.memory_space<vmem>>, vector<1x96x96xf32>
    %153 = vector.shape_cast %152 : vector<1x96x96xf32> to vector<96x96xf32>
    %cst_109 = arith.constant dense<0.000000e+00> : vector<16x96xf32>
    %154 = tpu.matmul %151, %153, %cst_109 {dimension_numbers = #tpu.dot_dimension_numbers<[1], [0], [0], [1], [0, 0, 1, 1], [], []>} : vector<16x96xf32>, vector<96x96xf32>, vector<16x96xf32> -> vector<16x96xf32>
    %155 = arith.addf %145, %154 : vector<16x96xf32>
    %c1_i32_110 = arith.constant 1 : i32
    %156 = tpu.dynamic_rotate %138 by %c1_i32_110 dim 0 : vector<16x96xf32>, i32 -> vector<16x96xf32>
    %157 = tpu.iota {dimensions = array<i32: 0>} : vector<16x96xi32>
    %c1_i32_111 = arith.constant 1 : i32
    %158 = vector.broadcast %c1_i32_111 : i32 to vector<16x96xi32>
    %159 = arith.cmpi sge, %157, %158 : vector<16x96xi32>
    %cst_112 = arith.constant 0.000000e+00 : f32
    %160 = vector.broadcast %cst_112 : f32 to vector<16x96xf32>
    %161 = arith.select %159, %156, %160 : vector<16x96xi1>, vector<16x96xf32>
    %c9 = arith.constant 9 : index
    %c0_113 = arith.constant 0 : index
    %c0_114 = arith.constant 0 : index
    %162 = vector.load %arg4[%c9, %c0_113, %c0_114] : memref<20x96x96xf32, #tpu.memory_space<vmem>>, vector<1x96x96xf32>
    %163 = vector.shape_cast %162 : vector<1x96x96xf32> to vector<96x96xf32>
    %cst_115 = arith.constant dense<0.000000e+00> : vector<16x96xf32>
    %164 = tpu.matmul %161, %163, %cst_115 {dimension_numbers = #tpu.dot_dimension_numbers<[1], [0], [0], [1], [0, 0, 1, 1], [], []>} : vector<16x96xf32>, vector<96x96xf32>, vector<16x96xf32> -> vector<16x96xf32>
    %165 = arith.addf %155, %164 : vector<16x96xf32>
    %c15_i32_116 = arith.constant 15 : i32
    %166 = tpu.dynamic_rotate %138 by %c15_i32_116 dim 0 : vector<16x96xf32>, i32 -> vector<16x96xf32>
    %167 = tpu.iota {dimensions = array<i32: 0>} : vector<16x96xi32>
    %c15_i32_117 = arith.constant 15 : i32
    %168 = vector.broadcast %c15_i32_117 : i32 to vector<16x96xi32>
    %169 = arith.cmpi slt, %167, %168 : vector<16x96xi32>
    %cst_118 = arith.constant 0.000000e+00 : f32
    %170 = vector.broadcast %cst_118 : f32 to vector<16x96xf32>
    %171 = arith.select %169, %166, %170 : vector<16x96xi1>, vector<16x96xf32>
    %c11 = arith.constant 11 : index
    %c0_119 = arith.constant 0 : index
    %c0_120 = arith.constant 0 : index
    %172 = vector.load %arg4[%c11, %c0_119, %c0_120] : memref<20x96x96xf32, #tpu.memory_space<vmem>>, vector<1x96x96xf32>
    %173 = vector.shape_cast %172 : vector<1x96x96xf32> to vector<96x96xf32>
    %cst_121 = arith.constant dense<0.000000e+00> : vector<16x96xf32>
    %174 = tpu.matmul %171, %173, %cst_121 {dimension_numbers = #tpu.dot_dimension_numbers<[1], [0], [0], [1], [0, 0, 1, 1], [], []>} : vector<16x96xf32>, vector<96x96xf32>, vector<16x96xf32> -> vector<16x96xf32>
    %175 = arith.addf %165, %174 : vector<16x96xf32>
    %cst_122 = arith.constant 0.000000e+00 : f32
    %176 = vector.broadcast %cst_122 : f32 to vector<16x96xf32>
    %177 = arith.maximumf %175, %176 : vector<16x96xf32>
    %c2_123 = arith.constant 2 : index
    %c0_124 = arith.constant 0 : index
    %c0_125 = arith.constant 0 : index
    %178 = vector.load %arg7[%c2_123, %c0_124, %c0_125] : memref<5x1x96xf32, #tpu.memory_space<vmem>>, vector<1x1x96xf32>
    %179 = vector.shape_cast %178 : vector<1x1x96xf32> to vector<1x96xf32>
    %c5_126 = arith.constant 5 : index
    %c0_127 = arith.constant 0 : index
    %c0_128 = arith.constant 0 : index
    %180 = vector.load %arg6[%c5_126, %c0_127, %c0_128] : memref<10x96x96xf32, #tpu.memory_space<vmem>>, vector<1x96x96xf32>
    %181 = vector.shape_cast %180 : vector<1x96x96xf32> to vector<96x96xf32>
    %cst_129 = arith.constant dense<0.000000e+00> : vector<16x96xf32>
    %182 = tpu.matmul %177, %181, %cst_129 {dimension_numbers = #tpu.dot_dimension_numbers<[1], [0], [0], [1], [0, 0, 1, 1], [], []>} : vector<16x96xf32>, vector<96x96xf32>, vector<16x96xf32> -> vector<16x96xf32>
    %183 = vector.broadcast %179 : vector<1x96xf32> to vector<16x96xf32>
    %184 = arith.addf %183, %182 : vector<16x96xf32>
    %c4_i32 = arith.constant 4 : i32
    %185 = tpu.dynamic_rotate %177 by %c4_i32 dim 0 : vector<16x96xf32>, i32 -> vector<16x96xf32>
    %186 = tpu.iota {dimensions = array<i32: 0>} : vector<16x96xi32>
    %c4_i32_130 = arith.constant 4 : i32
    %187 = vector.broadcast %c4_i32_130 : i32 to vector<16x96xi32>
    %188 = arith.cmpi sge, %186, %187 : vector<16x96xi32>
    %cst_131 = arith.constant 0.000000e+00 : f32
    %189 = vector.broadcast %cst_131 : f32 to vector<16x96xf32>
    %190 = arith.select %188, %185, %189 : vector<16x96xi1>, vector<16x96xf32>
    %c4_132 = arith.constant 4 : index
    %c0_133 = arith.constant 0 : index
    %c0_134 = arith.constant 0 : index
    %191 = vector.load %arg6[%c4_132, %c0_133, %c0_134] : memref<10x96x96xf32, #tpu.memory_space<vmem>>, vector<1x96x96xf32>
    %192 = vector.shape_cast %191 : vector<1x96x96xf32> to vector<96x96xf32>
    %cst_135 = arith.constant dense<0.000000e+00> : vector<16x96xf32>
    %193 = tpu.matmul %190, %192, %cst_135 {dimension_numbers = #tpu.dot_dimension_numbers<[1], [0], [0], [1], [0, 0, 1, 1], [], []>} : vector<16x96xf32>, vector<96x96xf32>, vector<16x96xf32> -> vector<16x96xf32>
    %194 = arith.addf %184, %193 : vector<16x96xf32>
    %cst_136 = arith.constant 0.000000e+00 : f32
    %195 = vector.broadcast %cst_136 : f32 to vector<16x96xf32>
    %196 = arith.maximumf %194, %195 : vector<16x96xf32>
    %c2_137 = arith.constant 2 : index
    %c0_138 = arith.constant 0 : index
    %c0_139 = arith.constant 0 : index
    %197 = vector.load %arg8[%c2_137, %c0_138, %c0_139] : memref<5x96x96xf32, #tpu.memory_space<vmem>>, vector<1x96x96xf32>
    %198 = vector.shape_cast %197 : vector<1x96x96xf32> to vector<96x96xf32>
    %cst_140 = arith.constant dense<0.000000e+00> : vector<16x96xf32>
    %199 = tpu.matmul %138, %198, %cst_140 {dimension_numbers = #tpu.dot_dimension_numbers<[1], [0], [0], [1], [0, 0, 1, 1], [], []>} : vector<16x96xf32>, vector<96x96xf32>, vector<16x96xf32> -> vector<16x96xf32>
    %200 = arith.addf %196, %199 : vector<16x96xf32>
    %c2_141 = arith.constant 2 : index
    %c0_142 = arith.constant 0 : index
    %c0_143 = arith.constant 0 : index
    %201 = vector.load %arg9[%c2_141, %c0_142, %c0_143] : memref<5x1x96xf32, #tpu.memory_space<vmem>>, vector<1x1x96xf32>
    %202 = vector.shape_cast %201 : vector<1x1x96xf32> to vector<1x96xf32>
    %203 = vector.broadcast %202 : vector<1x96xf32> to vector<16x96xf32>
    %204 = arith.addf %200, %203 : vector<16x96xf32>
    %c3_144 = arith.constant 3 : index
    %c0_145 = arith.constant 0 : index
    %c0_146 = arith.constant 0 : index
    %205 = vector.load %arg5[%c3_144, %c0_145, %c0_146] : memref<5x1x96xf32, #tpu.memory_space<vmem>>, vector<1x1x96xf32>
    %206 = vector.shape_cast %205 : vector<1x1x96xf32> to vector<1x96xf32>
    %c14 = arith.constant 14 : index
    %c0_147 = arith.constant 0 : index
    %c0_148 = arith.constant 0 : index
    %207 = vector.load %arg4[%c14, %c0_147, %c0_148] : memref<20x96x96xf32, #tpu.memory_space<vmem>>, vector<1x96x96xf32>
    %208 = vector.shape_cast %207 : vector<1x96x96xf32> to vector<96x96xf32>
    %cst_149 = arith.constant dense<0.000000e+00> : vector<16x96xf32>
    %209 = tpu.matmul %204, %208, %cst_149 {dimension_numbers = #tpu.dot_dimension_numbers<[1], [0], [0], [1], [0, 0, 1, 1], [], []>} : vector<16x96xf32>, vector<96x96xf32>, vector<16x96xf32> -> vector<16x96xf32>
    %210 = vector.broadcast %206 : vector<1x96xf32> to vector<16x96xf32>
    %211 = arith.addf %210, %209 : vector<16x96xf32>
    %c2_i32_150 = arith.constant 2 : i32
    %212 = tpu.dynamic_rotate %204 by %c2_i32_150 dim 0 : vector<16x96xf32>, i32 -> vector<16x96xf32>
    %213 = tpu.iota {dimensions = array<i32: 0>} : vector<16x96xi32>
    %c2_i32_151 = arith.constant 2 : i32
    %214 = vector.broadcast %c2_i32_151 : i32 to vector<16x96xi32>
    %215 = arith.cmpi sge, %213, %214 : vector<16x96xi32>
    %cst_152 = arith.constant 0.000000e+00 : f32
    %216 = vector.broadcast %cst_152 : f32 to vector<16x96xf32>
    %217 = arith.select %215, %212, %216 : vector<16x96xi1>, vector<16x96xf32>
    %c12 = arith.constant 12 : index
    %c0_153 = arith.constant 0 : index
    %c0_154 = arith.constant 0 : index
    %218 = vector.load %arg4[%c12, %c0_153, %c0_154] : memref<20x96x96xf32, #tpu.memory_space<vmem>>, vector<1x96x96xf32>
    %219 = vector.shape_cast %218 : vector<1x96x96xf32> to vector<96x96xf32>
    %cst_155 = arith.constant dense<0.000000e+00> : vector<16x96xf32>
    %220 = tpu.matmul %217, %219, %cst_155 {dimension_numbers = #tpu.dot_dimension_numbers<[1], [0], [0], [1], [0, 0, 1, 1], [], []>} : vector<16x96xf32>, vector<96x96xf32>, vector<16x96xf32> -> vector<16x96xf32>
    %221 = arith.addf %211, %220 : vector<16x96xf32>
    %c1_i32_156 = arith.constant 1 : i32
    %222 = tpu.dynamic_rotate %204 by %c1_i32_156 dim 0 : vector<16x96xf32>, i32 -> vector<16x96xf32>
    %223 = tpu.iota {dimensions = array<i32: 0>} : vector<16x96xi32>
    %c1_i32_157 = arith.constant 1 : i32
    %224 = vector.broadcast %c1_i32_157 : i32 to vector<16x96xi32>
    %225 = arith.cmpi sge, %223, %224 : vector<16x96xi32>
    %cst_158 = arith.constant 0.000000e+00 : f32
    %226 = vector.broadcast %cst_158 : f32 to vector<16x96xf32>
    %227 = arith.select %225, %222, %226 : vector<16x96xi1>, vector<16x96xf32>
    %c13 = arith.constant 13 : index
    %c0_159 = arith.constant 0 : index
    %c0_160 = arith.constant 0 : index
    %228 = vector.load %arg4[%c13, %c0_159, %c0_160] : memref<20x96x96xf32, #tpu.memory_space<vmem>>, vector<1x96x96xf32>
    %229 = vector.shape_cast %228 : vector<1x96x96xf32> to vector<96x96xf32>
    %cst_161 = arith.constant dense<0.000000e+00> : vector<16x96xf32>
    %230 = tpu.matmul %227, %229, %cst_161 {dimension_numbers = #tpu.dot_dimension_numbers<[1], [0], [0], [1], [0, 0, 1, 1], [], []>} : vector<16x96xf32>, vector<96x96xf32>, vector<16x96xf32> -> vector<16x96xf32>
    %231 = arith.addf %221, %230 : vector<16x96xf32>
    %c15_i32_162 = arith.constant 15 : i32
    %232 = tpu.dynamic_rotate %204 by %c15_i32_162 dim 0 : vector<16x96xf32>, i32 -> vector<16x96xf32>
    %233 = tpu.iota {dimensions = array<i32: 0>} : vector<16x96xi32>
    %c15_i32_163 = arith.constant 15 : i32
    %234 = vector.broadcast %c15_i32_163 : i32 to vector<16x96xi32>
    %235 = arith.cmpi slt, %233, %234 : vector<16x96xi32>
    %cst_164 = arith.constant 0.000000e+00 : f32
    %236 = vector.broadcast %cst_164 : f32 to vector<16x96xf32>
    %237 = arith.select %235, %232, %236 : vector<16x96xi1>, vector<16x96xf32>
    %c15 = arith.constant 15 : index
    %c0_165 = arith.constant 0 : index
    %c0_166 = arith.constant 0 : index
    %238 = vector.load %arg4[%c15, %c0_165, %c0_166] : memref<20x96x96xf32, #tpu.memory_space<vmem>>, vector<1x96x96xf32>
    %239 = vector.shape_cast %238 : vector<1x96x96xf32> to vector<96x96xf32>
    %cst_167 = arith.constant dense<0.000000e+00> : vector<16x96xf32>
    %240 = tpu.matmul %237, %239, %cst_167 {dimension_numbers = #tpu.dot_dimension_numbers<[1], [0], [0], [1], [0, 0, 1, 1], [], []>} : vector<16x96xf32>, vector<96x96xf32>, vector<16x96xf32> -> vector<16x96xf32>
    %241 = arith.addf %231, %240 : vector<16x96xf32>
    %cst_168 = arith.constant 0.000000e+00 : f32
    %242 = vector.broadcast %cst_168 : f32 to vector<16x96xf32>
    %243 = arith.maximumf %241, %242 : vector<16x96xf32>
    %c3_169 = arith.constant 3 : index
    %c0_170 = arith.constant 0 : index
    %c0_171 = arith.constant 0 : index
    %244 = vector.load %arg7[%c3_169, %c0_170, %c0_171] : memref<5x1x96xf32, #tpu.memory_space<vmem>>, vector<1x1x96xf32>
    %245 = vector.shape_cast %244 : vector<1x1x96xf32> to vector<1x96xf32>
    %c7_172 = arith.constant 7 : index
    %c0_173 = arith.constant 0 : index
    %c0_174 = arith.constant 0 : index
    %246 = vector.load %arg6[%c7_172, %c0_173, %c0_174] : memref<10x96x96xf32, #tpu.memory_space<vmem>>, vector<1x96x96xf32>
    %247 = vector.shape_cast %246 : vector<1x96x96xf32> to vector<96x96xf32>
    %cst_175 = arith.constant dense<0.000000e+00> : vector<16x96xf32>
    %248 = tpu.matmul %243, %247, %cst_175 {dimension_numbers = #tpu.dot_dimension_numbers<[1], [0], [0], [1], [0, 0, 1, 1], [], []>} : vector<16x96xf32>, vector<96x96xf32>, vector<16x96xf32> -> vector<16x96xf32>
    %249 = vector.broadcast %245 : vector<1x96xf32> to vector<16x96xf32>
    %250 = arith.addf %249, %248 : vector<16x96xf32>
    %c8_i32 = arith.constant 8 : i32
    %251 = tpu.dynamic_rotate %243 by %c8_i32 dim 0 : vector<16x96xf32>, i32 -> vector<16x96xf32>
    %252 = tpu.iota {dimensions = array<i32: 0>} : vector<16x96xi32>
    %c8_i32_176 = arith.constant 8 : i32
    %253 = vector.broadcast %c8_i32_176 : i32 to vector<16x96xi32>
    %254 = arith.cmpi sge, %252, %253 : vector<16x96xi32>
    %cst_177 = arith.constant 0.000000e+00 : f32
    %255 = vector.broadcast %cst_177 : f32 to vector<16x96xf32>
    %256 = arith.select %254, %251, %255 : vector<16x96xi1>, vector<16x96xf32>
    %c6_178 = arith.constant 6 : index
    %c0_179 = arith.constant 0 : index
    %c0_180 = arith.constant 0 : index
    %257 = vector.load %arg6[%c6_178, %c0_179, %c0_180] : memref<10x96x96xf32, #tpu.memory_space<vmem>>, vector<1x96x96xf32>
    %258 = vector.shape_cast %257 : vector<1x96x96xf32> to vector<96x96xf32>
    %cst_181 = arith.constant dense<0.000000e+00> : vector<16x96xf32>
    %259 = tpu.matmul %256, %258, %cst_181 {dimension_numbers = #tpu.dot_dimension_numbers<[1], [0], [0], [1], [0, 0, 1, 1], [], []>} : vector<16x96xf32>, vector<96x96xf32>, vector<16x96xf32> -> vector<16x96xf32>
    %260 = arith.addf %250, %259 : vector<16x96xf32>
    %cst_182 = arith.constant 0.000000e+00 : f32
    %261 = vector.broadcast %cst_182 : f32 to vector<16x96xf32>
    %262 = arith.maximumf %260, %261 : vector<16x96xf32>
    %c3_183 = arith.constant 3 : index
    %c0_184 = arith.constant 0 : index
    %c0_185 = arith.constant 0 : index
    %263 = vector.load %arg8[%c3_183, %c0_184, %c0_185] : memref<5x96x96xf32, #tpu.memory_space<vmem>>, vector<1x96x96xf32>
    %264 = vector.shape_cast %263 : vector<1x96x96xf32> to vector<96x96xf32>
    %cst_186 = arith.constant dense<0.000000e+00> : vector<16x96xf32>
    %265 = tpu.matmul %204, %264, %cst_186 {dimension_numbers = #tpu.dot_dimension_numbers<[1], [0], [0], [1], [0, 0, 1, 1], [], []>} : vector<16x96xf32>, vector<96x96xf32>, vector<16x96xf32> -> vector<16x96xf32>
    %266 = arith.addf %262, %265 : vector<16x96xf32>
    %c3_187 = arith.constant 3 : index
    %c0_188 = arith.constant 0 : index
    %c0_189 = arith.constant 0 : index
    %267 = vector.load %arg9[%c3_187, %c0_188, %c0_189] : memref<5x1x96xf32, #tpu.memory_space<vmem>>, vector<1x1x96xf32>
    %268 = vector.shape_cast %267 : vector<1x1x96xf32> to vector<1x96xf32>
    %269 = vector.broadcast %268 : vector<1x96xf32> to vector<16x96xf32>
    %270 = arith.addf %266, %269 : vector<16x96xf32>
    %c4_190 = arith.constant 4 : index
    %c0_191 = arith.constant 0 : index
    %c0_192 = arith.constant 0 : index
    %271 = vector.load %arg5[%c4_190, %c0_191, %c0_192] : memref<5x1x96xf32, #tpu.memory_space<vmem>>, vector<1x1x96xf32>
    %272 = vector.shape_cast %271 : vector<1x1x96xf32> to vector<1x96xf32>
    %c18 = arith.constant 18 : index
    %c0_193 = arith.constant 0 : index
    %c0_194 = arith.constant 0 : index
    %273 = vector.load %arg4[%c18, %c0_193, %c0_194] : memref<20x96x96xf32, #tpu.memory_space<vmem>>, vector<1x96x96xf32>
    %274 = vector.shape_cast %273 : vector<1x96x96xf32> to vector<96x96xf32>
    %cst_195 = arith.constant dense<0.000000e+00> : vector<16x96xf32>
    %275 = tpu.matmul %270, %274, %cst_195 {dimension_numbers = #tpu.dot_dimension_numbers<[1], [0], [0], [1], [0, 0, 1, 1], [], []>} : vector<16x96xf32>, vector<96x96xf32>, vector<16x96xf32> -> vector<16x96xf32>
    %276 = vector.broadcast %272 : vector<1x96xf32> to vector<16x96xf32>
    %277 = arith.addf %276, %275 : vector<16x96xf32>
    %c2_i32_196 = arith.constant 2 : i32
    %278 = tpu.dynamic_rotate %270 by %c2_i32_196 dim 0 : vector<16x96xf32>, i32 -> vector<16x96xf32>
    %279 = tpu.iota {dimensions = array<i32: 0>} : vector<16x96xi32>
    %c2_i32_197 = arith.constant 2 : i32
    %280 = vector.broadcast %c2_i32_197 : i32 to vector<16x96xi32>
    %281 = arith.cmpi sge, %279, %280 : vector<16x96xi32>
    %cst_198 = arith.constant 0.000000e+00 : f32
    %282 = vector.broadcast %cst_198 : f32 to vector<16x96xf32>
    %283 = arith.select %281, %278, %282 : vector<16x96xi1>, vector<16x96xf32>
    %c16 = arith.constant 16 : index
    %c0_199 = arith.constant 0 : index
    %c0_200 = arith.constant 0 : index
    %284 = vector.load %arg4[%c16, %c0_199, %c0_200] : memref<20x96x96xf32, #tpu.memory_space<vmem>>, vector<1x96x96xf32>
    %285 = vector.shape_cast %284 : vector<1x96x96xf32> to vector<96x96xf32>
    %cst_201 = arith.constant dense<0.000000e+00> : vector<16x96xf32>
    %286 = tpu.matmul %283, %285, %cst_201 {dimension_numbers = #tpu.dot_dimension_numbers<[1], [0], [0], [1], [0, 0, 1, 1], [], []>} : vector<16x96xf32>, vector<96x96xf32>, vector<16x96xf32> -> vector<16x96xf32>
    %287 = arith.addf %277, %286 : vector<16x96xf32>
    %c1_i32_202 = arith.constant 1 : i32
    %288 = tpu.dynamic_rotate %270 by %c1_i32_202 dim 0 : vector<16x96xf32>, i32 -> vector<16x96xf32>
    %289 = tpu.iota {dimensions = array<i32: 0>} : vector<16x96xi32>
    %c1_i32_203 = arith.constant 1 : i32
    %290 = vector.broadcast %c1_i32_203 : i32 to vector<16x96xi32>
    %291 = arith.cmpi sge, %289, %290 : vector<16x96xi32>
    %cst_204 = arith.constant 0.000000e+00 : f32
    %292 = vector.broadcast %cst_204 : f32 to vector<16x96xf32>
    %293 = arith.select %291, %288, %292 : vector<16x96xi1>, vector<16x96xf32>
    %c17 = arith.constant 17 : index
    %c0_205 = arith.constant 0 : index
    %c0_206 = arith.constant 0 : index
    %294 = vector.load %arg4[%c17, %c0_205, %c0_206] : memref<20x96x96xf32, #tpu.memory_space<vmem>>, vector<1x96x96xf32>
    %295 = vector.shape_cast %294 : vector<1x96x96xf32> to vector<96x96xf32>
    %cst_207 = arith.constant dense<0.000000e+00> : vector<16x96xf32>
    %296 = tpu.matmul %293, %295, %cst_207 {dimension_numbers = #tpu.dot_dimension_numbers<[1], [0], [0], [1], [0, 0, 1, 1], [], []>} : vector<16x96xf32>, vector<96x96xf32>, vector<16x96xf32> -> vector<16x96xf32>
    %297 = arith.addf %287, %296 : vector<16x96xf32>
    %c15_i32_208 = arith.constant 15 : i32
    %298 = tpu.dynamic_rotate %270 by %c15_i32_208 dim 0 : vector<16x96xf32>, i32 -> vector<16x96xf32>
    %299 = tpu.iota {dimensions = array<i32: 0>} : vector<16x96xi32>
    %c15_i32_209 = arith.constant 15 : i32
    %300 = vector.broadcast %c15_i32_209 : i32 to vector<16x96xi32>
    %301 = arith.cmpi slt, %299, %300 : vector<16x96xi32>
    %cst_210 = arith.constant 0.000000e+00 : f32
    %302 = vector.broadcast %cst_210 : f32 to vector<16x96xf32>
    %303 = arith.select %301, %298, %302 : vector<16x96xi1>, vector<16x96xf32>
    %c19 = arith.constant 19 : index
    %c0_211 = arith.constant 0 : index
    %c0_212 = arith.constant 0 : index
    %304 = vector.load %arg4[%c19, %c0_211, %c0_212] : memref<20x96x96xf32, #tpu.memory_space<vmem>>, vector<1x96x96xf32>
    %305 = vector.shape_cast %304 : vector<1x96x96xf32> to vector<96x96xf32>
    %cst_213 = arith.constant dense<0.000000e+00> : vector<16x96xf32>
    %306 = tpu.matmul %303, %305, %cst_213 {dimension_numbers = #tpu.dot_dimension_numbers<[1], [0], [0], [1], [0, 0, 1, 1], [], []>} : vector<16x96xf32>, vector<96x96xf32>, vector<16x96xf32> -> vector<16x96xf32>
    %307 = arith.addf %297, %306 : vector<16x96xf32>
    %cst_214 = arith.constant 0.000000e+00 : f32
    %308 = vector.broadcast %cst_214 : f32 to vector<16x96xf32>
    %309 = arith.maximumf %307, %308 : vector<16x96xf32>
    %c4_215 = arith.constant 4 : index
    %c0_216 = arith.constant 0 : index
    %c0_217 = arith.constant 0 : index
    %310 = vector.load %arg7[%c4_215, %c0_216, %c0_217] : memref<5x1x96xf32, #tpu.memory_space<vmem>>, vector<1x1x96xf32>
    %311 = vector.shape_cast %310 : vector<1x1x96xf32> to vector<1x96xf32>
    %c9_218 = arith.constant 9 : index
    %c0_219 = arith.constant 0 : index
    %c0_220 = arith.constant 0 : index
    %312 = vector.load %arg6[%c9_218, %c0_219, %c0_220] : memref<10x96x96xf32, #tpu.memory_space<vmem>>, vector<1x96x96xf32>
    %313 = vector.shape_cast %312 : vector<1x96x96xf32> to vector<96x96xf32>
    %cst_221 = arith.constant dense<0.000000e+00> : vector<16x96xf32>
    %314 = tpu.matmul %309, %313, %cst_221 {dimension_numbers = #tpu.dot_dimension_numbers<[1], [0], [0], [1], [0, 0, 1, 1], [], []>} : vector<16x96xf32>, vector<96x96xf32>, vector<16x96xf32> -> vector<16x96xf32>
    %315 = vector.broadcast %311 : vector<1x96xf32> to vector<16x96xf32>
    %316 = arith.addf %315, %314 : vector<16x96xf32>
    %cst_222 = arith.constant 0.000000e+00 : f32
    %317 = vector.broadcast %cst_222 : f32 to vector<16x96xf32>
    %c8_223 = arith.constant 8 : index
    %c0_224 = arith.constant 0 : index
    %c0_225 = arith.constant 0 : index
    %318 = vector.load %arg6[%c8_223, %c0_224, %c0_225] : memref<10x96x96xf32, #tpu.memory_space<vmem>>, vector<1x96x96xf32>
    %319 = vector.shape_cast %318 : vector<1x96x96xf32> to vector<96x96xf32>
    %cst_226 = arith.constant dense<0.000000e+00> : vector<16x96xf32>
    %320 = tpu.matmul %317, %319, %cst_226 {dimension_numbers = #tpu.dot_dimension_numbers<[1], [0], [0], [1], [0, 0, 1, 1], [], []>} : vector<16x96xf32>, vector<96x96xf32>, vector<16x96xf32> -> vector<16x96xf32>
    %321 = arith.addf %316, %320 : vector<16x96xf32>
    %cst_227 = arith.constant 0.000000e+00 : f32
    %322 = vector.broadcast %cst_227 : f32 to vector<16x96xf32>
    %323 = arith.maximumf %321, %322 : vector<16x96xf32>
    %c4_228 = arith.constant 4 : index
    %c0_229 = arith.constant 0 : index
    %c0_230 = arith.constant 0 : index
    %324 = vector.load %arg8[%c4_228, %c0_229, %c0_230] : memref<5x96x96xf32, #tpu.memory_space<vmem>>, vector<1x96x96xf32>
    %325 = vector.shape_cast %324 : vector<1x96x96xf32> to vector<96x96xf32>
    %cst_231 = arith.constant dense<0.000000e+00> : vector<16x96xf32>
    %326 = tpu.matmul %270, %325, %cst_231 {dimension_numbers = #tpu.dot_dimension_numbers<[1], [0], [0], [1], [0, 0, 1, 1], [], []>} : vector<16x96xf32>, vector<96x96xf32>, vector<16x96xf32> -> vector<16x96xf32>
    %327 = arith.addf %323, %326 : vector<16x96xf32>
    %c4_232 = arith.constant 4 : index
    %c0_233 = arith.constant 0 : index
    %c0_234 = arith.constant 0 : index
    %328 = vector.load %arg9[%c4_232, %c0_233, %c0_234] : memref<5x1x96xf32, #tpu.memory_space<vmem>>, vector<1x1x96xf32>
    %329 = vector.shape_cast %328 : vector<1x1x96xf32> to vector<1x96xf32>
    %330 = vector.broadcast %329 : vector<1x96xf32> to vector<16x96xf32>
    %331 = arith.addf %327, %330 : vector<16x96xf32>
    %c0_235 = arith.constant 0 : index
    %c0_236 = arith.constant 0 : index
    %332 = vector.load %arg10[%c0_235, %c0_236] : memref<96x96xf32, #tpu.memory_space<vmem>>, vector<96x96xf32>
    %cst_237 = arith.constant dense<0.000000e+00> : vector<16x96xf32>
    %333 = tpu.matmul %331, %332, %cst_237 {dimension_numbers = #tpu.dot_dimension_numbers<[1], [0], [0], [1], [0, 0, 1, 1], [], []>} : vector<16x96xf32>, vector<96x96xf32>, vector<16x96xf32> -> vector<16x96xf32>
    %c0_238 = arith.constant 0 : index
    %c0_239 = arith.constant 0 : index
    %334 = vector.load %arg11[%c0_238, %c0_239] : memref<1x96xf32, #tpu.memory_space<vmem>>, vector<1x96xf32>
    %335 = vector.broadcast %334 : vector<1x96xf32> to vector<16x96xf32>
    %336 = arith.addf %333, %335 : vector<16x96xf32>
    %c0_240 = arith.constant 0 : index
    %c0_241 = arith.constant 0 : index
    %337 = vector.load %arg12[%c0_240, %c0_241] : memref<96x96xf32, #tpu.memory_space<vmem>>, vector<96x96xf32>
    %cst_242 = arith.constant dense<0.000000e+00> : vector<16x96xf32>
    %338 = tpu.matmul %331, %337, %cst_242 {dimension_numbers = #tpu.dot_dimension_numbers<[1], [0], [0], [1], [0, 0, 1, 1], [], []>} : vector<16x96xf32>, vector<96x96xf32>, vector<16x96xf32> -> vector<16x96xf32>
    %c0_243 = arith.constant 0 : index
    %c0_244 = arith.constant 0 : index
    %339 = vector.load %arg13[%c0_243, %c0_244] : memref<1x96xf32, #tpu.memory_space<vmem>>, vector<1x96xf32>
    %340 = vector.broadcast %339 : vector<1x96xf32> to vector<16x96xf32>
    %341 = arith.addf %338, %340 : vector<16x96xf32>
    %c0_245 = arith.constant 0 : index
    %c0_246 = arith.constant 0 : index
    %342 = vector.load %arg14[%c0_245, %c0_246] : memref<96x96xf32, #tpu.memory_space<vmem>>, vector<96x96xf32>
    %cst_247 = arith.constant dense<0.000000e+00> : vector<16x96xf32>
    %343 = tpu.matmul %331, %342, %cst_247 {dimension_numbers = #tpu.dot_dimension_numbers<[1], [0], [0], [1], [0, 0, 1, 1], [], []>} : vector<16x96xf32>, vector<96x96xf32>, vector<16x96xf32> -> vector<16x96xf32>
    %c0_248 = arith.constant 0 : index
    %c0_249 = arith.constant 0 : index
    %344 = vector.load %arg15[%c0_248, %c0_249] : memref<1x96xf32, #tpu.memory_space<vmem>>, vector<1x96xf32>
    %345 = vector.broadcast %344 : vector<1x96xf32> to vector<16x96xf32>
    %346 = arith.addf %343, %345 : vector<16x96xf32>
    %cst_250 = arith.constant 0.000000e+00 : f32
    %347 = vector.broadcast %cst_250 : f32 to vector<16x96xf32>
    %c0_251 = arith.constant 0 : index
    %c0_252 = arith.constant 0 : index
    %348 = vector.load %arg17[%c0_251, %c0_252] : memref<1x96xf32, #tpu.memory_space<vmem>>, vector<1x96xf32>
    %349 = vector.broadcast %348 : vector<1x96xf32> to vector<16x96xf32>
    %350 = arith.addf %347, %349 : vector<16x96xf32>
    %351 = vector.extract_strided_slice %336 {offsets = [0, 0], sizes = [16, 48], strides = [1, 1]} : vector<16x96xf32> to vector<16x48xf32>
    %cst_253 = arith.constant 0.144337565 : f32
    %352 = vector.broadcast %cst_253 : f32 to vector<16x48xf32>
    %353 = arith.mulf %351, %352 : vector<16x48xf32>
    %354 = vector.extract_strided_slice %341 {offsets = [0, 0], sizes = [16, 48], strides = [1, 1]} : vector<16x96xf32> to vector<16x48xf32>
    %355 = vector.extract_strided_slice %346 {offsets = [0, 0], sizes = [16, 48], strides = [1, 1]} : vector<16x96xf32> to vector<16x48xf32>
    %356 = tpu.transpose %354, [1, 0] : vector<16x48xf32> -> vector<48x16xf32>
    %cst_254 = arith.constant dense<0.000000e+00> : vector<16x16xf32>
    %357 = tpu.matmul %353, %356, %cst_254 {dimension_numbers = #tpu.dot_dimension_numbers<[1], [0], [0], [1], [0, 0, 1, 1], [], []>} : vector<16x48xf32>, vector<48x16xf32>, vector<16x16xf32> -> vector<16x16xf32>
    %cst_255 = arith.constant dense<0xFF800000> : vector<16xf32>
    %358 = vector.multi_reduction <maximumf>, %357, %cst_255 [1] : vector<16x16xf32> to vector<16xf32>
    %359 = vector.shape_cast %358 : vector<16xf32> to vector<16x1xf32>
    %360 = vector.broadcast %359 : vector<16x1xf32> to vector<16x16xf32>
    %361 = arith.subf %357, %360 : vector<16x16xf32>
    %362 = math.exp %361 : vector<16x16xf32>
    %cst_256 = arith.constant dense<0.000000e+00> : vector<16xf32>
    %363 = vector.multi_reduction <add>, %362, %cst_256 [1] : vector<16x16xf32> to vector<16xf32>
    %364 = vector.shape_cast %363 : vector<16xf32> to vector<16x1xf32>
    %365 = tpu.reciprocal %364 {approx = true} : vector<16x1xf32> -> vector<16x1xf32>
    %366 = vector.broadcast %365 : vector<16x1xf32> to vector<16x16xf32>
    %367 = arith.mulf %362, %366 : vector<16x16xf32>
    %cst_257 = arith.constant dense<0.000000e+00> : vector<16x48xf32>
    %368 = tpu.matmul %367, %355, %cst_257 {dimension_numbers = #tpu.dot_dimension_numbers<[1], [0], [0], [1], [0, 0, 1, 1], [], []>} : vector<16x16xf32>, vector<16x48xf32>, vector<16x48xf32> -> vector<16x48xf32>
    %c0_258 = arith.constant 0 : index
    %c0_259 = arith.constant 0 : index
    %369 = vector.load %arg16[%c0_258, %c0_259] : memref<96x96xf32, #tpu.memory_space<vmem>>, vector<48x96xf32>
    %cst_260 = arith.constant dense<0.000000e+00> : vector<16x96xf32>
    %370 = tpu.matmul %368, %369, %cst_260 {dimension_numbers = #tpu.dot_dimension_numbers<[1], [0], [0], [1], [0, 0, 1, 1], [], []>} : vector<16x48xf32>, vector<48x96xf32>, vector<16x96xf32> -> vector<16x96xf32>
    %371 = arith.addf %350, %370 : vector<16x96xf32>
    %372 = vector.extract_strided_slice %336 {offsets = [0, 48], sizes = [16, 48], strides = [1, 1]} : vector<16x96xf32> to vector<16x48xf32>
    %cst_261 = arith.constant 0.144337565 : f32
    %373 = vector.broadcast %cst_261 : f32 to vector<16x48xf32>
    %374 = arith.mulf %372, %373 : vector<16x48xf32>
    %375 = vector.extract_strided_slice %341 {offsets = [0, 48], sizes = [16, 48], strides = [1, 1]} : vector<16x96xf32> to vector<16x48xf32>
    %376 = vector.extract_strided_slice %346 {offsets = [0, 48], sizes = [16, 48], strides = [1, 1]} : vector<16x96xf32> to vector<16x48xf32>
    %377 = tpu.transpose %375, [1, 0] : vector<16x48xf32> -> vector<48x16xf32>
    %cst_262 = arith.constant dense<0.000000e+00> : vector<16x16xf32>
    %378 = tpu.matmul %374, %377, %cst_262 {dimension_numbers = #tpu.dot_dimension_numbers<[1], [0], [0], [1], [0, 0, 1, 1], [], []>} : vector<16x48xf32>, vector<48x16xf32>, vector<16x16xf32> -> vector<16x16xf32>
    %cst_263 = arith.constant dense<0xFF800000> : vector<16xf32>
    %379 = vector.multi_reduction <maximumf>, %378, %cst_263 [1] : vector<16x16xf32> to vector<16xf32>
    %380 = vector.shape_cast %379 : vector<16xf32> to vector<16x1xf32>
    %381 = vector.broadcast %380 : vector<16x1xf32> to vector<16x16xf32>
    %382 = arith.subf %378, %381 : vector<16x16xf32>
    %383 = math.exp %382 : vector<16x16xf32>
    %cst_264 = arith.constant dense<0.000000e+00> : vector<16xf32>
    %384 = vector.multi_reduction <add>, %383, %cst_264 [1] : vector<16x16xf32> to vector<16xf32>
    %385 = vector.shape_cast %384 : vector<16xf32> to vector<16x1xf32>
    %386 = tpu.reciprocal %385 {approx = true} : vector<16x1xf32> -> vector<16x1xf32>
    %387 = vector.broadcast %386 : vector<16x1xf32> to vector<16x16xf32>
    %388 = arith.mulf %383, %387 : vector<16x16xf32>
    %cst_265 = arith.constant dense<0.000000e+00> : vector<16x48xf32>
    %389 = tpu.matmul %388, %376, %cst_265 {dimension_numbers = #tpu.dot_dimension_numbers<[1], [0], [0], [1], [0, 0, 1, 1], [], []>} : vector<16x16xf32>, vector<16x48xf32>, vector<16x48xf32> -> vector<16x48xf32>
    %c48 = arith.constant 48 : index
    %c0_266 = arith.constant 0 : index
    %390 = vector.load %arg16[%c48, %c0_266] : memref<96x96xf32, #tpu.memory_space<vmem>>, vector<48x96xf32>
    %cst_267 = arith.constant dense<0.000000e+00> : vector<16x96xf32>
    %391 = tpu.matmul %389, %390, %cst_267 {dimension_numbers = #tpu.dot_dimension_numbers<[1], [0], [0], [1], [0, 0, 1, 1], [], []>} : vector<16x48xf32>, vector<48x96xf32>, vector<16x96xf32> -> vector<16x96xf32>
    %392 = arith.addf %371, %391 : vector<16x96xf32>
    %c0_268 = arith.constant 0 : index
    %c0_269 = arith.constant 0 : index
    %393 = vector.load %arg18[%c0_268, %c0_269] : memref<96x128xf32, #tpu.memory_space<vmem>>, vector<96x128xf32>
    %cst_270 = arith.constant dense<0.000000e+00> : vector<16x128xf32>
    %394 = tpu.matmul %392, %393, %cst_270 {dimension_numbers = #tpu.dot_dimension_numbers<[1], [0], [0], [1], [0, 0, 1, 1], [], []>} : vector<16x96xf32>, vector<96x128xf32>, vector<16x128xf32> -> vector<16x128xf32>
    %c0_271 = arith.constant 0 : index
    %c0_272 = arith.constant 0 : index
    %395 = vector.load %arg19[%c0_271, %c0_272] : memref<1x128xf32, #tpu.memory_space<vmem>>, vector<1x128xf32>
    %396 = vector.broadcast %395 : vector<1x128xf32> to vector<16x128xf32>
    %397 = arith.addf %394, %396 : vector<16x128xf32>
    %c0_273 = arith.constant 0 : index
    %c0_274 = arith.constant 0 : index
    %c0_275 = arith.constant 0 : index
    %398 = vector.load %arg20[%c0_273, %c0_274, %c0_275] : memref<1x16x128xf32, #tpu.memory_space<vmem>>, vector<1x16x128xf32>
    %399 = vector.shape_cast %398 : vector<1x16x128xf32> to vector<16x128xf32>
    %400 = vector.shape_cast %397 : vector<16x128xf32> to vector<1x16x128xf32>
    tpu.vector_store %arg20[%c0_273, %c0_274, %c0_275], %400 {strides = array<i32>} : memref<1x16x128xf32, #tpu.memory_space<vmem>>, vector<1x16x128xf32>,
    return
  }
  func.func @transform_0(%arg0: i32) -> (i32, i32, i32) {
    %c0_i32 = arith.constant 0 : i32
    %c0_i32_0 = arith.constant 0 : i32
    %c0_i32_1 = arith.constant 0 : i32
    return %arg0, %c0_i32, %c0_i32_0 : i32, i32, i32
  }
  func.func @transform_1(%arg0: i32) -> (i32, i32) {
    %c0_i32 = arith.constant 0 : i32
    %c0_i32_0 = arith.constant 0 : i32
    %c0_i32_1 = arith.constant 0 : i32
    return %c0_i32, %c0_i32_0 : i32, i32
  }
  func.func @transform_2(%arg0: i32) -> (i32, i32) {
    %c0_i32 = arith.constant 0 : i32
    %c0_i32_0 = arith.constant 0 : i32
    %c0_i32_1 = arith.constant 0 : i32
    return %c0_i32, %c0_i32_0 : i32, i32
  }
  func.func @transform_3(%arg0: i32) -> (i32, i32, i32) {
    %c0_i32 = arith.constant 0 : i32
    %c0_i32_0 = arith.constant 0 : i32
    %c0_i32_1 = arith.constant 0 : i32
    %c0_i32_2 = arith.constant 0 : i32
    return %c0_i32, %c0_i32_0, %c0_i32_1 : i32, i32, i32
  }
  func.func @transform_4(%arg0: i32) -> (i32, i32, i32) {
    %c0_i32 = arith.constant 0 : i32
    %c0_i32_0 = arith.constant 0 : i32
    %c0_i32_1 = arith.constant 0 : i32
    %c0_i32_2 = arith.constant 0 : i32
    return %c0_i32, %c0_i32_0, %c0_i32_1 : i32, i32, i32
  }
  func.func @transform_5(%arg0: i32) -> (i32, i32, i32) {
    %c0_i32 = arith.constant 0 : i32
    %c0_i32_0 = arith.constant 0 : i32
    %c0_i32_1 = arith.constant 0 : i32
    %c0_i32_2 = arith.constant 0 : i32
    return %c0_i32, %c0_i32_0, %c0_i32_1 : i32, i32, i32
  }
  func.func @transform_6(%arg0: i32) -> (i32, i32, i32) {
    %c0_i32 = arith.constant 0 : i32
    %c0_i32_0 = arith.constant 0 : i32
    %c0_i32_1 = arith.constant 0 : i32
    %c0_i32_2 = arith.constant 0 : i32
    return %c0_i32, %c0_i32_0, %c0_i32_1 : i32, i32, i32
  }
  func.func @transform_7(%arg0: i32) -> (i32, i32, i32) {
    %c0_i32 = arith.constant 0 : i32
    %c0_i32_0 = arith.constant 0 : i32
    %c0_i32_1 = arith.constant 0 : i32
    %c0_i32_2 = arith.constant 0 : i32
    return %c0_i32, %c0_i32_0, %c0_i32_1 : i32, i32, i32
  }
  func.func @transform_8(%arg0: i32) -> (i32, i32, i32) {
    %c0_i32 = arith.constant 0 : i32
    %c0_i32_0 = arith.constant 0 : i32
    %c0_i32_1 = arith.constant 0 : i32
    %c0_i32_2 = arith.constant 0 : i32
    return %c0_i32, %c0_i32_0, %c0_i32_1 : i32, i32, i32
  }
  func.func @transform_9(%arg0: i32) -> (i32, i32) {
    %c0_i32 = arith.constant 0 : i32
    %c0_i32_0 = arith.constant 0 : i32
    %c0_i32_1 = arith.constant 0 : i32
    return %c0_i32, %c0_i32_0 : i32, i32
  }
  func.func @transform_10(%arg0: i32) -> (i32, i32) {
    %c0_i32 = arith.constant 0 : i32
    %c0_i32_0 = arith.constant 0 : i32
    %c0_i32_1 = arith.constant 0 : i32
    return %c0_i32, %c0_i32_0 : i32, i32
  }
  func.func @transform_11(%arg0: i32) -> (i32, i32) {
    %c0_i32 = arith.constant 0 : i32
    %c0_i32_0 = arith.constant 0 : i32
    %c0_i32_1 = arith.constant 0 : i32
    return %c0_i32, %c0_i32_0 : i32, i32
  }
  func.func @transform_12(%arg0: i32) -> (i32, i32) {
    %c0_i32 = arith.constant 0 : i32
    %c0_i32_0 = arith.constant 0 : i32
    %c0_i32_1 = arith.constant 0 : i32
    return %c0_i32, %c0_i32_0 : i32, i32
  }
  func.func @transform_13(%arg0: i32) -> (i32, i32) {
    %c0_i32 = arith.constant 0 : i32
    %c0_i32_0 = arith.constant 0 : i32
    %c0_i32_1 = arith.constant 0 : i32
    return %c0_i32, %c0_i32_0 : i32, i32
  }
  func.func @transform_14(%arg0: i32) -> (i32, i32) {
    %c0_i32 = arith.constant 0 : i32
    %c0_i32_0 = arith.constant 0 : i32
    %c0_i32_1 = arith.constant 0 : i32
    return %c0_i32, %c0_i32_0 : i32, i32
  }
  func.func @transform_15(%arg0: i32) -> (i32, i32) {
    %c0_i32 = arith.constant 0 : i32
    %c0_i32_0 = arith.constant 0 : i32
    %c0_i32_1 = arith.constant 0 : i32
    return %c0_i32, %c0_i32_0 : i32, i32
  }
  func.func @transform_16(%arg0: i32) -> (i32, i32) {
    %c0_i32 = arith.constant 0 : i32
    %c0_i32_0 = arith.constant 0 : i32
    %c0_i32_1 = arith.constant 0 : i32
    return %c0_i32, %c0_i32_0 : i32, i32
  }
  func.func @transform_17(%arg0: i32) -> (i32, i32) {
    %c0_i32 = arith.constant 0 : i32
    %c0_i32_0 = arith.constant 0 : i32
    %c0_i32_1 = arith.constant 0 : i32
    return %c0_i32, %c0_i32_0 : i32, i32
  }
  func.func @transform_18(%arg0: i32) -> (i32, i32) {
    %c0_i32 = arith.constant 0 : i32
    %c0_i32_0 = arith.constant 0 : i32
    %c0_i32_1 = arith.constant 0 : i32
    return %c0_i32, %c0_i32_0 : i32, i32
  }
  func.func @transform_19(%arg0: i32) -> (i32, i32, i32) {
    %c0_i32 = arith.constant 0 : i32
    %c0_i32_0 = arith.constant 0 : i32
    %c0_i32_1 = arith.constant 0 : i32
    return %arg0, %c0_i32, %c0_i32_0 : i32, i32, i32
  }
}

</mosaic_0001>

<bundles_post_ra>
// kernel: network_forward.1
= control target key start
LH: loop header
LB: loop body
LE: loop exit
PB: predicated region body
PF: predicated region fallthrough
CT: control target
= control target key end

     0   :  { %s9973_s0 = inlined_call_operand.hbm [shape: f32[2,16,96], index: 0, kind: input, shape index: {}]   ;;  %s9974_s1 = inlined_call_operand.hbm [shape: f32[96,96], index: 1, kind: input, shape index: {}]   ;;  %s9975_s2 = inlined_call_operand.hbm [shape: f32[1,96], index: 2, kind: input, shape index: {}]   ;;  %s9976_s3 = inlined_call_operand.hbm [shape: f32[20,96,96], index: 3, kind: input, shape index: {}]   ;;  %s9977_s4 = inlined_call_operand.vmem [shape: f32[5,1,96], index: 4, kind: input, shape index: {}]   ;;  %s9978_s5 = inlined_call_operand.hbm [shape: f32[10,96,96], index: 5, kind: input, shape index: {}]   ;;  %s9979_s6 = inlined_call_operand.vmem [shape: f32[5,1,96], index: 6, kind: input, shape index: {}]   ;;  %s9980_s7 = inlined_call_operand.hbm [shape: f32[5,96,96], index: 7, kind: input, shape index: {}]   ;;  %s9981_s8 = inlined_call_operand.vmem [shape: f32[5,1,96], index: 8, kind: input, shape index: {}]   ;;  %s9982_s9 = inlined_call_operand.hbm [shape: f32[96,96], index: 9, kind: input, shape index: {}]   ;;  %s9983_s10 = inlined_call_operand.vmem [shape: f32[1,96], index: 10, kind: input, shape index: {}]   ;;  %s9984_s11 = inlined_call_operand.hbm [shape: f32[96,96], index: 11, kind: input, shape index: {}]   ;;  %s9985_s12 = inlined_call_operand.vmem [shape: f32[1,96], index: 12, kind: input, shape index: {}]   ;;  %s9986_s13 = inlined_call_operand.hbm [shape: f32[96,96], index: 13, kind: input, shape index: {}]   ;;  %s9987_s14 = inlined_call_operand.vmem [shape: f32[1,96], index: 14, kind: input, shape index: {}]   ;;  %s9988_s15 = inlined_call_operand.hbm [shape: f32[96,96], index: 15, kind: input, shape index: {}]   ;;  %s9989_s16 = inlined_call_operand.vmem [shape: f32[1,96], index: 16, kind: input, shape index: {}]   ;;  %s9990_s17 = inlined_call_operand.hbm [shape: f32[96,128], index: 17, kind: input, shape index: {}]   ;;  %s9991_s18 = inlined_call_operand.vmem [shape: f32[1,128], index: 18, kind: input, shape index: {}]   ;;  %s9992_s19 = inlined_call_operand.vmem [shape: f32[2,16,128], index: 19, kind: output, shape index: {}]  }
   0x1   :  { %10003 = sst [smem:[#allocation25_spill]] %s9973_s0 }
   0x2   :  { %10004 = sst [smem:[#allocation26_spill]] %s9974_s1 }
   0x3   :  { %10005 = sst [smem:[#allocation27_spill]] %s9975_s2 }
   0x4   :  { %10006 = sst [smem:[#allocation28_spill]] %s9976_s3 }
   0x5   :  { %10007 = sst [smem:[#allocation29_spill]] %s9977_s4 }
   0x6   :  { %10008 = sst [smem:[#allocation30_spill]] %s9979_s6 }
   0x7   :  { %10009 = sst [smem:[#allocation31_spill]] %s9980_s7 }
   0x8   :  { %10010 = sst [smem:[#allocation32_spill]] %s9981_s8 }
   0x9   :  { %10011 = sst [smem:[#allocation33_spill]] %s9983_s10 }
   0xa   :  { %10012 = sst [smem:[#allocation34_spill]] %s9985_s12 }
   0xb   :  { %10013 = sst [smem:[#allocation35_spill]] %s9987_s14 }
   0xc   :  { %10014 = sst [smem:[#allocation36_spill]] %s9989_s16 }
   0xd   :  { %10015 = sst [smem:[#allocation37_spill]] %s9991_s18 }
   0xe   :  { %10016 = sst [smem:[#allocation38_spill]] %s9992_s19 }
   0xf   :  { %24 = vsyncpa [#allocation3], 0 }
  0x10   :  { %26 = vsyncpa [#allocation3 + $0x1], 0 }
  0x11   :  { %27 = vsyncpa [#allocation5], 0 }
  0x12   :  { %28 = vsyncpa [#allocation8], 0 }
  0x13   :  { %29 = vsyncpa [#allocation11], 0 }
  0x14   :  { %30 = vsyncpa [#allocation14], 0 }
  0x15   :  { %31 = vsyncpa [#allocation17], 0  ;;  %s9210_s0 = smov 0   ;;  %s9212_s30 = smov 0  }
  0x16   :  { %s9214_s20 = smov 0   ;;  %s9216_s21 = smov 0  }
  0x17 LB: > { %s9095_s1 = smov [#allocation4]   ;;  %s9231_s2 = sadd.s32 4294967295, %s9093_s21   ;;  %s9093_s21 = sphi %s9216_s21, %s10053_s21   ;;  %s9089_s20 = sphi %s9214_s20, %s10052_s20   ;;  %s9085_s30 = sphi %s9212_s30, %s10051_s30   ;;  %s9081_s0 = sphi %s9210_s0, %s10050_s0  }
  0x18   : > { %s484_s22 = sshll.u32 %s9095_s1, 4  ;;  %p5602_p0 = scmp.ge.s32.totalorder %s9093_s21, 1  ;;  %s9236_s22 = int_to_ptr.vmem [resolvable:$true] %s484_s22 }
  0x19   : > { %p10001_p1 = scmp.eq.s32.totalorder %s9231_s2, 0  ;;  %p472_p2 = scmp.lt.s32.totalorder %s9093_s21, 3 }
  0x1a   : > { %s9096_s24 = smov [#allocation7]   ;;  %s9097_s26 = smov [#allocation10]  }
  0x1b   : > { %p9238_p3 = pnand %p5602_p0, %p472_p2  ;;  %s508_s25 = sshll.u32 %s9096_s24, 4  ;;  %s9250_s25 = int_to_ptr.vmem [resolvable:$true] %s508_s25 }
  0x1c   : > { %s540_s27 = sshll.u32 %s9097_s26, 4  ;;  %s10019_s1 = sld [smem:[#allocation26_spill]]  ;;  %s9252_s27 = int_to_ptr.vmem [resolvable:$true] %s540_s27 }
  0x1d   : > { %s10017_s23 = scalar_select %p9238_p3, 1, 0 }
  0x1e   : > { %p8601_p4 = pneg %p9238_p3 }
  0x20   : > { %p9246_p5 = pnand %p8601_p4, %p10001_p1 }
  0x22   : > { %s8729_s19 = scalar_lea.hbm %s10019_s1, 1536  ;;  %p9262_p7 = pneg %p9246_p5 }
  0x23   : > { %p8730_p6 = scmp.ne.s32.totalorder %s10019_s1, %s8729_s19  ;;  %p8736_p10 = scmp.lt.u32.totalorder %s8729_s19, %s10019_s1 }
  0x25   : > { %p8732_p8 = pnand %p9262_p7, %p8730_p6 }
  0x27   : > { %p8733_p9 = pneg %p8732_p8 }
  0x29   : > { %p8738_p11 = pnand %p8736_p10, %p8733_p9 }
  0x2b   : > { %8741 = shalt.err (!%p8738_p11)
}
  0x2c   : > { %s8742_s16 = scalar_lea.vmem %s9236_s22, 1536  ;;  %p8750_p2 = scmp.lt.s32.totalorder %s9236_s22, %s9236_s22 }
  0x2d   : > { %p8743_p12 = scmp.ne.s32.totalorder %s9236_s22, %s8742_s16  ;;  %p8751_p4 = scmp.lt.s32.totalorder %s8742_s16, %s8742_s16 }
  0x2f   : > { %p8745_p13 = pnand %p8743_p12, %p9262_p7  ;;  %p8752_p6 = por %p8751_p4, %p8750_p2 }
  0x31   : > { %p8746_p0 = pneg %p8745_p13 }
  0x33   : > { %p8753_p8 = pnand %p8752_p6, %p8746_p0 }
  0x35   : > { %8756 = shalt.err (!%p8753_p8)
}
  0x36   : > { %s9098_s18 = smov 128   ;;  %s9099_s14 = smov 8  }
  0x37   : > { %8604 = dma.hbm_to_vmem [thread:$0]  (!%p9246_p5), %s10019_s1, 1536, %s9236_s22, [#allocation5], %s9098_s18, %s9098_s18, %s9099_s14  }
  0x38   : > { %s10021_s10 = sld [smem:[#allocation28_spill]] }
  0x3e   : > { %s8757_s16 = scalar_lea.hbm %s10021_s10, 30720 }
  0x3f   : > { %p8758_p9 = scmp.ne.s32.totalorder %s10021_s10, %s8757_s16  ;;  %p8764_p12 = scmp.lt.u32.totalorder %s8757_s16, %s10021_s10 }
  0x41   : > { %p8760_p10 = pnand %p8758_p9, %p9262_p7 }
  0x43   : > { %p8761_p11 = pneg %p8760_p10 }
  0x45   : > { %p8766_p13 = pnand %p8764_p12, %p8761_p11 }
  0x47   : > { %8769 = shalt.err (!%p8766_p13)
}
  0x48   : > { %s8770_s22 = scalar_lea.vmem %s9250_s25, 30720  ;;  %p8778_p6 = scmp.lt.s32.totalorder %s9250_s25, %s9250_s25 }
  0x49   : > { %p8771_p0 = scmp.ne.s32.totalorder %s9250_s25, %s8770_s22  ;;  %p8779_p8 = scmp.lt.s32.totalorder %s8770_s22, %s8770_s22 }
  0x4b   : > { %p8773_p2 = pnand %p8771_p0, %p9262_p7  ;;  %p8780_p9 = por %p8779_p8, %p8778_p6 }
  0x4d   : > { %p8774_p4 = pneg %p8773_p2 }
  0x4f   : > { %p8781_p10 = pnand %p8780_p9, %p8774_p4 }
  0x51   : > { %8784 = shalt.err (!%p8781_p10)
}
  0x52   : > { %8610 = dma.hbm_to_vmem [thread:$0]  (!%p9246_p5), %s10021_s10, 30720, %s9250_s25, [#allocation8], %s9098_s18, %s9098_s18, %s9099_s14  }
  0x53   : > { %s10022_s7 = sld [smem:[#allocation31_spill]] }
  0x59   : > { %s8785_s19 = scalar_lea.hbm %s10022_s7, 7680 }
  0x5a   : > { %p8786_p11 = scmp.ne.s32.totalorder %s10022_s7, %s8785_s19  ;;  %p8792_p0 = scmp.lt.u32.totalorder %s8785_s19, %s10022_s7 }
  0x5c   : > { %p8788_p12 = pnand %p8786_p11, %p9262_p7 }
  0x5e   : > { %p8789_p13 = pneg %p8788_p12 }
  0x60   : > { %p8794_p2 = pnand %p8792_p0, %p8789_p13 }
  0x62   : > { %8797 = shalt.err (!%p8794_p2)
}
  0x63   : > { %s8798_s25 = scalar_lea.vmem %s9252_s27, 7680  ;;  %p8806_p9 = scmp.lt.s32.totalorder %s9252_s27, %s9252_s27 }
  0x64   : > { %p8799_p4 = scmp.ne.s32.totalorder %s9252_s27, %s8798_s25  ;;  %p8807_p10 = scmp.lt.s32.totalorder %s8798_s25, %s8798_s25 }
  0x66   : > { %p8801_p6 = pnand %p8799_p4, %p9262_p7  ;;  %p8808_p11 = por %p8807_p10, %p8806_p9 }
  0x68   : > { %p8802_p8 = pneg %p8801_p6 }
  0x6a   : > { %p8809_p12 = pnand %p8808_p11, %p8802_p8 }
  0x6c   : > { %8812 = shalt.err (!%p8809_p12)
}
  0x6d   : > { %8616 = dma.hbm_to_vmem [thread:$0]  (!%p9246_p5), %s10022_s7, 7680, %s9252_s27, [#allocation11], %s9098_s18, %s9098_s18, %s9099_s14  }
  0x6e   : > { %s9100_s6 = smov [#allocation13]   ;;  %s9101_s12 = smov [#allocation16]  }
  0x6f   : > { %s572_s8 = sshll.u32 %s9100_s6, 4  ;;  %s604_s19 = sshll.u32 %s9101_s12, 4  ;;  %s573_s8 = int_to_ptr.vmem [resolvable:$true] %s572_s8  ;;  %s605_s19 = int_to_ptr.vmem [resolvable:$true] %s604_s19 }
  0x70   : > { %s8813_s26 = scalar_lea.hbm %s9984_s11, 1536 }
  0x71   : > { %p8814_p13 = scmp.ne.s32.totalorder %s9984_s11, %s8813_s26  ;;  %p8820_p4 = scmp.lt.u32.totalorder %s8813_s26, %s9984_s11 }
  0x73   : > { %p8816_p0 = pnand %p8814_p13, %p9262_p7 }
  0x75   : > { %p8817_p2 = pneg %p8816_p0 }
  0x77   : > { %p8822_p6 = pnand %p8820_p4, %p8817_p2 }
  0x79   : > { %8825 = shalt.err (!%p8822_p6)
}
  0x7a   : > { %s8826_s27 = scalar_lea.vmem %s573_s8, 1536  ;;  %p8834_p11 = scmp.lt.s32.totalorder %s573_s8, %s573_s8 }
  0x7b   : > { %p8827_p8 = scmp.ne.s32.totalorder %s573_s8, %s8826_s27  ;;  %p8835_p12 = scmp.lt.s32.totalorder %s8826_s27, %s8826_s27 }
  0x7d   : > { %p8829_p9 = pnand %p8827_p8, %p9262_p7  ;;  %p8836_p1 = por %p8835_p12, %p8834_p11 }
  0x7f   : > { %p8830_p10 = pneg %p8829_p9 }
  0x81   : > { %p8837_p3 = pnand %p8836_p1, %p8830_p10 }
  0x83   : > { %8840 = shalt.err (!%p8837_p3)
}
  0x84   : > { %8622 = dma.hbm_to_vmem [thread:$0]  (!%p9246_p5), %s9984_s11, 1536, %s573_s8, [#allocation14], %s9098_s18, %s9098_s18, %s9099_s14  }
  0x85   : > { %s8841_s28 = scalar_lea.hbm %s9988_s15, 1536 }
  0x86   : > { %p8842_p1 = scmp.ne.s32.totalorder %s9988_s15, %s8841_s28  ;;  %p8848_p0 = scmp.lt.u32.totalorder %s8841_s28, %s9988_s15 }
  0x88   : > { %p8844_p3 = pnand %p8842_p1, %p9262_p7 }
  0x8a   : > { %p8845_p13 = pneg %p8844_p3 }
  0x8c   : > { %p8850_p2 = pnand %p8848_p0, %p8845_p13 }
  0x8e   : > { %8853 = shalt.err (!%p8850_p2)
}
  0x8f   : > { %s8854_s22 = scalar_lea.vmem %s605_s19, 1536  ;;  %p8862_p9 = scmp.lt.s32.totalorder %s605_s19, %s605_s19 }
  0x90   : > { %p8855_p4 = scmp.ne.s32.totalorder %s605_s19, %s8854_s22  ;;  %p8863_p10 = scmp.lt.s32.totalorder %s8854_s22, %s8854_s22 }
  0x92   : > { %p8857_p6 = pnand %p8855_p4, %p9262_p7  ;;  %p8864_p11 = por %p8863_p10, %p8862_p9 }
  0x94   : > { %p8858_p8 = pneg %p8857_p6 }
  0x96   : > { %p8865_p12 = pnand %p8864_p11, %p8858_p8 }
  0x98   : > { %8868 = shalt.err (!%p8865_p12)
}
  0x99   : > { %8628 = dma.hbm_to_vmem [thread:$0]  (!%p9246_p5), %s9988_s15, 1536, %s605_s19, [#allocation17], %s9098_s18, %s9098_s18, %s9099_s14  }
  0x9a   : > { %s9102_s1 = smov [#allocation6]   ;;  %s9103_s6 = smov [#allocation9]  }
  0x9b   : > { %s498_s4 = sshll.u32 %s9102_s1, 4  ;;  %s524_s12 = sshll.u32 %s9103_s6, 4  ;;  %s499_s4 = int_to_ptr.vmem [resolvable:$true] %s498_s4  ;;  %s525_s12 = int_to_ptr.vmem [resolvable:$true] %s524_s12 }
  0x9c   : > { %s10023_s26 = sld [smem:[#allocation27_spill]] }
  0xa2   : > { %s8869_s16 = scalar_lea.hbm %s10023_s26, 16 }
  0xa3   : > { %p8870_p1 = scmp.ne.s32.totalorder %s10023_s26, %s8869_s16  ;;  %p8876_p0 = scmp.lt.u32.totalorder %s8869_s16, %s10023_s26 }
  0xa5   : > { %p8872_p3 = pnand %p8870_p1, %p9262_p7 }
  0xa7   : > { %p8873_p13 = pneg %p8872_p3 }
  0xa9   : > { %p8878_p2 = pnand %p8876_p0, %p8873_p13 }
  0xab   : > { %8881 = shalt.err (!%p8878_p2)
}
  0xac   : > { %s8882_s19 = scalar_lea.vmem %s499_s4, 16  ;;  %s8889_s27 = scalar_lea.vmem %s499_s4, 32 }
  0xad   : > { %p8883_p4 = scmp.ne.s32.totalorder %s499_s4, %s8882_s19  ;;  %p8890_p9 = scmp.lt.s32.totalorder %s499_s4, %s499_s4 }
  0xae   : > { %p8891_p10 = scmp.lt.s32.totalorder %s8889_s27, %s8882_s19 }
  0xaf   : > { %p8885_p6 = pnand %p8883_p4, %p9262_p7 }
  0xb0   : > { %p8892_p11 = por %p8891_p10, %p8890_p9 }
  0xb1   : > { %p8886_p8 = pneg %p8885_p6 }
  0xb3   : > { %p8893_p12 = pnand %p8892_p11, %p8886_p8 }
  0xb5   : > { %8896 = shalt.err (!%p8893_p12)
}
  0xb6   : > { %8607 = dma.hbm_to_vmem [thread:$0]  (!%p9246_p5), %s10023_s26, 16, %s499_s4, [#allocation5]  }
  0xb7   : > { %s8897_s29 = scalar_lea.hbm %s9978_s5, 15360 }
  0xb8   : > { %p8898_p1 = scmp.ne.s32.totalorder %s9978_s5, %s8897_s29  ;;  %p8904_p0 = scmp.lt.u32.totalorder %s8897_s29, %s9978_s5 }
  0xba   : > { %p8900_p3 = pnand %p8898_p1, %p9262_p7 }
  0xbc   : > { %p8901_p13 = pneg %p8900_p3 }
  0xbe   : > { %p8906_p2 = pnand %p8904_p0, %p8901_p13 }
  0xc0   : > { %8909 = shalt.err (!%p8906_p2)
}
  0xc1   : > { %s8910_s19 = scalar_lea.vmem %s525_s12, 15360  ;;  %p8918_p9 = scmp.lt.s32.totalorder %s525_s12, %s525_s12 }
  0xc2   : > { %p8911_p4 = scmp.ne.s32.totalorder %s525_s12, %s8910_s19  ;;  %p8919_p10 = scmp.lt.s32.totalorder %s8910_s19, %s8910_s19 }
  0xc4   : > { %p8913_p6 = pnand %p8911_p4, %p9262_p7  ;;  %p8920_p11 = por %p8919_p10, %p8918_p9 }
  0xc6   : > { %p8914_p8 = pneg %p8913_p6 }
  0xc8   : > { %p8921_p12 = pnand %p8920_p11, %p8914_p8 }
  0xca   : > { %8924 = shalt.err (!%p8921_p12)
}
  0xcb   : > { %8613 = dma.hbm_to_vmem [thread:$0]  (!%p9246_p5), %s9978_s5, 15360, %s525_s12, [#allocation8], %s9098_s18, %s9098_s18, %s9099_s14  }
  0xcc   : > { %s9104_s1 = smov [#allocation12]   ;;  %s9105_s7 = smov [#allocation15]  }
  0xcd   : > { %s556_s6 = sshll.u32 %s9104_s1, 4  ;;  %s588_s28 = sshll.u32 %s9105_s7, 4  ;;  %s557_s6 = int_to_ptr.vmem [resolvable:$true] %s556_s6  ;;  %s589_s28 = int_to_ptr.vmem [resolvable:$true] %s588_s28 }
  0xce   : > { %s8925_s25 = scalar_lea.hbm %s9982_s9, 1536 }
  0xcf   : > { %p8926_p1 = scmp.ne.s32.totalorder %s9982_s9, %s8925_s25  ;;  %p8932_p0 = scmp.lt.u32.totalorder %s8925_s25, %s9982_s9 }
  0xd1   : > { %p8928_p3 = pnand %p8926_p1, %p9262_p7 }
  0xd3   : > { %p8929_p13 = pneg %p8928_p3 }
  0xd5   : > { %p8934_p2 = pnand %p8932_p0, %p8929_p13 }
  0xd7   : > { %8937 = shalt.err (!%p8934_p2)
}
  0xd8   : > { %s8938_s12 = scalar_lea.vmem %s557_s6, 1536  ;;  %p8946_p9 = scmp.lt.s32.totalorder %s557_s6, %s557_s6 }
  0xd9   : > { %p8939_p4 = scmp.ne.s32.totalorder %s557_s6, %s8938_s12  ;;  %p8947_p10 = scmp.lt.s32.totalorder %s8938_s12, %s8938_s12 }
  0xdb   : > { %p8941_p6 = pnand %p8939_p4, %p9262_p7  ;;  %p8948_p11 = por %p8947_p10, %p8946_p9 }
  0xdd   : > { %p8942_p8 = pneg %p8941_p6 }
  0xdf   : > { %p8949_p12 = pnand %p8948_p11, %p8942_p8 }
  0xe1   : > { %8952 = shalt.err (!%p8949_p12)
}
  0xe2   : > { %8619 = dma.hbm_to_vmem [thread:$0]  (!%p9246_p5), %s9982_s9, 1536, %s557_s6, [#allocation11], %s9098_s18, %s9098_s18, %s9099_s14  }
  0xe3   : > { %s8953_s16 = scalar_lea.hbm %s9986_s13, 1536 }
  0xe4   : > { %p8954_p1 = scmp.ne.s32.totalorder %s9986_s13, %s8953_s16  ;;  %p8960_p0 = scmp.lt.u32.totalorder %s8953_s16, %s9986_s13 }
  0xe6   : > { %p8956_p3 = pnand %p8954_p1, %p9262_p7 }
  0xe8   : > { %p8957_p13 = pneg %p8956_p3 }
  0xea   : > { %p8962_p2 = pnand %p8960_p0, %p8957_p13 }
  0xec   : > { %8965 = shalt.err (!%p8962_p2)
}
  0xed   : > { %s8966_s4 = scalar_lea.vmem %s589_s28, 1536  ;;  %p8974_p9 = scmp.lt.s32.totalorder %s589_s28, %s589_s28 }
  0xee   : > { %p8967_p4 = scmp.ne.s32.totalorder %s589_s28, %s8966_s4  ;;  %p8975_p10 = scmp.lt.s32.totalorder %s8966_s4, %s8966_s4 }
  0xf0   : > { %p8969_p6 = pnand %p8967_p4, %p9262_p7  ;;  %p8976_p11 = por %p8975_p10, %p8974_p9 }
  0xf2   : > { %p8970_p8 = pneg %p8969_p6 }
  0xf4   : > { %p8977_p12 = pnand %p8976_p11, %p8970_p8 }
  0xf6   : > { %8980 = shalt.err (!%p8977_p12)
}
  0xf7   : > { %8625 = dma.hbm_to_vmem [thread:$0]  (!%p9246_p5), %s9986_s13, 1536, %s589_s28, [#allocation14], %s9098_s18, %s9098_s18, %s9099_s14  }
  0xf8   : > { %s9106_s27 = smov [#allocation18]   ;;  %s8981_s16 = scalar_lea.hbm %s9990_s17, 1536 }
  0xf9   : > { %s620_s1 = sshll.u32 %s9106_s27, 4  ;;  %p8982_p1 = scmp.ne.s32.totalorder %s9990_s17, %s8981_s16  ;;  %s621_s1 = int_to_ptr.vmem [resolvable:$true] %s620_s1 }
  0xfa   : > { %p8988_p0 = scmp.lt.u32.totalorder %s8981_s16, %s9990_s17 }
  0xfb   : > { %p8984_p3 = pnand %p8982_p1, %p9262_p7 }
  0xfd   : > { %p8985_p13 = pneg %p8984_p3 }
  0xff   : > { %p8990_p2 = pnand %p8988_p0, %p8985_p13 }
 0x101   : > { %8993 = shalt.err (!%p8990_p2)
}
 0x102   : > { %s8994_s28 = scalar_lea.vmem %s621_s1, 1536  ;;  %p9002_p9 = scmp.lt.s32.totalorder %s621_s1, %s621_s1 }
 0x103   : > { %p8995_p4 = scmp.ne.s32.totalorder %s621_s1, %s8994_s28  ;;  %p9003_p10 = scmp.lt.s32.totalorder %s8994_s28, %s8994_s28 }
 0x105   : > { %p8997_p6 = pnand %p8995_p4, %p9262_p7  ;;  %p9004_p11 = por %p9003_p10, %p9002_p9 }
 0x107   : > { %p8998_p8 = pneg %p8997_p6 }
 0x109   : > { %p9005_p12 = pnand %p9004_p11, %p8998_p8 }
 0x10b   : > { %9008 = shalt.err (!%p9005_p12)
}
 0x10c   : > { %8631 = dma.hbm_to_vmem [thread:$0]  (!%p9246_p5), %s9990_s17, 1536, %s621_s1, [#allocation17], %s9098_s18, %s9098_s18, %s9099_s14  }
 0x10d   : > { %s9483_s3 = sadd.s32 1, %s9093_s21   ;;  %s44_s24 = sadd.s32 1, %s9089_s20 }
 0x10e   : > { %s41_s12 = ssub.s32 %s9093_s21, %s9483_s3  ;;  %p51_p7 = scmp.ne.s32.totalorder %s9089_s20, %s9085_s30 }
 0x10f   : > { %p42_p1 = scmp.eq.s32.totalorder %s41_s12, 0  ;;  %p52_p3 = scmp.eq.s32.totalorder %s9093_s21, 0 }
 0x110   : > { %p57_p13 = scmp.ne.s32.totalorder %s9085_s30, %s9081_s0  ;;  %p8646_p0 = scmp.lt.s32.totalorder %s9093_s21, 2 }
 0x111   : > { %s9495_s27 = scalar_select %p42_p1, %s9089_s20, %s44_s24  }
 0x112   : > { %p53_p2 = por %p52_p3, %p51_p7  ;;  %p10024_p4 = scmp.eq.s32.totalorder %s9231_s2, 0 }
 0x113   : > { %s637_s29 = sand.u32 1, %s9089_s20   ;;  %s5759_s1 = sshll.u32 %s9093_s21, 8 }
 0x114   : > { %p9499_p6 = por %p10024_p4, %p57_p13  ;;  %s5614_s16 = sshll.u32 %s637_s29, 4 }
 0x115   : > { %s10026_s8 = sld [smem:[#allocation25_spill]]  ;;  %s641_s0 = scalar_lea.vmem [#allocation2], %s5614_s16 }
 0x116   : > { %s648_s28 = sshll.u32 %s641_s0, 4  ;;  %p9510_p5 = pnand %p8646_p0, %p53_p2  ;;  %s9514_s28 = int_to_ptr.vmem [resolvable:$true] %s648_s28 }
 0x117   : > { %s9516_s21 = scalar_lea.sflag [#allocation3], %s637_s29 }
 0x118   : > { %p9011_p9 = pneg %p9510_p5 }
 0x11b   : > { %s9508_s19 = scalar_lea.hbm %s10026_s8, %s5759_s1  ;;  %s9014_s1 = scalar_lea.hbm %s10026_s8, 512 }
 0x11c   : > { %s9009_s6 = scalar_lea.hbm %s9508_s19, 256  ;;  %p9015_p12 = scmp.lt.u32.totalorder %s9508_s19, %s10026_s8 }
 0x11d   : > { %p9010_p8 = scmp.ne.s32.totalorder %s9508_s19, %s9009_s6  ;;  %p9016_p7 = scmp.lt.u32.totalorder %s9014_s1, %s9009_s6 }
 0x11e   : > { %p9018_p3 = scmp.lt.u32.totalorder %s9009_s6, %s9508_s19 }
 0x11f   : > { %p9012_p10 = pnand %p9011_p9, %p9010_p8  ;;  %p9017_p1 = por %p9016_p7, %p9015_p12 }
 0x121   : > { %p9013_p11 = pneg %p9012_p10  ;;  %p9019_p13 = por %p9018_p3, %p9017_p1 }
 0x123   : > { %p9020_p0 = pnand %p9019_p13, %p9013_p11 }
 0x125   : > { %9023 = shalt.err (!%p9020_p0)
}
 0x126   : > { %s9024_s29 = scalar_lea.vmem %s9514_s28, 256  ;;  %s9107_s22 = smov [#allocation2]  }
 0x127   : > { %p9025_p2 = scmp.ne.s32.totalorder %s9514_s28, %s9024_s29  ;;  %s9029_s0 = sshll.u32 %s9107_s22, 4  ;;  %s9030_s0 = int_to_ptr.vmem [resolvable:$false] %s9029_s0 }
 0x128   : > { %s9031_s24 = scalar_lea.vmem %s9030_s0, 512  ;;  %p9032_p10 = scmp.lt.s32.totalorder %s9514_s28, %s9030_s0 }
 0x129   : > { %p9027_p4 = pnand %p9025_p2, %p9011_p9  ;;  %p9033_p12 = scmp.lt.s32.totalorder %s9031_s24, %s9024_s29 }
 0x12b   : > { %p9028_p8 = pneg %p9027_p4  ;;  %p9034_p7 = por %p9033_p12, %p9032_p10 }
 0x12d   : > { %p9035_p1 = pnand %p9034_p7, %p9028_p8 }
 0x12f   : > { %9038 = shalt.err (!%p9035_p1)
}
 0x130   : > { %8635 = dma.hbm_to_vmem [thread:$0]  (!%p9510_p5), %s9508_s19, 256, %s9514_s28, %s9516_s21, %s9098_s18, %s9098_s18, %s9099_s14  }
 0x131   : > { %p10028_p9 = scmp.ne.s32.totalorder %s10017_s23, 0 }
 0x132   : > { %s662_s6 = sand.u32 (!%p10028_p9), 1, %s9085_s30  }
 0x133   : > { %660 = sbr.rel (%p10028_p9) target bundleno = 5509 (0x1585), region = 96  ;;  %s9550_s12 = sshll.u32 (!%p10028_p9), %s662_s6, 4 }
 0x134   : > { %s663_s1 = scalar_lea.sflag (!%p10028_p9), [#allocation3], %s662_s6  ;;  %s666_s16 = scalar_lea.vmem (!%p10028_p9), [#allocation2], %s9550_s12 }
 0x13a   : > { %9056 = dma.done.wait (%p9499_p6), %s663_s1, 256  }
 0x13b   : > { %9058 = vsyncadd (%p9499_p6), %s663_s1, 4294967040  ;;  %p10029_p11 = scmp.eq.s32.totalorder %s9231_s2, 0 }
 0x13d   : > { %9060 = dma.done.wait (%p10029_p11), [#allocation5], 1552   ;;  %p10030_p5 = pmov %p10029_p11 }
 0x13f   : > { %9062 = vsyncadd (%p10030_p5), [#allocation5], 4294965744  ;;  %p10031_p3 = pmov %p10030_p5 }
 0x141   : > { %9064 = dma.done.wait (%p10031_p3), [#allocation8], 46080   ;;  %p10032_p13 = pmov %p10031_p3 }
 0x142   : > { %p10033_p0 = pmov %p10031_p3 }
 0x143   : > { %9066 = vsyncadd (%p10032_p13), [#allocation8], 4294921216 }
 0x144   : > { %9068 = dma.done.wait (%p10033_p0), [#allocation11], 9216   ;;  %p10034_p2 = pmov %p10033_p0 }
 0x145   : > { %p10035_p6 = pmov %p10033_p0 }
 0x146   : > { %9070 = vsyncadd (%p10034_p2), [#allocation11], 4294958080 }
 0x147   : > { %9072 = dma.done.wait (%p10035_p6), [#allocation14], 3072   ;;  %p10036_p4 = pmov %p10033_p0 }
 0x148   : > { %p10037_p8 = pmov %p10033_p0 }
 0x149   : > { %9074 = vsyncadd (%p10036_p4), [#allocation14], 4294964224 }
 0x14a   : > { %9076 = dma.done.wait (%p10037_p8), [#allocation17], 3072   ;;  %p10038_p10 = pmov %p10033_p0 }
 0x14b   : > { %v768_v0 = vld [vmem:[#allocation4] sm:$0xff]  ;;  %v769_v1 = vld [vmem:[#allocation4 + $0x8] sm:$0xff]  ;;  %v770_v2 = vld [vmem:[#allocation4 + $0x10] sm:$0xff]  ;;  %vm787_vm0 = vcmask 785408   ;;  %v974_v56 = vlaneseq  ;;  %s10039_s14 = sld [smem:[#allocation29_spill]]  ;;  %s10040_s28 = sld [smem:[#allocation30_spill]] }
 0x14c   : > { %9078 = vsyncadd (%p10038_p10), [#allocation17], 4294964224  ;;  %v7491_v3 = vpack.c.bf16 %v769_v1, %v768_v0  ;;  %v771_v4 = vld [vmem:[#allocation4 + $0x18] sm:$0xff]  ;;  %v772_v6 = vld [vmem:[#allocation4 + $0x20] sm:$0xff]  ;;  %s10041_s25 = sld [smem:[#allocation32_spill]]  ;;  %s10042_s4 = sld [smem:[#allocation34_spill]] }
 0x14d   : > { %v7495_v5 = vpack.c.bf16 %v771_v4, %v770_v2  ;;  %v773_v7 = vld [vmem:[#allocation4 + $0x28] sm:$0xff]  ;;  %v766_v8 = vld [vmem:[%s666_s16] sm:$0xff]  ;;  %v775_v15 = vld [vmem:[#allocation4 + $0x38] sm:$0xff]  ;;  %v9583_v58 = vshrl.u32 %v974_v56, 7  ;;  %s10043_s22 = sld [smem:[#allocation33_spill]]  ;;  %vm4765_vm9 = vcmask 392192  }
 0x14e   : > { %7492 = vmatprep.subr.bf16.mxu0 %v7491_v3  ;;  %v871_v9 = vld [vmem:[#allocation7 + $0xc0] sm:$0xff]  ;;  %v7499_v10 = vpack.c.bf16 %v773_v7, %v772_v6  ;;  %6377 = vmatprep.mubr.msk.f32.mxu0 %vm787_vm0, %v766_v8  ;;  %v872_v11 = vld [vmem:[#allocation7 + $0xc8] sm:$0xff]  ;;  %v873_v12 = vld [vmem:[#allocation7 + $0xd0] sm:$0xff]  ;;  %s10046_s6 = sld [smem:[#allocation35_spill]]  ;;  %vm4853_vm11 = vcmask 130048   ;;  %s9109_s12 = smov 80  }
 0x14f   : > { %7494 = vmatpush3.bf16.msra.mxu0 %v7491_v3  ;;  %v874_v13 = vld [vmem:[#allocation7 + $0xd8] sm:$0xff]  ;;  %v774_v14 = vld [vmem:[#allocation4 + $0x30] sm:$0xff]  ;;  %v7515_v16 = vpack.c.bf16 %v872_v11, %v871_v9  ;;  %v875_v18 = vld [vmem:[#allocation7 + $0xe0] sm:$0xff]  ;;  %vm976_vm1 = vcmp.lt.s32.totalorder %v9583_v58, 2  ;;  %vm980_vm2 = vcmp.ge.s32.totalorder %v9583_v58, 2  ;;  %vm1081_vm3 = vcmp.lt.s32.totalorder %v9583_v58, 1 }
 0x150   : > { %7496 = vmatprep.subr.bf16.mxu0 %v7495_v5  ;;  %v7519_v17 = vpack.c.bf16 %v874_v13, %v873_v12  ;;  %v876_v19 = vld [vmem:[#allocation7 + $0xe8] sm:$0xff]  ;;  %v7503_v20 = vpack.c.bf16 %v775_v15, %v774_v14  ;;  %v776_v21 = vld [vmem:[#allocation4 + $0x40] sm:$0xff]  ;;  %v877_v24 = vld [vmem:[#allocation7 + $0xf0] sm:$0xff]  ;;  %vm1084_vm4 = vcmp.ge.s32.totalorder %v9583_v58, 1  ;;  %vm1186_vm5 = vcmp.lt.s32.totalorder %v9583_v58, 7  ;;  %s10047_s23 = sld [smem:[#allocation36_spill]] }
 0x151   : > { %7516 = vmatprep.subr.bf16.mxu1 %v7515_v16  ;;  %v777_v22 = vld [vmem:[#allocation4 + $0x48] sm:$0xff]  ;;  %v7523_v23 = vpack.c.bf16 %v876_v19, %v875_v18  ;;  %v878_v25 = vld [vmem:[#allocation7 + $0xf8] sm:$0xff]  ;;  %v778_v27 = vld [vmem:[#allocation4 + $0x50] sm:$0xff]  ;;  %vm2833_vm7 = vcmp.lt.s32.totalorder %v9583_v58, 4  ;;  %vm2836_vm8 = vcmp.ge.s32.totalorder %v9583_v58, 4  ;;  %p761_p12 = scmp.lt.s32.totalorder %s9231_s2, 1 }
 0x152   : > { %7518 = vmatpush3.bf16.msra.mxu1 %v7515_v16  ;;  %v7507_v26 = vpack.c.bf16 %v777_v22, %v776_v21  ;;  %v779_v28 = vld [vmem:[#allocation4 + $0x58] sm:$0xff]  ;;  %v7527_v29 = vpack.c.bf16 %v878_v25, %v877_v24  ;;  %v879_v30 = vld [vmem:[#allocation7 + $0x100] sm:$0xff]  ;;  %v880_v31 = vld [vmem:[#allocation7 + $0x108] sm:$0xff] }
 0x153   : > { %7498 = vmatpush3.bf16.msra.mxu0 %v7495_v5  ;;  %7520 = vmatprep.subr.bf16.mxu1 %v7519_v17  ;;  %v7511_v32 = vpack.c.bf16 %v779_v28, %v778_v27  ;;  %v7531_v33 = vpack.c.bf16 %v880_v31, %v879_v30  ;;  %v767_v34 = vld [vmem:[%s666_s16 + $0x8] sm:$0xff]  ;;  %v5631_v57 = vld [vmem:[#allocation6] ss:$0 sm:$0xff]  ;;  %vm9897_vm10 = vmpackc.low %vm4765_vm9, %vm4765_vm9  ;;  %s10055_s2 = smov (!%p761_p12, %s9231_s2), 1 }
 0x154   : > { %7500 = vmatprep.subr.bf16.mxu0 %v7499_v10  ;;  %v881_v35 = vld [vmem:[#allocation7 + $0x110] sm:$0xff]  ;;  %v882_v36 = vld [vmem:[#allocation7 + $0x118] sm:$0xff]  ;;  %v984_v38 = vld [vmem:[#allocation7] sm:$0xff]  ;;  %s5760_s18 = sshll.u32 %s10055_s2, 4 }
 0x155   : > { %v7535_v37 = vpack.c.bf16 %v882_v36, %v881_v35  ;;  %v985_v39 = vld [vmem:[#allocation7 + $0x8] sm:$0xff]  ;;  %v1293_v41 = vld [vmem:[#allocation9 + $0x60] sm:$0xff]  ;;  %v1295_v43 = vld [vmem:[#allocation9 + $0x70] sm:$0xff] }
 0x156   : > { %7522 = vmatpush3.bf16.msra.mxu1 %v7519_v17  ;;  %v7539_v40 = vpack.c.bf16 %v985_v39, %v984_v38  ;;  %v1294_v42 = vld [vmem:[#allocation9 + $0x68] sm:$0xff]  ;;  %v1296_v45 = vld [vmem:[#allocation9 + $0x78] sm:$0xff]  ;;  %v1297_v47 = vld [vmem:[#allocation9 + $0x80] sm:$0xff] }
 0x157   : > { %7502 = vmatpush3.bf16.msra.mxu0 %v7499_v10  ;;  %7524 = vmatprep.subr.bf16.mxu1 %v7523_v23  ;;  %v7611_v44 = vpack.c.bf16 %v1294_v42, %v1293_v41  ;;  %v7615_v46 = vpack.c.bf16 %v1296_v45, %v1295_v43  ;;  %v1298_v48 = vld [vmem:[#allocation9 + $0x88] sm:$0xff]  ;;  %v1299_v50 = vld [vmem:[#allocation9 + $0x90] sm:$0xff]  ;;  %v1300_v51 = vld [vmem:[#allocation9 + $0x98] sm:$0xff] }
 0x158   : > { %7504 = vmatprep.subr.bf16.mxu0 %v7503_v20  ;;  %v7619_v49 = vpack.c.bf16 %v1298_v48, %v1297_v47  ;;  %v7623_v52 = vpack.c.bf16 %v1300_v51, %v1299_v50  ;;  %v1301_v53 = vld [vmem:[#allocation9 + $0xa0] sm:$0xff]  ;;  %v1302_v54 = vld [vmem:[#allocation9 + $0xa8] sm:$0xff]  ;;  %v986_v60 = vld [vmem:[#allocation7 + $0x10] sm:$0xff] }
 0x159   : > { %v7627_v55 = vpack.c.bf16 %v1302_v54, %v1301_v53  ;;  %v987_v61 = vld [vmem:[#allocation7 + $0x18] sm:$0xff]  ;;  %v988_v4 = vld [vmem:[#allocation7 + $0x20] sm:$0xff]  ;;  %v989_v5 = vld [vmem:[#allocation7 + $0x28] sm:$0xff] }
 0x15a   : > { %7526 = vmatpush3.bf16.msra.mxu1 %v7523_v23  ;;  %v7543_v1 = vpack.c.bf16 %v987_v61, %v986_v60  ;;  %v7547_v8 = vpack.c.bf16 %v989_v5, %v988_v4  ;;  %v990_v9 = vld [vmem:[#allocation7 + $0x30] sm:$0xff]  ;;  %v991_v10 = vld [vmem:[#allocation7 + $0x38] sm:$0xff]  ;;  %v992_v12 = vld [vmem:[#allocation7 + $0x40] sm:$0xff] }
 0x15b   : > { %7506 = vmatpush3.bf16.msra.mxu0 %v7503_v20  ;;  %7528 = vmatprep.subr.bf16.mxu1 %v7527_v29  ;;  %v7551_v11 = vpack.c.bf16 %v991_v10, %v990_v9  ;;  %v993_v13 = vld [vmem:[#allocation7 + $0x48] sm:$0xff]  ;;  %v994_v15 = vld [vmem:[#allocation7 + $0x50] sm:$0xff]  ;;  %v995_v16 = vld [vmem:[#allocation7 + $0x58] sm:$0xff] }
 0x15c   : > { %7508 = vmatprep.subr.bf16.mxu0 %v7507_v26  ;;  %v7555_v14 = vpack.c.bf16 %v993_v13, %v992_v12  ;;  %v7559_v17 = vpack.c.bf16 %v995_v16, %v994_v15  ;;  %v1089_v18 = vld [vmem:[#allocation7 + $0x60] sm:$0xff]  ;;  %v1090_v19 = vld [vmem:[#allocation7 + $0x68] sm:$0xff]  ;;  %v1091_v23 = vld [vmem:[#allocation7 + $0x70] sm:$0xff] }
 0x15d   : > { %v7563_v22 = vpack.c.bf16 %v1090_v19, %v1089_v18  ;;  %v1092_v24 = vld [vmem:[#allocation7 + $0x78] sm:$0xff]  ;;  %v1093_v28 = vld [vmem:[#allocation7 + $0x80] sm:$0xff]  ;;  %v1098_v36 = vld [vmem:[#allocation7 + $0xa8] sm:$0xff] }
 0x15e   : > { %7530 = vmatpush3.bf16.msra.mxu1 %v7527_v29  ;;  %v1094_v29 = vld [vmem:[#allocation7 + $0x88] sm:$0xff]  ;;  %v1097_v35 = vld [vmem:[#allocation7 + $0xa0] sm:$0xff]  ;;  %v1099_v38 = vld [vmem:[#allocation7 + $0xb0] sm:$0xff] }
 0x15f   : > { %7510 = vmatpush3.bf16.msra.mxu0 %v7507_v26  ;;  %7532 = vmatprep.subr.bf16.mxu1 %v7531_v33  ;;  %v7567_v26 = vpack.c.bf16 %v1092_v24, %v1091_v23  ;;  %v7571_v31 = vpack.c.bf16 %v1094_v29, %v1093_v28  ;;  %v1100_v39 = vld [vmem:[#allocation7 + $0xb8] sm:$0xff]  ;;  %v1194_v41 = vld [vmem:[#allocation7 + $0x120] sm:$0xff]  ;;  %v1195_v42 = vld [vmem:[#allocation7 + $0x128] sm:$0xff] }
 0x160   : > { %7512 = vmatprep.subr.bf16.mxu0 %v7511_v32  ;;  %v7587_v43 = vpack.c.bf16 %v1195_v42, %v1194_v41  ;;  %v1197_v45 = vld [vmem:[#allocation7 + $0x138] sm:$0xff]  ;;  %v1198_v50 = vld [vmem:[#allocation7 + $0x140] sm:$0xff]  ;;  %v1199_v51 = vld [vmem:[#allocation7 + $0x148] sm:$0xff] }
 0x161   : > { %v7595_v53 = vpack.c.bf16 %v1199_v51, %v1198_v50  ;;  %v1200_v54 = vld [vmem:[#allocation7 + $0x150] sm:$0xff]  ;;  %v1401_v9 = vld [vmem:[#allocation9 + $0x8] sm:$0xff]  ;;  %v1404_v23 = vld [vmem:[#allocation9 + $0x20] sm:$0xff] }
 0x162   : > { %7534 = vmatpush3.bf16.msra.mxu1 %v7531_v33  ;;  %v1096_v33 = vld [vmem:[#allocation7 + $0x98] sm:$0xff]  ;;  %v1204_v61 = vld [vmem:[#allocation7 + $0x170] sm:$0xff]  ;;  %v1405_v24 = vld [vmem:[#allocation9 + $0x28] sm:$0xff] }
 0x163   : > { %7514 = vmatpush3.bf16.msra.mxu0 %v7511_v32  ;;  %7536 = vmatprep.subr.bf16.mxu1 %v7535_v37  ;;  %v1095_v32 = vld [vmem:[#allocation7 + $0x90] sm:$0xff]  ;;  %v7643_v28 = vpack.c.bf16 %v1405_v24, %v1404_v23  ;;  %v1500_v42 = vld [vmem:[#allocation10 + $0x18] sm:$0xff]  ;;  %v1505_v50 = vld [vmem:[#allocation10 + $0x40] sm:$0xff] }
 0x164   : > { %7612 = vmatprep.subr.bf16.mxu0 %v7611_v44  ;;  %v1303_v5 = vld [vmem:[#allocation9 + $0xb0] sm:$0xff]  ;;  %v1506_v51 = vld [vmem:[#allocation10 + $0x48] sm:$0xff] }
 0x165   : > { %v1402_v16 = vld [vmem:[#allocation9 + $0x10] sm:$0xff] }
 0x166   : > { %6378 = vmatmul.mubr.msk.f32.vlgmr.msra.gmra.mrb[0].mxu0 %vm787_vm0, %v767_v34  ;;  %7538 = vmatpush3.bf16.msra.mxu1 %v7535_v37  ;;  %v7575_v34 = vpack.c.bf16 %v1096_v33, %v1095_v32  ;;  %v7579_v37 = vpack.c.bf16 %v1098_v36, %v1097_v35  ;;  %v1406_v29 = vld [vmem:[#allocation9 + $0x30] sm:$0xff]  ;;  %v1408_v32 = vld [vmem:[#allocation9 + $0x40] sm:$0xff]  ;;  %v1409_v33 = vld [vmem:[#allocation9 + $0x48] sm:$0xff] }
 0x167   : > { %7540 = vmatprep.subr.bf16.mxu1 %v7539_v40  ;;  %7614 = vmatpush3.bf16.msra.mxu0 %v7611_v44  ;;  %v1196_v44 = vld [vmem:[#allocation7 + $0x130] sm:$0xff]  ;;  %v1411_v36 = vld [vmem:[#allocation9 + $0x58] sm:$0xff] }
 0x168   : > { %7616 = vmatprep.subr.bf16.mxu0 %v7615_v46  ;;  %v7591_v48 = vpack.c.bf16 %v1197_v45, %v1196_v44  ;;  %v1410_v35 = vld [vmem:[#allocation9 + $0x50] sm:$0xff]  ;;  %v1501_v44 = vld [vmem:[#allocation10 + $0x20] sm:$0xff]  ;;  %v1502_v45 = vld [vmem:[#allocation10 + $0x28] sm:$0xff] }
 0x169   : > { %v1499_v41 = vld [vmem:[#allocation10 + $0x10] sm:$0xff] }
 0x16a   : > { %v2016_v24 = vld [vmem:[#allocation9 + $0x150] sm:$0xff] }
 0x16b   : > { %7618 = vmatpush3.bf16.msra.mxu0 %v7615_v46 }
 0x16c   : > { %7620 = vmatprep.subr.bf16.mxu0 %v7619_v49 }
 0x16f   : > { %7622 = vmatpush3.bf16.msra.mxu0 %v7619_v49 }
 0x170   : > { %7624 = vmatprep.subr.bf16.mxu0 %v7623_v52 }
 0x173   : > { %7626 = vmatpush3.bf16.msra.mxu0 %v7623_v52 }
 0x174   : > { %7628 = vmatprep.subr.bf16.mxu0 %v7627_v55 }
 0x177   : > { %7630 = vmatpush3.bf16.msra.mxu0 %v7627_v55  ;;  %v1201_v55 = vld [vmem:[#allocation7 + $0x158] sm:$0xff] }
 0x178   : > { %v7599_v56 = vpack.c.bf16 %v1201_v55, %v1200_v54  ;;  %v1508_v54 = vld [vmem:[#allocation10 + $0x58] sm:$0xff] }
 0x239   : > { %v6379_v59 = vpop.f32.mrb[0].mxu0 }
 0x23a   : > { %v9585_v62 = vadd.f32 %v6379_v59, %v5631_v57  ;;  %v860_v63 = vpop.f32.mrb[1].mxu0  ;;  %v1203_v59 = vld [vmem:[#allocation7 + $0x168] sm:$0xff] }
 0x23b   : > { %v9587_v0 = vadd.f32 %v5631_v57, %v860_v63  ;;  %v1202_v57 = vld [vmem:[#allocation7 + $0x160] sm:$0xff]  ;;  %v1205_v63 = vld [vmem:[#allocation7 + $0x178] sm:$0xff] }
 0x23c   : > { %v973_v2 = vrot.slane %v9585_v62, 6  ;;  %v1080_v21 = vrot.slane %v9585_v62, 7  ;;  %v1185_v47 = vrot.slane %v9585_v62, 1  ;;  %v7603_v60 = vpack.c.bf16 %v1203_v59, %v1202_v57  ;;  %v1600_v59 = vld [vmem:[#allocation7 + $0x250] sm:$0xff] }
 0x23d   : > { %6404 = vmatprep.mubr.msk.f32.mxu1 %vm787_vm0, %v9587_v0  ;;  %v972_v3 = vrot.slane %v9587_v0, 6  ;;  %v1079_v20 = vrot.slane %v9587_v0, 7  ;;  %v1184_v46 = vrot.slane %v9587_v0, 1 }
 0x23e   : > { %6405 = vmatmul.mubr.msk.f32.vlgmr.msra.gmra.mrb[0].mxu1 %vm787_vm0, %v9585_v62 }
 0x23f   : > { %7542 = vmatpush3.bf16.msra.mxu1 %v7539_v40  ;;  %v978_v6 = vsel %vm976_vm1, %v973_v2, %v972_v3  ;;  %v1083_v25 = vsel %vm1081_vm3, %v1080_v21, %v1079_v20  ;;  %v977_v27 = vsel %vm976_vm1, %v972_v3, %v973_v2  ;;  %v7583_v40 = vpack.c.bf16 %v1100_v39, %v1099_v38  ;;  %v1497_v38 = vld [vmem:[#allocation10] sm:$0xff]  ;;  %v1498_v39 = vld [vmem:[#allocation10 + $0x8] sm:$0xff] }
 0x240   : > { %7544 = vmatprep.subr.bf16.mxu1 %v7543_v1  ;;  %v982_v7 = vsel %vm980_vm2, %v978_v6, 0.0  ;;  %v1086_v30 = vsel %vm1084_vm4, %v1083_v25, 0.0  ;;  %v1082_v49 = vsel %vm1081_vm3, %v1079_v20, %v1080_v21  ;;  %v1187_v52 = vsel %vm1186_vm5, %v1184_v46, %v1185_v47  ;;  %v1304_v6 = vld [vmem:[#allocation9 + $0xb8] sm:$0xff] }
 0x241   : > { %6431 = vmatprep.mubr.msk.f32.mxu1 %vm787_vm0, %v982_v7  ;;  %v9624_v2 = vadd.s32 8, %v9583_v58  ;;  %v1188_v3 = vsel %vm1186_vm5, %v1185_v47, %v1184_v46  ;;  %v7631_v7 = vpack.c.bf16 %v1304_v6, %v1303_v5  ;;  %v7667_v46 = vpack.c.bf16 %v1502_v45, %v1501_v44  ;;  %v1503_v47 = vld [vmem:[#allocation10 + $0x30] sm:$0xff]  ;;  %v1605_v5 = vld [vmem:[#allocation7 + $0x278] sm:$0xff]  ;;  %v5713_v58 = vld [vmem:[%s10039_s14 + $0x4] ss:$0 sm:$0xff] }
 0x243   : > { %7546 = vmatpush3.bf16.msra.mxu1 %v7543_v1  ;;  %v7607_v1 = vpack.c.bf16 %v1205_v63, %v1204_v61  ;;  %vm1190_vm6 = vcmp.lt.s32.totalorder %v9624_v2, 15  ;;  %7632 = vmatprep.subr.bf16.mxu0 %v7631_v7  ;;  %v1602_v63 = vld [vmem:[#allocation7 + $0x260] sm:$0xff] }
 0x244   : > { %7548 = vmatprep.subr.bf16.mxu1 %v7547_v8  ;;  %v1192_v4 = vsel %vm1190_vm6, %v1188_v3, 0.0  ;;  %7634 = vmatpush3.bf16.msra.mxu0 %v7631_v7  ;;  %v1606_v7 = vld [vmem:[#allocation7 + $0x280] sm:$0xff] }
 0x247   : > { %7550 = vmatpush3.bf16.msra.mxu1 %v7547_v8  ;;  %v1400_v8 = vld [vmem:[#allocation9] sm:$0xff] }
 0x248   : > { %7552 = vmatprep.subr.bf16.mxu1 %v7551_v11  ;;  %v7635_v10 = vpack.c.bf16 %v1401_v9, %v1400_v8  ;;  %v1607_v8 = vld [vmem:[#allocation7 + $0x288] sm:$0xff]  ;;  %v1608_v9 = vld [vmem:[#allocation7 + $0x290] sm:$0xff] }
 0x24a   : > { %7636 = vmatprep.subr.bf16.mxu0 %v7635_v10 }
 0x24b   : > { %7554 = vmatpush3.bf16.msra.mxu1 %v7551_v11  ;;  %v5636_v11 = vld [vmem:[%s10039_s14] ss:$0 sm:$0xff] }
 0x24c   : > { %7556 = vmatprep.subr.bf16.mxu1 %v7555_v14 }
 0x24f   : > { %7558 = vmatpush3.bf16.msra.mxu1 %v7555_v14 }
 0x250   : > { %7560 = vmatprep.subr.bf16.mxu1 %v7559_v17 }
 0x253   : > { %7562 = vmatpush3.bf16.msra.mxu1 %v7559_v17  ;;  %v1403_v17 = vld [vmem:[#allocation9 + $0x18] sm:$0xff] }
 0x254   : > { %7564 = vmatprep.subr.bf16.mxu1 %v7563_v22  ;;  %v7639_v21 = vpack.c.bf16 %v1403_v17, %v1402_v16  ;;  %v2011_v16 = vld [vmem:[#allocation9 + $0x128] sm:$0xff]  ;;  %v2012_v17 = vld [vmem:[#allocation9 + $0x130] sm:$0xff] }
 0x256   : > { %6432 = vmatmul.mubr.msk.f32.vlgmr.msra.gmra.mrb[0].mxu1 %vm787_vm0, %v977_v27 }
 0x257   : > { %7566 = vmatpush3.bf16.msra.mxu1 %v7563_v22  ;;  %6458 = vmatprep.mubr.msk.f32.mxu1 %vm787_vm0, %v1086_v30  ;;  %v1407_v30 = vld [vmem:[#allocation9 + $0x38] sm:$0xff] }
 0x258   : > { %7568 = vmatprep.subr.bf16.mxu1 %v7567_v26 }
 0x25b   : > { %7570 = vmatpush3.bf16.msra.mxu1 %v7567_v26 }
 0x25c   : > { %7572 = vmatprep.subr.bf16.mxu1 %v7571_v31 }
 0x25f   : > { %7574 = vmatpush3.bf16.msra.mxu1 %v7571_v31  ;;  %v7647_v31 = vpack.c.bf16 %v1407_v30, %v1406_v29 }
 0x260   : > { %7576 = vmatprep.subr.bf16.mxu1 %v7575_v34 }
 0x263   : > { %7578 = vmatpush3.bf16.msra.mxu1 %v7575_v34  ;;  %v7651_v34 = vpack.c.bf16 %v1409_v33, %v1408_v32  ;;  %v5645_v32 = vld [vmem:[%s10040_s28] ss:$0 sm:$0xff] }
 0x264   : > { %7580 = vmatprep.subr.bf16.mxu1 %v7579_v37 }
 0x267   : > { %7582 = vmatpush3.bf16.msra.mxu1 %v7579_v37  ;;  %v7655_v37 = vpack.c.bf16 %v1411_v36, %v1410_v35 }
 0x268   : > { %7584 = vmatprep.subr.bf16.mxu1 %v7583_v40 }
 0x26b   : > { %7586 = vmatpush3.bf16.msra.mxu1 %v7583_v40  ;;  %v7659_v40 = vpack.c.bf16 %v1498_v39, %v1497_v38  ;;  %v5650_v38 = vld [vmem:[%s10041_s25] ss:$0 sm:$0xff] }
 0x26c   : > { %7588 = vmatprep.subr.bf16.mxu1 %v7587_v43 }
 0x26e   : > { %6459 = vmatmul.mubr.msk.f32.vlgmr.msra.gmra.mrb[0].mxu1 %vm787_vm0, %v1082_v49 }
 0x26f   : > { %7590 = vmatpush3.bf16.msra.mxu1 %v7587_v43  ;;  %6485 = vmatprep.mubr.msk.f32.mxu1 %vm787_vm0, %v1187_v52  ;;  %v7663_v43 = vpack.c.bf16 %v1500_v42, %v1499_v41  ;;  %v7675_v52 = vpack.c.bf16 %v1506_v51, %v1505_v50  ;;  %v1708_v42 = vld [vmem:[#allocation7 + $0x190] sm:$0xff]  ;;  %v1711_v50 = vld [vmem:[#allocation7 + $0x1a8] sm:$0xff] }
 0x270   : > { %7592 = vmatprep.subr.bf16.mxu1 %v7591_v48 }
 0x273   : > { %7594 = vmatpush3.bf16.msra.mxu1 %v7591_v48  ;;  %v1504_v48 = vld [vmem:[#allocation10 + $0x38] sm:$0xff] }
 0x274   : > { %7596 = vmatprep.subr.bf16.mxu1 %v7595_v53  ;;  %v7671_v49 = vpack.c.bf16 %v1504_v48, %v1503_v47 }
 0x277   : > { %7598 = vmatpush3.bf16.msra.mxu1 %v7595_v53  ;;  %v1507_v53 = vld [vmem:[#allocation10 + $0x50] sm:$0xff] }
 0x278   : > { %7600 = vmatprep.subr.bf16.mxu1 %v7599_v56  ;;  %v7679_v55 = vpack.c.bf16 %v1508_v54, %v1507_v53  ;;  %v1712_v54 = vld [vmem:[#allocation7 + $0x1b0] sm:$0xff] }
 0x27b   : > { %7602 = vmatpush3.bf16.msra.mxu1 %v7599_v56  ;;  %v1599_v56 = vld [vmem:[#allocation7 + $0x248] sm:$0xff] }
 0x27c   : > { %7604 = vmatprep.subr.bf16.mxu1 %v7603_v60 }
 0x27f   : > { %7606 = vmatpush3.bf16.msra.mxu1 %v7603_v60  ;;  %v1601_v60 = vld [vmem:[#allocation7 + $0x258] sm:$0xff] }
 0x280   : > { %7608 = vmatprep.subr.bf16.mxu1 %v7607_v1  ;;  %v7687_v61 = vpack.c.bf16 %v1601_v60, %v1600_v59  ;;  %v1716_v60 = vld [vmem:[#allocation7 + $0x1d0] sm:$0xff] }
 0x283   : > { %7610 = vmatpush3.bf16.msra.mxu1 %v7607_v1  ;;  %v1603_v1 = vld [vmem:[#allocation7 + $0x268] sm:$0xff] }
 0x284   : > { %v7691_v3 = vpack.c.bf16 %v1603_v1, %v1602_v63  ;;  %v1808_v1 = vld [vmem:[#allocation7 + $0x1e0] sm:$0xff] }
 0x286   : > { %6486 = vmatmul.mubr.msk.f32.vlgmr.msra.gmra.mrb[0].mxu1 %vm787_vm0, %v1192_v4  ;;  %v1604_v4 = vld [vmem:[#allocation7 + $0x270] sm:$0xff] }
 0x287   : > { %v7695_v6 = vpack.c.bf16 %v1605_v5, %v1604_v4 }
 0x359   : > { %v6487_v12 = vpop.f32.mrb[0].mxu1 }
 0x35a   : > { %v8495_v13 = vadd.f32 %v6487_v12, %v5636_v11  ;;  %v1278_v14 = vpop.f32.mrb[1].mxu1  ;;  %v1706_v12 = vld [vmem:[#allocation7 + $0x180] sm:$0xff] }
 0x35b   : > { %v8496_v15 = vadd.f32 %v5636_v11, %v1278_v14 }
 0x35c   : > { %v1290_v18 = vmax.f32 %v8495_v13, 0.0  ;;  %v1707_v13 = vld [vmem:[#allocation7 + $0x188] sm:$0xff] }
 0x35d   : > { %v1289_v19 = vmax.f32 %v8496_v15, 0.0  ;;  %v7707_v14 = vpack.c.bf16 %v1707_v13, %v1706_v12  ;;  %v2010_v15 = vld [vmem:[#allocation9 + $0x120] sm:$0xff]  ;;  %v1813_v12 = vld [vmem:[#allocation7 + $0x208] sm:$0xff] }
 0x35e   : > { %v1395_v20 = vrot.slane %v1290_v18, 7 }
 0x35f   : > { %v1394_v22 = vrot.slane %v1289_v19, 7  ;;  %6512 = vmatprep.mubr.msk.f32.mxu0 %vm787_vm0, %v1289_v19  ;;  %v2013_v19 = vld [vmem:[#allocation9 + $0x138] sm:$0xff] }
 0x360   : > { %6513 = vmatmul.mubr.msk.f32.vlgmr.msra.gmra.mrb[2].mxu0 %vm787_vm0, %v1290_v18  ;;  %v7779_v18 = vpack.c.bf16 %v2011_v16, %v2010_v15  ;;  %v1814_v15 = vld [vmem:[#allocation7 + $0x210] sm:$0xff]  ;;  %v1815_v16 = vld [vmem:[#allocation7 + $0x218] sm:$0xff] }
 0x361   : > { %7638 = vmatpush3.bf16.msra.mxu0 %v7635_v10  ;;  %v1397_v25 = vsel %vm1081_vm3, %v1395_v20, %v1394_v22  ;;  %v1396_v26 = vsel %vm1081_vm3, %v1394_v22, %v1395_v20  ;;  %v1609_v10 = vld [vmem:[#allocation7 + $0x298] sm:$0xff]  ;;  %v7783_v20 = vpack.c.bf16 %v2013_v19, %v2012_v17  ;;  %v2015_v22 = vld [vmem:[#allocation9 + $0x148] sm:$0xff]  ;;  %v7743_v17 = vpack.c.bf16 %v1815_v16, %v1814_v15  ;;  %v2126_v15 = vld [vmem:[#allocation9 + $0x100] sm:$0xff] }
 0x362   : > { %7640 = vmatprep.subr.bf16.mxu0 %v7639_v21  ;;  %v1398_v27 = vsel %vm1084_vm4, %v1397_v25, 0.0  ;;  %v7703_v11 = vpack.c.bf16 %v1609_v10, %v1608_v9  ;;  %7780 = vmatprep.subr.bf16.mxu1 %v7779_v18  ;;  %v2017_v25 = vld [vmem:[#allocation9 + $0x158] sm:$0xff]  ;;  %v1817_v19 = vld [vmem:[#allocation7 + $0x228] sm:$0xff] }
 0x363   : > { %6539 = vmatprep.mubr.msk.f32.mxu0 %vm787_vm0, %v1398_v27  ;;  %7782 = vmatpush3.bf16.msra.mxu1 %v7779_v18  ;;  %v2018_v27 = vld [vmem:[#allocation9 + $0x160] sm:$0xff]  ;;  %v2127_v16 = vld [vmem:[#allocation9 + $0x108] sm:$0xff] }
 0x364   : > { %7784 = vmatprep.subr.bf16.mxu1 %v7783_v20  ;;  %v1816_v18 = vld [vmem:[#allocation7 + $0x220] sm:$0xff] }
 0x365   : > { %7642 = vmatpush3.bf16.msra.mxu0 %v7639_v21  ;;  %v2014_v21 = vld [vmem:[#allocation9 + $0x140] sm:$0xff] }
 0x366   : > { %7644 = vmatprep.subr.bf16.mxu0 %v7643_v28  ;;  %v7787_v23 = vpack.c.bf16 %v2015_v22, %v2014_v21  ;;  %v1818_v21 = vld [vmem:[#allocation7 + $0x230] sm:$0xff]  ;;  %v1819_v22 = vld [vmem:[#allocation7 + $0x238] sm:$0xff] }
 0x367   : > { %7786 = vmatpush3.bf16.msra.mxu1 %v7783_v20  ;;  %v7747_v20 = vpack.c.bf16 %v1817_v19, %v1816_v18  ;;  %v2128_v18 = vld [vmem:[#allocation9 + $0x110] sm:$0xff]  ;;  %v2129_v19 = vld [vmem:[#allocation9 + $0x118] sm:$0xff] }
 0x368   : > { %7788 = vmatprep.subr.bf16.mxu1 %v7787_v23 }
 0x369   : > { %7646 = vmatpush3.bf16.msra.mxu0 %v7643_v28  ;;  %v2019_v28 = vld [vmem:[#allocation9 + $0x168] sm:$0xff] }
 0x36a   : > { %7648 = vmatprep.subr.bf16.mxu0 %v7647_v31  ;;  %v7795_v29 = vpack.c.bf16 %v2019_v28, %v2018_v27  ;;  %v1912_v27 = vld [vmem:[#allocation7 + $0x2b0] sm:$0xff]  ;;  %v1913_v28 = vld [vmem:[#allocation7 + $0x2b8] sm:$0xff] }
 0x36b   : > { %7790 = vmatpush3.bf16.msra.mxu1 %v7787_v23  ;;  %v7751_v23 = vpack.c.bf16 %v1819_v22, %v1818_v21  ;;  %v2216_v21 = vld [vmem:[#allocation10 + $0x60] sm:$0xff]  ;;  %v2217_v22 = vld [vmem:[#allocation10 + $0x68] sm:$0xff] }
 0x36d   : > { %7650 = vmatpush3.bf16.msra.mxu0 %v7647_v31 }
 0x36e   : > { %7652 = vmatprep.subr.bf16.mxu0 %v7651_v34 }
 0x371   : > { %7654 = vmatpush3.bf16.msra.mxu0 %v7651_v34 }
 0x372   : > { %7656 = vmatprep.subr.bf16.mxu0 %v7655_v37 }
 0x375   : > { %7658 = vmatpush3.bf16.msra.mxu0 %v7655_v37 }
 0x376   : > { %7660 = vmatprep.subr.bf16.mxu0 %v7659_v40 }
 0x378   : > { %6540 = vmatmul.mubr.msk.f32.vlgmr.msra.gmra.mrb[2].mxu0 %vm787_vm0, %v1396_v26  ;;  %v7791_v26 = vpack.c.bf16 %v2017_v25, %v2016_v24  ;;  %v1910_v24 = vld [vmem:[#allocation7 + $0x2a0] sm:$0xff]  ;;  %v1911_v25 = vld [vmem:[#allocation7 + $0x2a8] sm:$0xff] }
 0x379   : > { %7662 = vmatpush3.bf16.msra.mxu0 %v7659_v40  ;;  %6566 = vmatprep.mubr.msk.f32.mxu0 %vm787_vm0, %v9587_v0  ;;  %v1598_v0 = vld [vmem:[#allocation7 + $0x240] sm:$0xff] }
 0x37a   : > { %7664 = vmatprep.subr.bf16.mxu0 %v7663_v43  ;;  %v7683_v57 = vpack.c.bf16 %v1599_v56, %v1598_v0  ;;  %7792 = vmatprep.subr.bf16.mxu1 %v7791_v26  ;;  %v1714_v56 = vld [vmem:[#allocation7 + $0x1c0] sm:$0xff] }
 0x37b   : > { %7794 = vmatpush3.bf16.msra.mxu1 %v7791_v26  ;;  %v7755_v26 = vpack.c.bf16 %v1911_v25, %v1910_v24  ;;  %v2218_v24 = vld [vmem:[#allocation10 + $0x70] sm:$0xff]  ;;  %v2219_v25 = vld [vmem:[#allocation10 + $0x78] sm:$0xff] }
 0x37c   : > { %7796 = vmatprep.subr.bf16.mxu1 %v7795_v29 }
 0x37d   : > { %7666 = vmatpush3.bf16.msra.mxu0 %v7663_v43  ;;  %v1709_v43 = vld [vmem:[#allocation7 + $0x198] sm:$0xff] }
 0x37e   : > { %7668 = vmatprep.subr.bf16.mxu0 %v7667_v46 }
 0x37f   : > { %7798 = vmatpush3.bf16.msra.mxu1 %v7795_v29 }
 0x381   : > { %7670 = vmatpush3.bf16.msra.mxu0 %v7667_v46  ;;  %v7711_v46 = vpack.c.bf16 %v1709_v43, %v1708_v42  ;;  %v1920_v43 = vld [vmem:[#allocation7 + $0x2f0] sm:$0xff] }
 0x382   : > { %7672 = vmatprep.subr.bf16.mxu0 %v7671_v49 }
 0x385   : > { %7674 = vmatpush3.bf16.msra.mxu0 %v7671_v49  ;;  %v1710_v49 = vld [vmem:[#allocation7 + $0x1a0] sm:$0xff] }
 0x386   : > { %7676 = vmatprep.subr.bf16.mxu0 %v7675_v52  ;;  %v7715_v53 = vpack.c.bf16 %v1711_v50, %v1710_v49  ;;  %v2020_v50 = vld [vmem:[#allocation9 + $0x170] sm:$0xff] }
 0x389   : > { %7678 = vmatpush3.bf16.msra.mxu0 %v7675_v52 }
 0x38a   : > { %7680 = vmatprep.subr.bf16.mxu0 %v7679_v55 }
 0x38d   : > { %7682 = vmatpush3.bf16.msra.mxu0 %v7679_v55  ;;  %v1713_v55 = vld [vmem:[#allocation7 + $0x1b8] sm:$0xff] }
 0x38e   : > { %7684 = vmatprep.subr.bf16.mxu0 %v7683_v57  ;;  %v7719_v0 = vpack.c.bf16 %v1713_v55, %v1712_v54  ;;  %v2119_v54 = vld [vmem:[#allocation9 + $0xc8] sm:$0xff] }
 0x390   : > { %6567 = vmatmul.mubr.msk.f32.vlgmr.msra.gmra.mrb[4].mxu0 %vm787_vm0, %v9585_v62  ;;  %v7699_v62 = vpack.c.bf16 %v1607_v8, %v1606_v7  ;;  %v1810_v7 = vld [vmem:[#allocation7 + $0x1f0] sm:$0xff]  ;;  %v1811_v8 = vld [vmem:[#allocation7 + $0x1f8] sm:$0xff] }
 0x391   : > { %7686 = vmatpush3.bf16.msra.mxu0 %v7683_v57  ;;  %v1715_v57 = vld [vmem:[#allocation7 + $0x1c8] sm:$0xff]  ;;  %v7735_v9 = vpack.c.bf16 %v1811_v8, %v1810_v7  ;;  %v2122_v7 = vld [vmem:[#allocation9 + $0xe0] sm:$0xff] }
 0x392   : > { %7688 = vmatprep.subr.bf16.mxu0 %v7687_v61  ;;  %v7723_v59 = vpack.c.bf16 %v1715_v57, %v1714_v56  ;;  %v2123_v8 = vld [vmem:[#allocation9 + $0xe8] sm:$0xff] }
 0x395   : > { %7690 = vmatpush3.bf16.msra.mxu0 %v7687_v61  ;;  %v1717_v61 = vld [vmem:[#allocation7 + $0x1d8] sm:$0xff] }
 0x396   : > { %7692 = vmatprep.subr.bf16.mxu0 %v7691_v3  ;;  %v7727_v63 = vpack.c.bf16 %v1717_v61, %v1716_v60  ;;  %v2120_v61 = vld [vmem:[#allocation9 + $0xd0] sm:$0xff] }
 0x399   : > { %7694 = vmatpush3.bf16.msra.mxu0 %v7691_v3  ;;  %v1809_v3 = vld [vmem:[#allocation7 + $0x1e8] sm:$0xff] }
 0x39a   : > { %7696 = vmatprep.subr.bf16.mxu0 %v7695_v6 }
 0x39d   : > { %7698 = vmatpush3.bf16.msra.mxu0 %v7695_v6  ;;  %v7731_v6 = vpack.c.bf16 %v1809_v3, %v1808_v1 }
 0x39e   : > { %7700 = vmatprep.subr.bf16.mxu0 %v7699_v62 }
 0x3a1   : > { %7702 = vmatpush3.bf16.msra.mxu0 %v7699_v62 }
 0x3a2   : > { %7704 = vmatprep.subr.bf16.mxu0 %v7703_v11 }
 0x3a5   : > { %7706 = vmatpush3.bf16.msra.mxu0 %v7703_v11  ;;  %v1812_v11 = vld [vmem:[#allocation7 + $0x200] sm:$0xff] }
 0x3a6   : > { %7708 = vmatprep.subr.bf16.mxu0 %v7707_v14 }
 0x44b   : > { %v6541_v30 = vpop.f32.mrb[2].mxu0 }
 0x44c   : > { %v1484_v31 = vpop.f32.mrb[3].mxu0  ;;  %v8497_v33 = vadd.f32 %v6541_v30, %v5645_v32 }
 0x44d   : > { %v8498_v34 = vadd.f32 %v5645_v32, %v1484_v31  ;;  %v7759_v31 = vpack.c.bf16 %v1913_v28, %v1912_v27  ;;  %v2220_v27 = vld [vmem:[#allocation10 + $0x80] sm:$0xff]  ;;  %v2221_v28 = vld [vmem:[#allocation10 + $0x88] sm:$0xff] }
 0x44e   : > { %v1496_v35 = vmax.f32 %v8497_v33, 0.0  ;;  %v1914_v33 = vld [vmem:[#allocation7 + $0x2c0] sm:$0xff] }
 0x44f   : > { %v1495_v36 = vmax.f32 %v8498_v34, 0.0  ;;  %v1915_v34 = vld [vmem:[#allocation7 + $0x2c8] sm:$0xff] }
 0x463   : > { %v6568_v37 = vpop.f32.mrb[4].mxu0 }
 0x464   : > { %v1585_v39 = vadd.f32 %v6568_v37, %v1496_v35  ;;  %v1575_v40 = vpop.f32.mrb[5].mxu0  ;;  %v1916_v37 = vld [vmem:[#allocation7 + $0x2d0] sm:$0xff] }
 0x465   : > { %v1584_v41 = vadd.f32 %v1575_v40, %v1495_v36  ;;  %v7763_v36 = vpack.c.bf16 %v1915_v34, %v1914_v33  ;;  %v1918_v40 = vld [vmem:[#allocation7 + $0x2e0] sm:$0xff]  ;;  %v2225_v34 = vld [vmem:[#allocation10 + $0xa8] sm:$0xff] }
 0x466   : > { %v9655_v44 = vadd.f32 %v5650_v38, %v1585_v39  ;;  %v2224_v33 = vld [vmem:[#allocation10 + $0xa0] sm:$0xff] }
 0x467   : > { %v9657_v45 = vadd.f32 %v5650_v38, %v1584_v41  ;;  %v1917_v38 = vld [vmem:[#allocation7 + $0x2d8] sm:$0xff]  ;;  %v1919_v41 = vld [vmem:[#allocation7 + $0x2e8] sm:$0xff] }
 0x468   : > { %v1700_v47 = vrot.slane %v9655_v44, 6  ;;  %v1802_v5 = vrot.slane %v9655_v44, 7  ;;  %v1904_v30 = vrot.slane %v9655_v44, 1  ;;  %v7767_v39 = vpack.c.bf16 %v1917_v38, %v1916_v37  ;;  %v2227_v37 = vld [vmem:[#allocation10 + $0xb8] sm:$0xff] }
 0x469   : > { %6593 = vmatprep.mubr.msk.f32.mxu0 %vm787_vm0, %v9657_v45  ;;  %v1699_v48 = vrot.slane %v9657_v45, 6  ;;  %v1801_v4 = vrot.slane %v9657_v45, 7  ;;  %v1903_v29 = vrot.slane %v9657_v45, 1  ;;  %v7771_v42 = vpack.c.bf16 %v1919_v41, %v1918_v40  ;;  %v2320_v41 = vld [vmem:[#allocation7 + $0x3d0] sm:$0xff] }
 0x46a   : > { %6594 = vmatmul.mubr.msk.f32.vlgmr.msra.gmra.mrb[6].mxu0 %vm787_vm0, %v9655_v44 }
 0x46b   : > { %7710 = vmatpush3.bf16.msra.mxu0 %v7707_v14  ;;  %v1702_v51 = vsel %vm976_vm1, %v1700_v47, %v1699_v48  ;;  %v1804_v62 = vsel %vm1081_vm3, %v1802_v5, %v1801_v4  ;;  %v1701_v10 = vsel %vm976_vm1, %v1699_v48, %v1700_v47  ;;  %v7739_v14 = vpack.c.bf16 %v1813_v12, %v1812_v11  ;;  %v2124_v12 = vld [vmem:[#allocation9 + $0xf0] sm:$0xff] }
 0x46c   : > { %7712 = vmatprep.subr.bf16.mxu0 %v7711_v46  ;;  %v1703_v52 = vsel %vm980_vm2, %v1702_v51, 0.0  ;;  %v1805_v13 = vsel %vm1084_vm4, %v1804_v62, 0.0  ;;  %v1803_v32 = vsel %vm1081_vm3, %v1801_v4, %v1802_v5  ;;  %v1905_v35 = vsel %vm1186_vm5, %v1903_v29, %v1904_v30  ;;  %v2021_v51 = vld [vmem:[#allocation9 + $0x178] sm:$0xff] }
 0x46d   : > { %6620 = vmatprep.mubr.msk.f32.mxu0 %vm787_vm0, %v1703_v52  ;;  %v1906_v48 = vsel %vm1186_vm5, %v1904_v30, %v1903_v29  ;;  %v7799_v52 = vpack.c.bf16 %v2021_v51, %v2020_v50  ;;  %v7811_v11 = vpack.c.bf16 %v2123_v8, %v2122_v7  ;;  %v7835_v29 = vpack.c.bf16 %v2221_v28, %v2220_v27  ;;  %v2222_v30 = vld [vmem:[#allocation10 + $0x90] sm:$0xff]  ;;  %v2325_v50 = vld [vmem:[#allocation7 + $0x3f8] sm:$0xff] }
 0x46e   : > { %v1908_v49 = vsel %vm1190_vm6, %v1906_v48, 0.0  ;;  %v2736_v8 = vld [vmem:[#allocation9 + $0x210] sm:$0xff] }
 0x46f   : > { %7714 = vmatpush3.bf16.msra.mxu0 %v7711_v46  ;;  %v1921_v46 = vld [vmem:[#allocation7 + $0x2f8] sm:$0xff]  ;;  %7800 = vmatprep.subr.bf16.mxu1 %v7799_v52 }
 0x470   : > { %7716 = vmatprep.subr.bf16.mxu0 %v7715_v53  ;;  %v7775_v47 = vpack.c.bf16 %v1921_v46, %v1920_v43  ;;  %7802 = vmatpush3.bf16.msra.mxu1 %v7799_v52  ;;  %v2322_v46 = vld [vmem:[#allocation7 + $0x3e0] sm:$0xff] }
 0x471   : > { %v2326_v52 = vld [vmem:[#allocation7 + $0x400] sm:$0xff] }
 0x473   : > { %7718 = vmatpush3.bf16.msra.mxu0 %v7715_v53  ;;  %v2118_v53 = vld [vmem:[#allocation9 + $0xc0] sm:$0xff] }
 0x474   : > { %7720 = vmatprep.subr.bf16.mxu0 %v7719_v0  ;;  %v7803_v55 = vpack.c.bf16 %v2119_v54, %v2118_v53  ;;  %v2327_v53 = vld [vmem:[#allocation7 + $0x408] sm:$0xff]  ;;  %v2328_v54 = vld [vmem:[#allocation7 + $0x410] sm:$0xff] }
 0x476   : > { %7804 = vmatprep.subr.bf16.mxu1 %v7803_v55 }
 0x477   : > { %7722 = vmatpush3.bf16.msra.mxu0 %v7719_v0  ;;  %v5654_v0 = vld [vmem:[%s10039_s14 + $0x1] ss:$0 sm:$0xff] }
 0x478   : > { %7724 = vmatprep.subr.bf16.mxu0 %v7723_v59 }
 0x47b   : > { %7726 = vmatpush3.bf16.msra.mxu0 %v7723_v59 }
 0x47c   : > { %7728 = vmatprep.subr.bf16.mxu0 %v7727_v63 }
 0x47f   : > { %7730 = vmatpush3.bf16.msra.mxu0 %v7727_v63  ;;  %v2121_v63 = vld [vmem:[#allocation9 + $0xd8] sm:$0xff] }
 0x480   : > { %7732 = vmatprep.subr.bf16.mxu0 %v7731_v6  ;;  %v7807_v5 = vpack.c.bf16 %v2121_v63, %v2120_v61  ;;  %v2731_v61 = vld [vmem:[#allocation9 + $0x1e8] sm:$0xff]  ;;  %v2732_v63 = vld [vmem:[#allocation9 + $0x1f0] sm:$0xff] }
 0x482   : > { %6621 = vmatmul.mubr.msk.f32.vlgmr.msra.gmra.mrb[6].mxu0 %vm787_vm0, %v1701_v10 }
 0x483   : > { %7734 = vmatpush3.bf16.msra.mxu0 %v7731_v6  ;;  %6647 = vmatprep.mubr.msk.f32.mxu0 %vm787_vm0, %v1805_v13  ;;  %v2125_v13 = vld [vmem:[#allocation9 + $0xf8] sm:$0xff] }
 0x484   : > { %7736 = vmatprep.subr.bf16.mxu0 %v7735_v9 }
 0x487   : > { %7738 = vmatpush3.bf16.msra.mxu0 %v7735_v9 }
 0x488   : > { %7740 = vmatprep.subr.bf16.mxu0 %v7739_v14 }
 0x48b   : > { %7742 = vmatpush3.bf16.msra.mxu0 %v7739_v14  ;;  %v7815_v14 = vpack.c.bf16 %v2125_v13, %v2124_v12 }
 0x48c   : > { %7744 = vmatprep.subr.bf16.mxu0 %v7743_v17 }
 0x48f   : > { %7746 = vmatpush3.bf16.msra.mxu0 %v7743_v17  ;;  %v7819_v17 = vpack.c.bf16 %v2127_v16, %v2126_v15  ;;  %v5664_v15 = vld [vmem:[%s10040_s28 + $0x1] ss:$0 sm:$0xff] }
 0x490   : > { %7748 = vmatprep.subr.bf16.mxu0 %v7747_v20 }
 0x493   : > { %7750 = vmatpush3.bf16.msra.mxu0 %v7747_v20  ;;  %v7823_v20 = vpack.c.bf16 %v2129_v19, %v2128_v18 }
 0x494   : > { %7752 = vmatprep.subr.bf16.mxu0 %v7751_v23 }
 0x497   : > { %7754 = vmatpush3.bf16.msra.mxu0 %v7751_v23  ;;  %v7827_v23 = vpack.c.bf16 %v2217_v22, %v2216_v21  ;;  %v5670_v21 = vld [vmem:[%s10041_s25 + $0x1] ss:$0 sm:$0xff] }
 0x498   : > { %7756 = vmatprep.subr.bf16.mxu0 %v7755_v26 }
 0x49a   : > { %6648 = vmatmul.mubr.msk.f32.vlgmr.msra.gmra.mrb[6].mxu0 %vm787_vm0, %v1803_v32 }
 0x49b   : > { %7758 = vmatpush3.bf16.msra.mxu0 %v7755_v26  ;;  %6674 = vmatprep.mubr.msk.f32.mxu0 %vm787_vm0, %v1905_v35  ;;  %v7831_v26 = vpack.c.bf16 %v2219_v25, %v2218_v24  ;;  %v7843_v35 = vpack.c.bf16 %v2225_v34, %v2224_v33  ;;  %v2428_v25 = vld [vmem:[#allocation7 + $0x310] sm:$0xff]  ;;  %v2431_v33 = vld [vmem:[#allocation7 + $0x328] sm:$0xff] }
 0x49c   : > { %7760 = vmatprep.subr.bf16.mxu0 %v7759_v31 }
 0x49f   : > { %7762 = vmatpush3.bf16.msra.mxu0 %v7759_v31  ;;  %v2223_v31 = vld [vmem:[#allocation10 + $0x98] sm:$0xff] }
 0x4a0   : > { %7764 = vmatprep.subr.bf16.mxu0 %v7763_v36  ;;  %v7839_v32 = vpack.c.bf16 %v2223_v31, %v2222_v30 }
 0x4a3   : > { %7766 = vmatpush3.bf16.msra.mxu0 %v7763_v36  ;;  %v2226_v36 = vld [vmem:[#allocation10 + $0xb0] sm:$0xff] }
 0x4a4   : > { %7768 = vmatprep.subr.bf16.mxu0 %v7767_v39  ;;  %v7847_v38 = vpack.c.bf16 %v2227_v37, %v2226_v36  ;;  %v2432_v37 = vld [vmem:[#allocation7 + $0x330] sm:$0xff] }
 0x4a7   : > { %7770 = vmatpush3.bf16.msra.mxu0 %v7767_v39  ;;  %v2319_v39 = vld [vmem:[#allocation7 + $0x3c8] sm:$0xff] }
 0x4a8   : > { %7772 = vmatprep.subr.bf16.mxu0 %v7771_v42 }
 0x4ab   : > { %7774 = vmatpush3.bf16.msra.mxu0 %v7771_v42  ;;  %v2321_v42 = vld [vmem:[#allocation7 + $0x3d8] sm:$0xff] }
 0x4ac   : > { %7776 = vmatprep.subr.bf16.mxu0 %v7775_v47  ;;  %v7855_v43 = vpack.c.bf16 %v2321_v42, %v2320_v41  ;;  %v2436_v42 = vld [vmem:[#allocation7 + $0x350] sm:$0xff] }
 0x4af   : > { %7778 = vmatpush3.bf16.msra.mxu0 %v7775_v47  ;;  %v2323_v47 = vld [vmem:[#allocation7 + $0x3e8] sm:$0xff] }
 0x4b0   : > { %v7859_v48 = vpack.c.bf16 %v2323_v47, %v2322_v46  ;;  %v2528_v47 = vld [vmem:[#allocation7 + $0x360] sm:$0xff] }
 0x4b2   : > { %6675 = vmatmul.mubr.msk.f32.vlgmr.msra.gmra.mrb[6].mxu0 %vm787_vm0, %v1908_v49  ;;  %v2324_v49 = vld [vmem:[#allocation7 + $0x3f0] sm:$0xff] }
 0x4b3   : > { %v7863_v51 = vpack.c.bf16 %v2325_v50, %v2324_v49 }
 0x585   : > { %v6676_v56 = vpop.f32.mrb[6].mxu0 }
 0x586   : > { %v8499_v57 = vadd.f32 %v6676_v56, %v5654_v0  ;;  %v1994_v59 = vpop.f32.mrb[7].mxu0  ;;  %v2426_v56 = vld [vmem:[#allocation7 + $0x300] sm:$0xff] }
 0x587   : > { %v8500_v60 = vadd.f32 %v5654_v0, %v1994_v59 }
 0x588   : > { %v2006_v1 = vmax.f32 %v8499_v57, 0.0  ;;  %v2427_v57 = vld [vmem:[#allocation7 + $0x308] sm:$0xff] }
 0x589   : > { %v2005_v3 = vmax.f32 %v8500_v60, 0.0  ;;  %v7875_v59 = vpack.c.bf16 %v2427_v57, %v2426_v56  ;;  %v2730_v60 = vld [vmem:[#allocation9 + $0x1e0] sm:$0xff]  ;;  %v2533_v56 = vld [vmem:[#allocation7 + $0x388] sm:$0xff] }
 0x58a   : > { %v2112_v4 = vrot.slane %v2006_v1, 6 }
 0x58b   : > { %v2111_v6 = vrot.slane %v2005_v3, 6  ;;  %6701 = vmatprep.mubr.msk.f32.mxu1 %vm787_vm0, %v2005_v3  ;;  %v2733_v3 = vld [vmem:[#allocation9 + $0x1f8] sm:$0xff] }
 0x58c   : > { %6702 = vmatmul.mubr.msk.f32.vlgmr.msra.gmra.mrb[2].mxu1 %vm787_vm0, %v2006_v1  ;;  %v7947_v1 = vpack.c.bf16 %v2731_v61, %v2730_v60  ;;  %v2534_v60 = vld [vmem:[#allocation7 + $0x390] sm:$0xff]  ;;  %v2535_v61 = vld [vmem:[#allocation7 + $0x398] sm:$0xff] }
 0x58d   : > { %7806 = vmatpush3.bf16.msra.mxu1 %v7803_v55  ;;  %v2114_v62 = vsel %vm976_vm1, %v2112_v4, %v2111_v6  ;;  %v2113_v9 = vsel %vm976_vm1, %v2111_v6, %v2112_v4  ;;  %v2329_v55 = vld [vmem:[#allocation7 + $0x418] sm:$0xff]  ;;  %v7951_v4 = vpack.c.bf16 %v2733_v3, %v2732_v63  ;;  %v2735_v6 = vld [vmem:[#allocation9 + $0x208] sm:$0xff]  ;;  %v7911_v63 = vpack.c.bf16 %v2535_v61, %v2534_v60  ;;  %v2849_v60 = vld [vmem:[#allocation9 + $0x1c0] sm:$0xff] }
 0x58e   : > { %7808 = vmatprep.subr.bf16.mxu1 %v7807_v5  ;;  %v2115_v10 = vsel %vm980_vm2, %v2114_v62, 0.0  ;;  %v7871_v0 = vpack.c.bf16 %v2329_v55, %v2328_v54  ;;  %7948 = vmatprep.subr.bf16.mxu0 %v7947_v1  ;;  %v2737_v62 = vld [vmem:[#allocation9 + $0x218] sm:$0xff]  ;;  %v2537_v3 = vld [vmem:[#allocation7 + $0x3a8] sm:$0xff] }
 0x58f   : > { %6728 = vmatprep.mubr.msk.f32.mxu1 %vm787_vm0, %v2115_v10  ;;  %7950 = vmatpush3.bf16.msra.mxu0 %v7947_v1  ;;  %v2738_v10 = vld [vmem:[#allocation9 + $0x220] sm:$0xff]  ;;  %v2850_v61 = vld [vmem:[#allocation9 + $0x1c8] sm:$0xff] }
 0x590   : > { %7952 = vmatprep.subr.bf16.mxu0 %v7951_v4  ;;  %v2536_v1 = vld [vmem:[#allocation7 + $0x3a0] sm:$0xff] }
 0x591   : > { %7810 = vmatpush3.bf16.msra.mxu1 %v7807_v5  ;;  %v2734_v5 = vld [vmem:[#allocation9 + $0x200] sm:$0xff] }
 0x592   : > { %7812 = vmatprep.subr.bf16.mxu1 %v7811_v11  ;;  %v7955_v7 = vpack.c.bf16 %v2735_v6, %v2734_v5  ;;  %v2538_v5 = vld [vmem:[#allocation7 + $0x3b0] sm:$0xff]  ;;  %v2539_v6 = vld [vmem:[#allocation7 + $0x3b8] sm:$0xff] }
 0x593   : > { %7954 = vmatpush3.bf16.msra.mxu0 %v7951_v4  ;;  %v7915_v4 = vpack.c.bf16 %v2537_v3, %v2536_v1  ;;  %v2851_v1 = vld [vmem:[#allocation9 + $0x1d0] sm:$0xff]  ;;  %v2852_v3 = vld [vmem:[#allocation9 + $0x1d8] sm:$0xff] }
 0x594   : > { %7956 = vmatprep.subr.bf16.mxu0 %v7955_v7 }
 0x595   : > { %7814 = vmatpush3.bf16.msra.mxu1 %v7811_v11  ;;  %v2739_v11 = vld [vmem:[#allocation9 + $0x228] sm:$0xff] }
 0x596   : > { %7816 = vmatprep.subr.bf16.mxu1 %v7815_v14  ;;  %v7963_v12 = vpack.c.bf16 %v2739_v11, %v2738_v10  ;;  %v2632_v10 = vld [vmem:[#allocation7 + $0x430] sm:$0xff]  ;;  %v2633_v11 = vld [vmem:[#allocation7 + $0x438] sm:$0xff] }
 0x597   : > { %7958 = vmatpush3.bf16.msra.mxu0 %v7955_v7  ;;  %v7919_v7 = vpack.c.bf16 %v2539_v6, %v2538_v5  ;;  %v2939_v5 = vld [vmem:[#allocation10 + $0xc0] sm:$0xff]  ;;  %v2940_v6 = vld [vmem:[#allocation10 + $0xc8] sm:$0xff] }
 0x599   : > { %7818 = vmatpush3.bf16.msra.mxu1 %v7815_v14 }
 0x59a   : > { %7820 = vmatprep.subr.bf16.mxu1 %v7819_v17 }
 0x59d   : > { %7822 = vmatpush3.bf16.msra.mxu1 %v7819_v17 }
 0x59e   : > { %7824 = vmatprep.subr.bf16.mxu1 %v7823_v20 }
 0x5a1   : > { %7826 = vmatpush3.bf16.msra.mxu1 %v7823_v20 }
 0x5a2   : > { %7828 = vmatprep.subr.bf16.mxu1 %v7827_v23 }
 0x5a4   : > { %6729 = vmatmul.mubr.msk.f32.vlgmr.msra.gmra.mrb[2].mxu1 %vm787_vm0, %v2113_v9  ;;  %v7959_v9 = vpack.c.bf16 %v2737_v62, %v2736_v8  ;;  %v2630_v8 = vld [vmem:[#allocation7 + $0x420] sm:$0xff]  ;;  %v2631_v62 = vld [vmem:[#allocation7 + $0x428] sm:$0xff] }
 0x5a5   : > { %7830 = vmatpush3.bf16.msra.mxu1 %v7827_v23  ;;  %6755 = vmatprep.mubr.msk.f32.mxu1 %vm787_vm0, %v9657_v45  ;;  %v2318_v45 = vld [vmem:[#allocation7 + $0x3c0] sm:$0xff] }
 0x5a6   : > { %7832 = vmatprep.subr.bf16.mxu1 %v7831_v26  ;;  %v7851_v40 = vpack.c.bf16 %v2319_v39, %v2318_v45  ;;  %7960 = vmatprep.subr.bf16.mxu0 %v7959_v9  ;;  %v2434_v39 = vld [vmem:[#allocation7 + $0x340] sm:$0xff] }
 0x5a7   : > { %7962 = vmatpush3.bf16.msra.mxu0 %v7959_v9  ;;  %v7923_v9 = vpack.c.bf16 %v2631_v62, %v2630_v8  ;;  %v2941_v8 = vld [vmem:[#allocation10 + $0xd0] sm:$0xff]  ;;  %v2942_v62 = vld [vmem:[#allocation10 + $0xd8] sm:$0xff] }
 0x5a8   : > { %7964 = vmatprep.subr.bf16.mxu0 %v7963_v12 }
 0x5a9   : > { %7834 = vmatpush3.bf16.msra.mxu1 %v7831_v26  ;;  %v2429_v26 = vld [vmem:[#allocation7 + $0x318] sm:$0xff] }
 0x5aa   : > { %7836 = vmatprep.subr.bf16.mxu1 %v7835_v29 }
 0x5ab   : > { %7966 = vmatpush3.bf16.msra.mxu0 %v7963_v12 }
 0x5ad   : > { %7838 = vmatpush3.bf16.msra.mxu1 %v7835_v29  ;;  %v7879_v29 = vpack.c.bf16 %v2429_v26, %v2428_v25  ;;  %v2640_v26 = vld [vmem:[#allocation7 + $0x470] sm:$0xff] }
 0x5ae   : > { %7840 = vmatprep.subr.bf16.mxu1 %v7839_v32 }
 0x5b1   : > { %7842 = vmatpush3.bf16.msra.mxu1 %v7839_v32  ;;  %v2430_v32 = vld [vmem:[#allocation7 + $0x320] sm:$0xff] }
 0x5b2   : > { %7844 = vmatprep.subr.bf16.mxu1 %v7843_v35  ;;  %v7883_v36 = vpack.c.bf16 %v2431_v33, %v2430_v32  ;;  %v2740_v33 = vld [vmem:[#allocation9 + $0x230] sm:$0xff] }
 0x5b5   : > { %7846 = vmatpush3.bf16.msra.mxu1 %v7843_v35 }
 0x5b6   : > { %7848 = vmatprep.subr.bf16.mxu1 %v7847_v38 }
 0x5b9   : > { %7850 = vmatpush3.bf16.msra.mxu1 %v7847_v38  ;;  %v2433_v38 = vld [vmem:[#allocation7 + $0x338] sm:$0xff] }
 0x5ba   : > { %7852 = vmatprep.subr.bf16.mxu1 %v7851_v40  ;;  %v7887_v45 = vpack.c.bf16 %v2433_v38, %v2432_v37  ;;  %v2842_v37 = vld [vmem:[#allocation9 + $0x188] sm:$0xff] }
 0x5bc   : > { %6756 = vmatmul.mubr.msk.f32.vlgmr.msra.gmra.mrb[4].mxu1 %vm787_vm0, %v9655_v44  ;;  %v7867_v44 = vpack.c.bf16 %v2327_v53, %v2326_v52  ;;  %v2530_v52 = vld [vmem:[#allocation7 + $0x370] sm:$0xff]  ;;  %v2531_v53 = vld [vmem:[#allocation7 + $0x378] sm:$0xff] }
 0x5bd   : > { %7854 = vmatpush3.bf16.msra.mxu1 %v7851_v40  ;;  %v2435_v40 = vld [vmem:[#allocation7 + $0x348] sm:$0xff]  ;;  %v7903_v54 = vpack.c.bf16 %v2531_v53, %v2530_v52  ;;  %v2845_v52 = vld [vmem:[#allocation9 + $0x1a0] sm:$0xff] }
 0x5be   : > { %7856 = vmatprep.subr.bf16.mxu1 %v7855_v43  ;;  %v7891_v41 = vpack.c.bf16 %v2435_v40, %v2434_v39  ;;  %v2846_v53 = vld [vmem:[#allocation9 + $0x1a8] sm:$0xff] }
 0x5c1   : > { %7858 = vmatpush3.bf16.msra.mxu1 %v7855_v43  ;;  %v2437_v43 = vld [vmem:[#allocation7 + $0x358] sm:$0xff] }
 0x5c2   : > { %7860 = vmatprep.subr.bf16.mxu1 %v7859_v48  ;;  %v7895_v46 = vpack.c.bf16 %v2437_v43, %v2436_v42  ;;  %v2843_v43 = vld [vmem:[#allocation9 + $0x190] sm:$0xff] }
 0x5c5   : > { %7862 = vmatpush3.bf16.msra.mxu1 %v7859_v48  ;;  %v2529_v48 = vld [vmem:[#allocation7 + $0x368] sm:$0xff] }
 0x5c6   : > { %7864 = vmatprep.subr.bf16.mxu1 %v7863_v51 }
 0x5c9   : > { %7866 = vmatpush3.bf16.msra.mxu1 %v7863_v51  ;;  %v7899_v51 = vpack.c.bf16 %v2529_v48, %v2528_v47 }
 0x5ca   : > { %7868 = vmatprep.subr.bf16.mxu1 %v7867_v44 }
 0x5cd   : > { %7870 = vmatpush3.bf16.msra.mxu1 %v7867_v44 }
 0x5ce   : > { %7872 = vmatprep.subr.bf16.mxu1 %v7871_v0 }
 0x5d1   : > { %7874 = vmatpush3.bf16.msra.mxu1 %v7871_v0  ;;  %v2532_v0 = vld [vmem:[#allocation7 + $0x380] sm:$0xff] }
 0x5d2   : > { %7876 = vmatprep.subr.bf16.mxu1 %v7875_v59 }
 0x677   : > { %v6730_v13 = vpop.f32.mrb[2].mxu1 }
 0x678   : > { %v2202_v14 = vpop.f32.mrb[3].mxu1  ;;  %v8501_v16 = vadd.f32 %v6730_v13, %v5664_v15 }
 0x679   : > { %v8502_v17 = vadd.f32 %v5664_v15, %v2202_v14  ;;  %v7927_v14 = vpack.c.bf16 %v2633_v11, %v2632_v10  ;;  %v2943_v10 = vld [vmem:[#allocation10 + $0xe0] sm:$0xff]  ;;  %v2944_v11 = vld [vmem:[#allocation10 + $0xe8] sm:$0xff] }
 0x67a   : > { %v2214_v18 = vmax.f32 %v8501_v16, 0.0  ;;  %v2634_v16 = vld [vmem:[#allocation7 + $0x440] sm:$0xff] }
 0x67b   : > { %v2213_v19 = vmax.f32 %v8502_v17, 0.0  ;;  %v2635_v17 = vld [vmem:[#allocation7 + $0x448] sm:$0xff] }
 0x68f   : > { %v6757_v20 = vpop.f32.mrb[4].mxu1 }
 0x690   : > { %v2304_v22 = vadd.f32 %v6757_v20, %v2214_v18  ;;  %v2294_v23 = vpop.f32.mrb[5].mxu1  ;;  %v2636_v20 = vld [vmem:[#allocation7 + $0x450] sm:$0xff] }
 0x691   : > { %v2303_v24 = vadd.f32 %v2294_v23, %v2213_v19  ;;  %v7931_v19 = vpack.c.bf16 %v2635_v17, %v2634_v16  ;;  %v2638_v23 = vld [vmem:[#allocation7 + $0x460] sm:$0xff]  ;;  %v2948_v17 = vld [vmem:[#allocation10 + $0x108] sm:$0xff] }
 0x692   : > { %v9716_v27 = vadd.f32 %v5670_v21, %v2304_v22  ;;  %v2947_v16 = vld [vmem:[#allocation10 + $0x100] sm:$0xff] }
 0x693   : > { %v9718_v28 = vadd.f32 %v5670_v21, %v2303_v24  ;;  %v2637_v21 = vld [vmem:[#allocation7 + $0x458] sm:$0xff]  ;;  %v2639_v24 = vld [vmem:[#allocation7 + $0x468] sm:$0xff] }
 0x694   : > { %v2420_v30 = vrot.slane %v9716_v27, 6  ;;  %v2522_v50 = vrot.slane %v9716_v27, 7  ;;  %v2624_v13 = vrot.slane %v9716_v27, 1  ;;  %v7935_v22 = vpack.c.bf16 %v2637_v21, %v2636_v20  ;;  %v2950_v20 = vld [vmem:[#allocation10 + $0x118] sm:$0xff] }
 0x695   : > { %6782 = vmatprep.mubr.msk.f32.mxu1 %vm787_vm0, %v9718_v28  ;;  %v2419_v31 = vrot.slane %v9718_v28, 6  ;;  %v2521_v49 = vrot.slane %v9718_v28, 7  ;;  %v2623_v12 = vrot.slane %v9718_v28, 1  ;;  %v7939_v25 = vpack.c.bf16 %v2639_v24, %v2638_v23  ;;  %v3043_v24 = vld [vmem:[#allocation7 + $0x550] sm:$0xff] }
 0x696   : > { %6783 = vmatmul.mubr.msk.f32.vlgmr.msra.gmra.mrb[6].mxu1 %vm787_vm0, %v9716_v27 }
 0x697   : > { %7878 = vmatpush3.bf16.msra.mxu1 %v7875_v59  ;;  %v2422_v34 = vsel %vm976_vm1, %v2420_v30, %v2419_v31  ;;  %v2524_v44 = vsel %vm1081_vm3, %v2522_v50, %v2521_v49  ;;  %v2421_v55 = vsel %vm976_vm1, %v2419_v31, %v2420_v30  ;;  %v7907_v59 = vpack.c.bf16 %v2533_v56, %v2532_v0  ;;  %v2847_v56 = vld [vmem:[#allocation9 + $0x1b0] sm:$0xff] }
 0x698   : > { %7880 = vmatprep.subr.bf16.mxu1 %v7879_v29  ;;  %v2423_v35 = vsel %vm980_vm2, %v2422_v34, 0.0  ;;  %v2525_v57 = vsel %vm1084_vm4, %v2524_v44, 0.0  ;;  %v2523_v15 = vsel %vm1081_vm3, %v2521_v49, %v2522_v50  ;;  %v2625_v18 = vsel %vm1186_vm5, %v2623_v12, %v2624_v13  ;;  %v2741_v34 = vld [vmem:[#allocation9 + $0x238] sm:$0xff] }
 0x699   : > { %6809 = vmatprep.mubr.msk.f32.mxu1 %vm787_vm0, %v2423_v35  ;;  %v2626_v31 = vsel %vm1186_vm5, %v2624_v13, %v2623_v12  ;;  %v7967_v35 = vpack.c.bf16 %v2741_v34, %v2740_v33  ;;  %v7979_v0 = vpack.c.bf16 %v2846_v53, %v2845_v52  ;;  %v8003_v12 = vpack.c.bf16 %v2944_v11, %v2943_v10  ;;  %v2945_v13 = vld [vmem:[#allocation10 + $0xf0] sm:$0xff]  ;;  %v3048_v33 = vld [vmem:[#allocation7 + $0x578] sm:$0xff] }
 0x69a   : > { %v2628_v32 = vsel %vm1190_vm6, %v2626_v31, 0.0  ;;  %v3459_v53 = vld [vmem:[#allocation9 + $0x2d0] sm:$0xff] }
 0x69b   : > { %7882 = vmatpush3.bf16.msra.mxu1 %v7879_v29  ;;  %v2641_v29 = vld [vmem:[#allocation7 + $0x478] sm:$0xff]  ;;  %7968 = vmatprep.subr.bf16.mxu0 %v7967_v35 }
 0x69c   : > { %7884 = vmatprep.subr.bf16.mxu1 %v7883_v36  ;;  %v7943_v30 = vpack.c.bf16 %v2641_v29, %v2640_v26  ;;  %7970 = vmatpush3.bf16.msra.mxu0 %v7967_v35  ;;  %v3045_v29 = vld [vmem:[#allocation7 + $0x560] sm:$0xff] }
 0x69d   : > { %v3049_v35 = vld [vmem:[#allocation7 + $0x580] sm:$0xff] }
 0x69f   : > { %7886 = vmatpush3.bf16.msra.mxu1 %v7883_v36  ;;  %v2841_v36 = vld [vmem:[#allocation9 + $0x180] sm:$0xff] }
 0x6a0   : > { %7888 = vmatprep.subr.bf16.mxu1 %v7887_v45  ;;  %v7971_v38 = vpack.c.bf16 %v2842_v37, %v2841_v36  ;;  %v3050_v36 = vld [vmem:[#allocation7 + $0x588] sm:$0xff]  ;;  %v3051_v37 = vld [vmem:[#allocation7 + $0x590] sm:$0xff] }
 0x6a2   : > { %7972 = vmatprep.subr.bf16.mxu0 %v7971_v38 }
 0x6a3   : > { %7890 = vmatpush3.bf16.msra.mxu1 %v7887_v45  ;;  %v5674_v45 = vld [vmem:[%s10039_s14 + $0x2] ss:$0 sm:$0xff] }
 0x6a4   : > { %7892 = vmatprep.subr.bf16.mxu1 %v7891_v41 }
 0x6a7   : > { %7894 = vmatpush3.bf16.msra.mxu1 %v7891_v41 }
 0x6a8   : > { %7896 = vmatprep.subr.bf16.mxu1 %v7895_v46 }
 0x6ab   : > { %7898 = vmatpush3.bf16.msra.mxu1 %v7895_v46  ;;  %v2844_v46 = vld [vmem:[#allocation9 + $0x198] sm:$0xff] }
 0x6ac   : > { %7900 = vmatprep.subr.bf16.mxu1 %v7899_v51  ;;  %v7975_v50 = vpack.c.bf16 %v2844_v46, %v2843_v43  ;;  %v3454_v43 = vld [vmem:[#allocation9 + $0x2a8] sm:$0xff]  ;;  %v3455_v46 = vld [vmem:[#allocation9 + $0x2b0] sm:$0xff] }
 0x6ae   : > { %6810 = vmatmul.mubr.msk.f32.vlgmr.msra.gmra.mrb[6].mxu1 %vm787_vm0, %v2421_v55 }
 0x6af   : > { %7902 = vmatpush3.bf16.msra.mxu1 %v7899_v51  ;;  %6836 = vmatprep.mubr.msk.f32.mxu1 %vm787_vm0, %v2525_v57  ;;  %v2848_v57 = vld [vmem:[#allocation9 + $0x1b8] sm:$0xff] }
 0x6b0   : > { %7904 = vmatprep.subr.bf16.mxu1 %v7903_v54 }
 0x6b3   : > { %7906 = vmatpush3.bf16.msra.mxu1 %v7903_v54 }
 0x6b4   : > { %7908 = vmatprep.subr.bf16.mxu1 %v7907_v59 }
 0x6b7   : > { %7910 = vmatpush3.bf16.msra.mxu1 %v7907_v59  ;;  %v7983_v59 = vpack.c.bf16 %v2848_v57, %v2847_v56 }
 0x6b8   : > { %7912 = vmatprep.subr.bf16.mxu1 %v7911_v63 }
 0x6bb   : > { %7914 = vmatpush3.bf16.msra.mxu1 %v7911_v63  ;;  %v7987_v63 = vpack.c.bf16 %v2850_v61, %v2849_v60  ;;  %v5684_v60 = vld [vmem:[%s10040_s28 + $0x2] ss:$0 sm:$0xff] }
 0x6bc   : > { %7916 = vmatprep.subr.bf16.mxu1 %v7915_v4 }
 0x6bf   : > { %7918 = vmatpush3.bf16.msra.mxu1 %v7915_v4  ;;  %v7991_v4 = vpack.c.bf16 %v2852_v3, %v2851_v1 }
 0x6c0   : > { %7920 = vmatprep.subr.bf16.mxu1 %v7919_v7 }
 0x6c3   : > { %7922 = vmatpush3.bf16.msra.mxu1 %v7919_v7  ;;  %v7995_v7 = vpack.c.bf16 %v2940_v6, %v2939_v5  ;;  %v5690_v5 = vld [vmem:[%s10041_s25 + $0x2] ss:$0 sm:$0xff] }
 0x6c4   : > { %7924 = vmatprep.subr.bf16.mxu1 %v7923_v9 }
 0x6c6   : > { %6837 = vmatmul.mubr.msk.f32.vlgmr.msra.gmra.mrb[6].mxu1 %vm787_vm0, %v2523_v15 }
 0x6c7   : > { %7926 = vmatpush3.bf16.msra.mxu1 %v7923_v9  ;;  %6863 = vmatprep.mubr.msk.f32.mxu1 %vm787_vm0, %v2625_v18  ;;  %v7999_v9 = vpack.c.bf16 %v2942_v62, %v2941_v8  ;;  %v8011_v18 = vpack.c.bf16 %v2948_v17, %v2947_v16  ;;  %v3151_v62 = vld [vmem:[#allocation7 + $0x490] sm:$0xff]  ;;  %v3154_v16 = vld [vmem:[#allocation7 + $0x4a8] sm:$0xff] }
 0x6c8   : > { %7928 = vmatprep.subr.bf16.mxu1 %v7927_v14 }
 0x6cb   : > { %7930 = vmatpush3.bf16.msra.mxu1 %v7927_v14  ;;  %v2946_v14 = vld [vmem:[#allocation10 + $0xf8] sm:$0xff] }
 0x6cc   : > { %7932 = vmatprep.subr.bf16.mxu1 %v7931_v19  ;;  %v8007_v15 = vpack.c.bf16 %v2946_v14, %v2945_v13 }
 0x6cf   : > { %7934 = vmatpush3.bf16.msra.mxu1 %v7931_v19  ;;  %v2949_v19 = vld [vmem:[#allocation10 + $0x110] sm:$0xff] }
 0x6d0   : > { %7936 = vmatprep.subr.bf16.mxu1 %v7935_v22  ;;  %v8015_v21 = vpack.c.bf16 %v2950_v20, %v2949_v19  ;;  %v3155_v20 = vld [vmem:[#allocation7 + $0x4b0] sm:$0xff] }
 0x6d3   : > { %7938 = vmatpush3.bf16.msra.mxu1 %v7935_v22  ;;  %v3042_v22 = vld [vmem:[#allocation7 + $0x548] sm:$0xff] }
 0x6d4   : > { %7940 = vmatprep.subr.bf16.mxu1 %v7939_v25 }
 0x6d7   : > { %7942 = vmatpush3.bf16.msra.mxu1 %v7939_v25  ;;  %v3044_v25 = vld [vmem:[#allocation7 + $0x558] sm:$0xff] }
 0x6d8   : > { %7944 = vmatprep.subr.bf16.mxu1 %v7943_v30  ;;  %v8023_v26 = vpack.c.bf16 %v3044_v25, %v3043_v24  ;;  %v3159_v25 = vld [vmem:[#allocation7 + $0x4d0] sm:$0xff] }
 0x6db   : > { %7946 = vmatpush3.bf16.msra.mxu1 %v7943_v30  ;;  %v3046_v30 = vld [vmem:[#allocation7 + $0x568] sm:$0xff] }
 0x6dc   : > { %v8027_v31 = vpack.c.bf16 %v3046_v30, %v3045_v29  ;;  %v3251_v30 = vld [vmem:[#allocation7 + $0x4e0] sm:$0xff] }
 0x6de   : > { %6864 = vmatmul.mubr.msk.f32.vlgmr.msra.gmra.mrb[6].mxu1 %vm787_vm0, %v2628_v32  ;;  %v3047_v32 = vld [vmem:[#allocation7 + $0x570] sm:$0xff] }
 0x6df   : > { %v8031_v34 = vpack.c.bf16 %v3048_v33, %v3047_v32 }
 0x7b1   : > { %v6865_v39 = vpop.f32.mrb[6].mxu1 }
 0x7b2   : > { %v8503_v40 = vadd.f32 %v6865_v39, %v5674_v45  ;;  %v2714_v41 = vpop.f32.mrb[7].mxu1  ;;  %v3149_v39 = vld [vmem:[#allocation7 + $0x480] sm:$0xff] }
 0x7b3   : > { %v8504_v42 = vadd.f32 %v5674_v45, %v2714_v41 }
 0x7b4   : > { %v2726_v47 = vmax.f32 %v8503_v40, 0.0  ;;  %v3150_v40 = vld [vmem:[#allocation7 + $0x488] sm:$0xff] }
 0x7b5   : > { %v2725_v48 = vmax.f32 %v8504_v42, 0.0  ;;  %v8043_v41 = vpack.c.bf16 %v3150_v40, %v3149_v39  ;;  %v3453_v42 = vld [vmem:[#allocation9 + $0x2a0] sm:$0xff]  ;;  %v3256_v39 = vld [vmem:[#allocation7 + $0x508] sm:$0xff] }
 0x7b6   : > { %v2832_v49 = vrot.slane %v2726_v47, 4 }
 0x7b7   : > { %v2831_v51 = vrot.slane %v2725_v48, 4  ;;  %6890 = vmatprep.mubr.msk.f32.mxu0 %vm787_vm0, %v2725_v48  ;;  %v3456_v48 = vld [vmem:[#allocation9 + $0x2b8] sm:$0xff] }
 0x7b8   : > { %6891 = vmatmul.mubr.msk.f32.vlgmr.msra.gmra.mrb[8].mxu0 %vm787_vm0, %v2726_v47  ;;  %v8115_v47 = vpack.c.bf16 %v3454_v43, %v3453_v42  ;;  %v3257_v42 = vld [vmem:[#allocation7 + $0x510] sm:$0xff]  ;;  %v3258_v43 = vld [vmem:[#allocation7 + $0x518] sm:$0xff] }
 0x7b9   : > { %7974 = vmatpush3.bf16.msra.mxu0 %v7971_v38  ;;  %v2835_v44 = vsel %vm2833_vm7, %v2832_v49, %v2831_v51  ;;  %v2834_v54 = vsel %vm2833_vm7, %v2831_v51, %v2832_v49  ;;  %v3052_v38 = vld [vmem:[#allocation7 + $0x598] sm:$0xff]  ;;  %v8119_v49 = vpack.c.bf16 %v3456_v48, %v3455_v46  ;;  %v3458_v51 = vld [vmem:[#allocation9 + $0x2c8] sm:$0xff]  ;;  %v8079_v46 = vpack.c.bf16 %v3258_v43, %v3257_v42 }
 0x7ba   : > { %7976 = vmatprep.subr.bf16.mxu0 %v7975_v50  ;;  %v2838_v55 = vsel %vm2836_vm8, %v2835_v44, 0.0  ;;  %v8039_v45 = vpack.c.bf16 %v3052_v38, %v3051_v37  ;;  %8116 = vmatprep.subr.bf16.mxu1 %v8115_v47  ;;  %v3460_v44 = vld [vmem:[#allocation9 + $0x2d8] sm:$0xff]  ;;  %v3260_v48 = vld [vmem:[#allocation7 + $0x528] sm:$0xff] }
 0x7bb   : > { %6917 = vmatprep.mubr.msk.f32.mxu0 %vm787_vm0, %v2838_v55  ;;  %8118 = vmatpush3.bf16.msra.mxu1 %v8115_v47  ;;  %v3461_v55 = vld [vmem:[#allocation9 + $0x2e0] sm:$0xff]  ;;  %v3570_v42 = vld [vmem:[#allocation9 + $0x298] sm:$0xff] }
 0x7bc   : > { %8120 = vmatprep.subr.bf16.mxu1 %v8119_v49  ;;  %v3259_v47 = vld [vmem:[#allocation7 + $0x520] sm:$0xff] }
 0x7bd   : > { %7978 = vmatpush3.bf16.msra.mxu0 %v7975_v50  ;;  %v3457_v50 = vld [vmem:[#allocation9 + $0x2c0] sm:$0xff] }
 0x7be   : > { %7980 = vmatprep.subr.bf16.mxu0 %v7979_v0  ;;  %v8123_v52 = vpack.c.bf16 %v3458_v51, %v3457_v50  ;;  %v3261_v50 = vld [vmem:[#allocation7 + $0x530] sm:$0xff]  ;;  %v3262_v51 = vld [vmem:[#allocation7 + $0x538] sm:$0xff] }
 0x7bf   : > { %8122 = vmatpush3.bf16.msra.mxu1 %v8119_v49  ;;  %v8083_v49 = vpack.c.bf16 %v3260_v48, %v3259_v47  ;;  %v3658_v47 = vld [vmem:[#allocation10 + $0x128] sm:$0xff] }
 0x7c0   : > { %8124 = vmatprep.subr.bf16.mxu1 %v8123_v52 }
 0x7c1   : > { %7982 = vmatpush3.bf16.msra.mxu0 %v7979_v0  ;;  %v3462_v0 = vld [vmem:[#allocation9 + $0x2e8] sm:$0xff] }
 0x7c2   : > { %7984 = vmatprep.subr.bf16.mxu0 %v7983_v59  ;;  %v8131_v56 = vpack.c.bf16 %v3462_v0, %v3461_v55  ;;  %v3355_v55 = vld [vmem:[#allocation7 + $0x5b0] sm:$0xff]  ;;  %v3356_v0 = vld [vmem:[#allocation7 + $0x5b8] sm:$0xff] }
 0x7c3   : > { %8126 = vmatpush3.bf16.msra.mxu1 %v8123_v52  ;;  %v8087_v52 = vpack.c.bf16 %v3262_v51, %v3261_v50  ;;  %v3660_v50 = vld [vmem:[#allocation10 + $0x138] sm:$0xff] }
 0x7c5   : > { %7986 = vmatpush3.bf16.msra.mxu0 %v7983_v59 }
 0x7c6   : > { %7988 = vmatprep.subr.bf16.mxu0 %v7987_v63 }
 0x7c9   : > { %7990 = vmatpush3.bf16.msra.mxu0 %v7987_v63 }
 0x7ca   : > { %7992 = vmatprep.subr.bf16.mxu0 %v7991_v4 }
 0x7cd   : > { %7994 = vmatpush3.bf16.msra.mxu0 %v7991_v4 }
 0x7ce   : > { %7996 = vmatprep.subr.bf16.mxu0 %v7995_v7 }
 0x7d0   : > { %6918 = vmatmul.mubr.msk.f32.vlgmr.msra.gmra.mrb[8].mxu0 %vm787_vm0, %v2834_v54  ;;  %v8127_v54 = vpack.c.bf16 %v3460_v44, %v3459_v53  ;;  %v3353_v53 = vld [vmem:[#allocation7 + $0x5a0] sm:$0xff]  ;;  %v3354_v44 = vld [vmem:[#allocation7 + $0x5a8] sm:$0xff] }
 0x7d1   : > { %7998 = vmatpush3.bf16.msra.mxu0 %v7995_v7  ;;  %6944 = vmatprep.mubr.msk.f32.mxu0 %vm787_vm0, %v9718_v28  ;;  %v3041_v28 = vld [vmem:[#allocation7 + $0x540] sm:$0xff] }
 0x7d2   : > { %8000 = vmatprep.subr.bf16.mxu0 %v7999_v9  ;;  %v8019_v23 = vpack.c.bf16 %v3042_v22, %v3041_v28  ;;  %8128 = vmatprep.subr.bf16.mxu1 %v8127_v54  ;;  %v3157_v22 = vld [vmem:[#allocation7 + $0x4c0] sm:$0xff] }
 0x7d3   : > { %8130 = vmatpush3.bf16.msra.mxu1 %v8127_v54  ;;  %v8091_v54 = vpack.c.bf16 %v3354_v44, %v3353_v53  ;;  %v3662_v53 = vld [vmem:[#allocation10 + $0x148] sm:$0xff] }
 0x7d4   : > { %8132 = vmatprep.subr.bf16.mxu1 %v8131_v56 }
 0x7d5   : > { %8002 = vmatpush3.bf16.msra.mxu0 %v7999_v9  ;;  %v3152_v9 = vld [vmem:[#allocation7 + $0x498] sm:$0xff] }
 0x7d6   : > { %8004 = vmatprep.subr.bf16.mxu0 %v8003_v12 }
 0x7d7   : > { %8134 = vmatpush3.bf16.msra.mxu1 %v8131_v56 }
 0x7d9   : > { %8006 = vmatpush3.bf16.msra.mxu0 %v8003_v12  ;;  %v8047_v12 = vpack.c.bf16 %v3152_v9, %v3151_v62  ;;  %v3363_v9 = vld [vmem:[#allocation7 + $0x5f0] sm:$0xff] }
 0x7da   : > { %8008 = vmatprep.subr.bf16.mxu0 %v8007_v15 }
 0x7dd   : > { %8010 = vmatpush3.bf16.msra.mxu0 %v8007_v15  ;;  %v3153_v15 = vld [vmem:[#allocation7 + $0x4a0] sm:$0xff] }
 0x7de   : > { %8012 = vmatprep.subr.bf16.mxu0 %v8011_v18  ;;  %v8051_v19 = vpack.c.bf16 %v3154_v16, %v3153_v15  ;;  %v3463_v16 = vld [vmem:[#allocation9 + $0x2f0] sm:$0xff] }
 0x7e1   : > { %8014 = vmatpush3.bf16.msra.mxu0 %v8011_v18 }
 0x7e2   : > { %8016 = vmatprep.subr.bf16.mxu0 %v8015_v21 }
 0x7e5   : > { %8018 = vmatpush3.bf16.msra.mxu0 %v8015_v21  ;;  %v3156_v21 = vld [vmem:[#allocation7 + $0x4b8] sm:$0xff] }
 0x7e6   : > { %8020 = vmatprep.subr.bf16.mxu0 %v8019_v23  ;;  %v8055_v28 = vpack.c.bf16 %v3156_v21, %v3155_v20  ;;  %v3560_v20 = vld [vmem:[#allocation9 + $0x248] sm:$0xff] }
 0x7e8   : > { %6945 = vmatmul.mubr.msk.f32.vlgmr.msra.gmra.mrb[10].mxu0 %vm787_vm0, %v9716_v27  ;;  %v8035_v27 = vpack.c.bf16 %v3050_v36, %v3049_v35  ;;  %v3253_v35 = vld [vmem:[#allocation7 + $0x4f0] sm:$0xff]  ;;  %v3254_v36 = vld [vmem:[#allocation7 + $0x4f8] sm:$0xff] }
 0x7e9   : > { %8022 = vmatpush3.bf16.msra.mxu0 %v8019_v23  ;;  %v3158_v23 = vld [vmem:[#allocation7 + $0x4c8] sm:$0xff]  ;;  %v8071_v37 = vpack.c.bf16 %v3254_v36, %v3253_v35  ;;  %v9108_v35 = vmov 0.0  }
 0x7ea   : > { %8024 = vmatprep.subr.bf16.mxu0 %v8023_v26  ;;  %v8059_v24 = vpack.c.bf16 %v3158_v23, %v3157_v22 }
 0x7ed   : > { %8026 = vmatpush3.bf16.msra.mxu0 %v8023_v26  ;;  %v3160_v26 = vld [vmem:[#allocation7 + $0x4d8] sm:$0xff] }
 0x7ee   : > { %8028 = vmatprep.subr.bf16.mxu0 %v8027_v31  ;;  %v8063_v29 = vpack.c.bf16 %v3160_v26, %v3159_v25  ;;  %v3561_v26 = vld [vmem:[#allocation9 + $0x250] sm:$0xff] }
 0x7f1   : > { %8030 = vmatpush3.bf16.msra.mxu0 %v8027_v31  ;;  %v3252_v31 = vld [vmem:[#allocation7 + $0x4e8] sm:$0xff] }
 0x7f2   : > { %8032 = vmatprep.subr.bf16.mxu0 %v8031_v34 }
 0x7f5   : > { %8034 = vmatpush3.bf16.msra.mxu0 %v8031_v34  ;;  %v8067_v34 = vpack.c.bf16 %v3252_v31, %v3251_v30 }
 0x7f6   : > { %8036 = vmatprep.subr.bf16.mxu0 %v8035_v27 }
 0x7f9   : > { %8038 = vmatpush3.bf16.msra.mxu0 %v8035_v27 }
 0x7fa   : > { %8040 = vmatprep.subr.bf16.mxu0 %v8039_v45 }
 0x7fd   : > { %8042 = vmatpush3.bf16.msra.mxu0 %v8039_v45  ;;  %v3255_v45 = vld [vmem:[#allocation7 + $0x500] sm:$0xff] }
 0x7fe   : > { %8044 = vmatprep.subr.bf16.mxu0 %v8043_v41 }
 0x8a3   : > { %v6919_v57 = vpop.f32.mrb[8].mxu0 }
 0x8a4   : > { %v2925_v59 = vpop.f32.mrb[9].mxu0  ;;  %v8505_v61 = vadd.f32 %v6919_v57, %v5684_v60 }
 0x8a5   : > { %v8506_v63 = vadd.f32 %v5684_v60, %v2925_v59  ;;  %v8095_v59 = vpack.c.bf16 %v3356_v0, %v3355_v55  ;;  %v3664_v55 = vld [vmem:[#allocation10 + $0x158] sm:$0xff] }
 0x8a6   : > { %v2937_v1 = vmax.f32 %v8505_v61, 0.0  ;;  %v3357_v61 = vld [vmem:[#allocation7 + $0x5c0] sm:$0xff] }
 0x8a7   : > { %v2936_v3 = vmax.f32 %v8506_v63, 0.0  ;;  %v3358_v63 = vld [vmem:[#allocation7 + $0x5c8] sm:$0xff] }
 0x8bb   : > { %v6946_v4 = vpop.f32.mrb[10].mxu0 }
 0x8bc   : > { %v3027_v6 = vadd.f32 %v6946_v4, %v2937_v1  ;;  %v3017_v7 = vpop.f32.mrb[11].mxu0  ;;  %v3359_v4 = vld [vmem:[#allocation7 + $0x5d0] sm:$0xff] }
 0x8bd   : > { %v3026_v8 = vadd.f32 %v3017_v7, %v2936_v3  ;;  %v8099_v3 = vpack.c.bf16 %v3358_v63, %v3357_v61  ;;  %v3361_v7 = vld [vmem:[#allocation7 + $0x5e0] sm:$0xff]  ;;  %v3668_v61 = vld [vmem:[#allocation10 + $0x178] sm:$0xff] }
 0x8be   : > { %v9773_v10 = vadd.f32 %v5690_v5, %v3027_v6 }
 0x8bf   : > { %v9775_v11 = vadd.f32 %v5690_v5, %v3026_v8  ;;  %v3360_v5 = vld [vmem:[#allocation7 + $0x5d8] sm:$0xff]  ;;  %v3362_v8 = vld [vmem:[#allocation7 + $0x5e8] sm:$0xff] }
 0x8c0   : > { %v3143_v13 = vrot.slane %v9773_v10, 6  ;;  %v3245_v33 = vrot.slane %v9773_v10, 7  ;;  %v3347_v57 = vrot.slane %v9773_v10, 1  ;;  %v8103_v6 = vpack.c.bf16 %v3360_v5, %v3359_v4  ;;  %v3761_v4 = vld [vmem:[#allocation7 + $0x6d0] sm:$0xff]  ;;  %v3762_v5 = vld [vmem:[#allocation7 + $0x6d8] sm:$0xff] }
 0x8c1   : > { %6971 = vmatprep.mubr.msk.f32.mxu0 %vm787_vm0, %v9775_v11  ;;  %v3142_v14 = vrot.slane %v9775_v11, 6  ;;  %v3244_v32 = vrot.slane %v9775_v11, 7  ;;  %v3346_v56 = vrot.slane %v9775_v11, 1  ;;  %v8107_v62 = vpack.c.bf16 %v3362_v8, %v3361_v7  ;;  %v3763_v7 = vld [vmem:[#allocation7 + $0x6e0] sm:$0xff]  ;;  %v3764_v8 = vld [vmem:[#allocation7 + $0x6e8] sm:$0xff] }
 0x8c2   : > { %6972 = vmatmul.mubr.msk.f32.vlgmr.msra.gmra.mrb[12].mxu0 %vm787_vm0, %v9773_v10 }
 0x8c3   : > { %8046 = vmatpush3.bf16.msra.mxu0 %v8043_v41  ;;  %v3145_v17 = vsel %vm976_vm1, %v3143_v13, %v3142_v14  ;;  %v3247_v27 = vsel %vm1081_vm3, %v3245_v33, %v3244_v32  ;;  %v3144_v38 = vsel %vm976_vm1, %v3142_v14, %v3143_v13  ;;  %v8075_v41 = vpack.c.bf16 %v3256_v39, %v3255_v45  ;;  %v3567_v45 = vld [vmem:[#allocation9 + $0x280] sm:$0xff]  ;;  %v3568_v39 = vld [vmem:[#allocation9 + $0x288] sm:$0xff] }
 0x8c4   : > { %8048 = vmatprep.subr.bf16.mxu0 %v8047_v12  ;;  %v3146_v18 = vsel %vm980_vm2, %v3145_v17, 0.0  ;;  %v3248_v40 = vsel %vm1084_vm4, %v3247_v27, 0.0  ;;  %v3246_v60 = vsel %vm1081_vm3, %v3244_v32, %v3245_v33  ;;  %v3348_v1 = vsel %vm1186_vm5, %v3346_v56, %v3347_v57  ;;  %v3464_v17 = vld [vmem:[#allocation9 + $0x2f8] sm:$0xff]  ;;  %v3563_v33 = vld [vmem:[#allocation9 + $0x260] sm:$0xff]  ;;  %v3565_v27 = vld [vmem:[#allocation9 + $0x270] sm:$0xff] }
 0x8c5   : > { %6998 = vmatprep.mubr.msk.f32.mxu0 %vm787_vm0, %v3146_v18  ;;  %v3349_v14 = vsel %vm1186_vm5, %v3347_v57, %v3346_v56  ;;  %v8135_v18 = vpack.c.bf16 %v3464_v17, %v3463_v16  ;;  %v3665_v56 = vld [vmem:[#allocation10 + $0x160] sm:$0xff]  ;;  %v3666_v57 = vld [vmem:[#allocation10 + $0x168] sm:$0xff]  ;;  %v3769_v16 = vld [vmem:[#allocation7 + $0x710] sm:$0xff] }
 0x8c6   : > { %v3351_v15 = vsel %vm1190_vm6, %v3349_v14, 0.0  ;;  %v3767_v14 = vld [vmem:[#allocation7 + $0x700] sm:$0xff]  ;;  %v3770_v17 = vld [vmem:[#allocation7 + $0x718] sm:$0xff] }
 0x8c7   : > { %8050 = vmatpush3.bf16.msra.mxu0 %v8047_v12  ;;  %v3364_v12 = vld [vmem:[#allocation7 + $0x5f8] sm:$0xff]  ;;  %8136 = vmatprep.subr.bf16.mxu1 %v8135_v18 }
 0x8c8   : > { %8052 = vmatprep.subr.bf16.mxu0 %v8051_v19  ;;  %v8111_v13 = vpack.c.bf16 %v3364_v12, %v3363_v9  ;;  %8138 = vmatpush3.bf16.msra.mxu1 %v8135_v18  ;;  %v3765_v9 = vld [vmem:[#allocation7 + $0x6f0] sm:$0xff]  ;;  %v3766_v12 = vld [vmem:[#allocation7 + $0x6f8] sm:$0xff]  ;;  %v8207_v18 = vpack.c.bf16 %v3770_v17, %v3769_v16 }
 0x8cb   : > { %8054 = vmatpush3.bf16.msra.mxu0 %v8051_v19  ;;  %v3559_v19 = vld [vmem:[#allocation9 + $0x240] sm:$0xff] }
 0x8cc   : > { %8056 = vmatprep.subr.bf16.mxu0 %v8055_v28  ;;  %v8139_v21 = vpack.c.bf16 %v3560_v20, %v3559_v19  ;;  %v3867_v19 = vld [vmem:[#allocation7 + $0x600] sm:$0xff]  ;;  %v3868_v20 = vld [vmem:[#allocation7 + $0x608] sm:$0xff] }
 0x8ce   : > { %8140 = vmatprep.subr.bf16.mxu1 %v8139_v21 }
 0x8cf   : > { %8058 = vmatpush3.bf16.msra.mxu0 %v8055_v28  ;;  %v5694_v28 = vld [vmem:[%s10039_s14 + $0x3] ss:$0 sm:$0xff] }
 0x8d0   : > { %8060 = vmatprep.subr.bf16.mxu0 %v8059_v24 }
 0x8d3   : > { %8062 = vmatpush3.bf16.msra.mxu0 %v8059_v24 }
 0x8d4   : > { %8064 = vmatprep.subr.bf16.mxu0 %v8063_v29 }
 0x8d7   : > { %8066 = vmatpush3.bf16.msra.mxu0 %v8063_v29  ;;  %v3562_v29 = vld [vmem:[#allocation9 + $0x258] sm:$0xff] }
 0x8d8   : > { %8068 = vmatprep.subr.bf16.mxu0 %v8067_v34  ;;  %v8143_v32 = vpack.c.bf16 %v3562_v29, %v3561_v26  ;;  %v4175_v29 = vld [vmem:[#allocation9 + $0x380] sm:$0xff] }
 0x8da   : > { %6999 = vmatmul.mubr.msk.f32.vlgmr.msra.gmra.mrb[12].mxu0 %vm787_vm0, %v3144_v38 }
 0x8db   : > { %8070 = vmatpush3.bf16.msra.mxu0 %v8067_v34  ;;  %7025 = vmatprep.mubr.msk.f32.mxu0 %vm787_vm0, %v3248_v40  ;;  %v3564_v34 = vld [vmem:[#allocation9 + $0x268] sm:$0xff]  ;;  %v8155_v40 = vpack.c.bf16 %v3568_v39, %v3567_v45  ;;  %v5704_v39 = vld [vmem:[%s10040_s28 + $0x3] ss:$0 sm:$0xff] }
 0x8dc   : > { %8072 = vmatprep.subr.bf16.mxu0 %v8071_v37  ;;  %v8147_v36 = vpack.c.bf16 %v3564_v34, %v3563_v33  ;;  %v4178_v33 = vld [vmem:[#allocation9 + $0x398] sm:$0xff] }
 0x8df   : > { %8074 = vmatpush3.bf16.msra.mxu0 %v8071_v37  ;;  %v3566_v37 = vld [vmem:[#allocation9 + $0x278] sm:$0xff] }
 0x8e0   : > { %8076 = vmatprep.subr.bf16.mxu0 %v8075_v41  ;;  %v8151_v38 = vpack.c.bf16 %v3566_v37, %v3565_v27  ;;  %v4180_v27 = vld [vmem:[#allocation9 + $0x3a8] sm:$0xff] }
 0x8e3   : > { %8078 = vmatpush3.bf16.msra.mxu0 %v8075_v41  ;;  %v3569_v41 = vld [vmem:[#allocation9 + $0x290] sm:$0xff] }
 0x8e4   : > { %8080 = vmatprep.subr.bf16.mxu0 %v8079_v46  ;;  %v8159_v43 = vpack.c.bf16 %v3570_v42, %v3569_v41 }
 0x8e7   : > { %8082 = vmatpush3.bf16.msra.mxu0 %v8079_v46  ;;  %v3657_v46 = vld [vmem:[#allocation10 + $0x120] sm:$0xff] }
 0x8e8   : > { %8084 = vmatprep.subr.bf16.mxu0 %v8083_v49  ;;  %v8163_v48 = vpack.c.bf16 %v3658_v47, %v3657_v46  ;;  %v5709_v47 = vld [vmem:[%s10041_s25 + $0x3] ss:$0 sm:$0xff] }
 0x8eb   : > { %8086 = vmatpush3.bf16.msra.mxu0 %v8083_v49  ;;  %v3659_v49 = vld [vmem:[#allocation10 + $0x130] sm:$0xff] }
 0x8ec   : > { %8088 = vmatprep.subr.bf16.mxu0 %v8087_v52  ;;  %v8167_v51 = vpack.c.bf16 %v3660_v50, %v3659_v49 }
 0x8ef   : > { %8090 = vmatpush3.bf16.msra.mxu0 %v8087_v52  ;;  %v3661_v52 = vld [vmem:[#allocation10 + $0x140] sm:$0xff] }
 0x8f0   : > { %8092 = vmatprep.subr.bf16.mxu0 %v8091_v54  ;;  %v8171_v44 = vpack.c.bf16 %v3662_v53, %v3661_v52  ;;  %v3870_v52 = vld [vmem:[#allocation7 + $0x618] sm:$0xff] }
 0x8f2   : > { %7026 = vmatmul.mubr.msk.f32.vlgmr.msra.gmra.mrb[12].mxu0 %vm787_vm0, %v3246_v60  ;;  %v3667_v60 = vld [vmem:[#allocation10 + $0x170] sm:$0xff] }
 0x8f3   : > { %8094 = vmatpush3.bf16.msra.mxu0 %v8091_v54  ;;  %7052 = vmatprep.mubr.msk.f32.mxu0 %vm787_vm0, %v3348_v1  ;;  %v3663_v54 = vld [vmem:[#allocation10 + $0x150] sm:$0xff]  ;;  %v8183_v63 = vpack.c.bf16 %v3668_v61, %v3667_v60  ;;  %v3760_v1 = vld [vmem:[#allocation7 + $0x6c8] sm:$0xff] }
 0x8f4   : > { %8096 = vmatprep.subr.bf16.mxu0 %v8095_v59  ;;  %v8175_v0 = vpack.c.bf16 %v3664_v55, %v3663_v54 }
 0x8f7   : > { %8098 = vmatpush3.bf16.msra.mxu0 %v8095_v59  ;;  %v8179_v59 = vpack.c.bf16 %v3666_v57, %v3665_v56  ;;  %v3871_v56 = vld [vmem:[#allocation7 + $0x620] sm:$0xff]  ;;  %v3872_v57 = vld [vmem:[#allocation7 + $0x628] sm:$0xff] }
 0x8f8   : > { %8100 = vmatprep.subr.bf16.mxu0 %v8099_v3  ;;  %v8219_v61 = vpack.c.bf16 %v3872_v57, %v3871_v56 }
 0x8fb   : > { %8102 = vmatpush3.bf16.msra.mxu0 %v8099_v3 }
 0x8fc   : > { %8104 = vmatprep.subr.bf16.mxu0 %v8103_v6 }
 0x8ff   : > { %8106 = vmatpush3.bf16.msra.mxu0 %v8103_v6  ;;  %v8191_v6 = vpack.c.bf16 %v3762_v5, %v3761_v4  ;;  %v3876_v4 = vld [vmem:[#allocation7 + $0x648] sm:$0xff] }
 0x900   : > { %8108 = vmatprep.subr.bf16.mxu0 %v8107_v62 }
 0x903   : > { %8110 = vmatpush3.bf16.msra.mxu0 %v8107_v62  ;;  %v8195_v62 = vpack.c.bf16 %v3764_v8, %v3763_v7  ;;  %v3878_v7 = vld [vmem:[#allocation7 + $0x658] sm:$0xff] }
 0x904   : > { %8112 = vmatprep.subr.bf16.mxu0 %v8111_v13 }
 0x907   : > { %8114 = vmatpush3.bf16.msra.mxu0 %v8111_v13  ;;  %v8199_v13 = vpack.c.bf16 %v3766_v12, %v3765_v9  ;;  %v3970_v9 = vld [vmem:[#allocation7 + $0x668] sm:$0xff] }
 0x90a   : > { %7053 = vmatmul.mubr.msk.f32.vlgmr.msra.gmra.mrb[12].mxu0 %vm787_vm0, %v3351_v15  ;;  %v3768_v15 = vld [vmem:[#allocation7 + $0x708] sm:$0xff] }
 0x9dd   : > { %v7054_v22 = vpop.f32.mrb[12].mxu0 }
 0x9de   : > { %v8507_v23 = vadd.f32 %v7054_v22, %v5694_v28  ;;  %v3437_v24 = vpop.f32.mrb[13].mxu0  ;;  %v4172_v22 = vld [vmem:[#allocation9 + $0x368] sm:$0xff] }
 0x9df   : > { %v8508_v25 = vadd.f32 %v5694_v28, %v3437_v24  ;;  %v4171_v28 = vld [vmem:[#allocation9 + $0x360] sm:$0xff] }
 0x9e0   : > { %v3449_v31 = vmax.f32 %v8507_v23, 0.0  ;;  %v4173_v23 = vld [vmem:[#allocation9 + $0x370] sm:$0xff]  ;;  %v8283_v24 = vpack.c.bf16 %v4172_v22, %v4171_v28 }
 0x9e1   : > { %v3448_v30 = vmax.f32 %v8508_v25, 0.0  ;;  %v4174_v25 = vld [vmem:[#allocation9 + $0x378] sm:$0xff]  ;;  %v3975_v22 = vld [vmem:[#allocation7 + $0x690] sm:$0xff] }
 0x9e2   : > { %v8287_v26 = vpack.c.bf16 %v4174_v25, %v4173_v23  ;;  %8284 = vmatprep.subr.bf16.mxu0 %v8283_v24  ;;  %v3976_v23 = vld [vmem:[#allocation7 + $0x698] sm:$0xff]  ;;  %v3977_v25 = vld [vmem:[#allocation7 + $0x6a0] sm:$0xff] }
 0x9e3   : > { %7079 = vmatprep.mubr.msk.f32.mxu1 %vm787_vm0, %v3448_v30  ;;  %8286 = vmatpush3.bf16.msra.mxu0 %v8283_v24  ;;  %v8247_v24 = vpack.c.bf16 %v3976_v23, %v3975_v22  ;;  %v4368_v22 = vld [vmem:[#allocation10 + $0x180] sm:$0xff]  ;;  %v4369_v23 = vld [vmem:[#allocation10 + $0x188] sm:$0xff] }
 0x9e4   : > { %7080 = vmatmul.mubr.msk.f32.vlgmr.msra.gmra.mrb[8].mxu1 %vm787_vm0, %v3449_v31  ;;  %8288 = vmatprep.subr.bf16.mxu0 %v8287_v26 }
 0x9e5   : > { %8142 = vmatpush3.bf16.msra.mxu1 %v8139_v21  ;;  %7106 = vmatprep.mubr.f32.mxu1 %v9108_v35  ;;  %v8211_v21 = vpack.c.bf16 %v3868_v20, %v3867_v19  ;;  %v3973_v19 = vld [vmem:[#allocation7 + $0x680] sm:$0xff]  ;;  %v3974_v20 = vld [vmem:[#allocation7 + $0x688] sm:$0xff] }
 0x9e6   : > { %8144 = vmatprep.subr.bf16.mxu1 %v8143_v32  ;;  %v8243_v28 = vpack.c.bf16 %v3974_v20, %v3973_v19  ;;  %v4283_v20 = vld [vmem:[#allocation9 + $0x350] sm:$0xff] }
 0x9e7   : > { %8290 = vmatpush3.bf16.msra.mxu0 %v8287_v26  ;;  %v3978_v26 = vld [vmem:[#allocation7 + $0x6a8] sm:$0xff] }
 0x9e9   : > { %8146 = vmatpush3.bf16.msra.mxu1 %v8143_v32  ;;  %v4177_v32 = vld [vmem:[#allocation9 + $0x390] sm:$0xff] }
 0x9ea   : > { %8148 = vmatprep.subr.bf16.mxu1 %v8147_v36  ;;  %v8295_v34 = vpack.c.bf16 %v4178_v33, %v4177_v32  ;;  %v4071_v33 = vld [vmem:[#allocation7 + $0x720] sm:$0xff] }
 0x9ed   : > { %8150 = vmatpush3.bf16.msra.mxu1 %v8147_v36  ;;  %v4179_v36 = vld [vmem:[#allocation9 + $0x3a0] sm:$0xff] }
 0x9ee   : > { %8152 = vmatprep.subr.bf16.mxu1 %v8151_v38  ;;  %v8299_v37 = vpack.c.bf16 %v4180_v27, %v4179_v36  ;;  %v4073_v27 = vld [vmem:[#allocation7 + $0x730] sm:$0xff] }
 0x9f1   : > { %8154 = vmatpush3.bf16.msra.mxu1 %v8151_v38 }
 0x9f2   : > { %8156 = vmatprep.subr.bf16.mxu1 %v8155_v40 }
 0x9f5   : > { %8158 = vmatpush3.bf16.msra.mxu1 %v8155_v40 }
 0x9f6   : > { %8160 = vmatprep.subr.bf16.mxu1 %v8159_v43 }
 0x9f9   : > { %8162 = vmatpush3.bf16.msra.mxu1 %v8159_v43 }
 0x9fa   : > { %8164 = vmatprep.subr.bf16.mxu1 %v8163_v48 }
 0x9fc   : > { %7107 = vmatmul.mubr.msk.f32.vlgmr.msra.gmra.mrb[8].mxu1 %vm787_vm0, %v3448_v30  ;;  %v4176_v30 = vld [vmem:[#allocation9 + $0x388] sm:$0xff] }
 0x9fd   : > { %8166 = vmatpush3.bf16.msra.mxu1 %v8163_v48  ;;  %7133 = vmatprep.mubr.msk.f32.mxu1 %vm787_vm0, %v9775_v11  ;;  %v3759_v11 = vld [vmem:[#allocation7 + $0x6c0] sm:$0xff]  ;;  %v8291_v31 = vpack.c.bf16 %v4176_v30, %v4175_v29  ;;  %v8251_v29 = vpack.c.bf16 %v3978_v26, %v3977_v25  ;;  %v3979_v30 = vld [vmem:[#allocation7 + $0x6b0] sm:$0xff]  ;;  %v4371_v26 = vld [vmem:[#allocation10 + $0x198] sm:$0xff] }
 0x9fe   : > { %8168 = vmatprep.subr.bf16.mxu1 %v8167_v51  ;;  %v8187_v3 = vpack.c.bf16 %v3760_v1, %v3759_v11  ;;  %v3874_v11 = vld [vmem:[#allocation7 + $0x638] sm:$0xff]  ;;  %v4370_v25 = vld [vmem:[#allocation10 + $0x190] sm:$0xff] }
 0x9ff   : > { %8292 = vmatprep.subr.bf16.mxu0 %v8291_v31 }
 0xa00   : > { %8294 = vmatpush3.bf16.msra.mxu0 %v8291_v31  ;;  %v3980_v31 = vld [vmem:[#allocation7 + $0x6b8] sm:$0xff] }
 0xa01   : > { %8170 = vmatpush3.bf16.msra.mxu1 %v8167_v51  ;;  %8296 = vmatprep.subr.bf16.mxu0 %v8295_v34  ;;  %v3869_v51 = vld [vmem:[#allocation7 + $0x610] sm:$0xff]  ;;  %v8255_v32 = vpack.c.bf16 %v3980_v31, %v3979_v30  ;;  %v4372_v30 = vld [vmem:[#allocation10 + $0x1a0] sm:$0xff]  ;;  %v4373_v31 = vld [vmem:[#allocation10 + $0x1a8] sm:$0xff] }
 0xa02   : > { %8172 = vmatprep.subr.bf16.mxu1 %v8171_v44  ;;  %v8215_v54 = vpack.c.bf16 %v3870_v52, %v3869_v51  ;;  %v4080_v51 = vld [vmem:[#allocation7 + $0x768] sm:$0xff] }
 0xa04   : > { %8298 = vmatpush3.bf16.msra.mxu0 %v8295_v34  ;;  %v4072_v34 = vld [vmem:[#allocation7 + $0x728] sm:$0xff] }
 0xa05   : > { %8174 = vmatpush3.bf16.msra.mxu1 %v8171_v44  ;;  %8300 = vmatprep.subr.bf16.mxu0 %v8299_v37  ;;  %v8259_v36 = vpack.c.bf16 %v4072_v34, %v4071_v33  ;;  %v4374_v33 = vld [vmem:[#allocation10 + $0x1b0] sm:$0xff]  ;;  %v4375_v34 = vld [vmem:[#allocation10 + $0x1b8] sm:$0xff] }
 0xa06   : > { %8176 = vmatprep.subr.bf16.mxu1 %v8175_v0 }
 0xa08   : > { %8302 = vmatpush3.bf16.msra.mxu0 %v8299_v37  ;;  %v4074_v37 = vld [vmem:[#allocation7 + $0x738] sm:$0xff] }
 0xa09   : > { %8178 = vmatpush3.bf16.msra.mxu1 %v8175_v0 }
 0xa0a   : > { %8180 = vmatprep.subr.bf16.mxu1 %v8179_v59 }
 0xa0d   : > { %8182 = vmatpush3.bf16.msra.mxu1 %v8179_v59 }
 0xa0e   : > { %8184 = vmatprep.subr.bf16.mxu1 %v8183_v63 }
 0xa11   : > { %8186 = vmatpush3.bf16.msra.mxu1 %v8183_v63  ;;  %v3873_v63 = vld [vmem:[#allocation7 + $0x630] sm:$0xff] }
 0xa12   : > { %8188 = vmatprep.subr.bf16.mxu1 %v8187_v3  ;;  %v8223_v1 = vpack.c.bf16 %v3874_v11, %v3873_v63  ;;  %v4273_v63 = vld [vmem:[#allocation9 + $0x300] sm:$0xff]  ;;  %v4274_v11 = vld [vmem:[#allocation9 + $0x308] sm:$0xff] }
 0xa14   : > { %7134 = vmatmul.mubr.msk.f32.vlgmr.msra.gmra.mrb[10].mxu1 %vm787_vm0, %v9773_v10  ;;  %v8203_v10 = vpack.c.bf16 %v3768_v15, %v3767_v14  ;;  %v3971_v15 = vld [vmem:[#allocation7 + $0x670] sm:$0xff] }
 0xa15   : > { %8190 = vmatpush3.bf16.msra.mxu1 %v8187_v3  ;;  %v3875_v3 = vld [vmem:[#allocation7 + $0x640] sm:$0xff] }
 0xa16   : > { %8192 = vmatprep.subr.bf16.mxu1 %v8191_v6  ;;  %v8227_v5 = vpack.c.bf16 %v3876_v4, %v3875_v3 }
 0xa19   : > { %8194 = vmatpush3.bf16.msra.mxu1 %v8191_v6  ;;  %v3877_v6 = vld [vmem:[#allocation7 + $0x650] sm:$0xff] }
 0xa1a   : > { %8196 = vmatprep.subr.bf16.mxu1 %v8195_v62  ;;  %v8231_v8 = vpack.c.bf16 %v3878_v7, %v3877_v6  ;;  %v4275_v6 = vld [vmem:[#allocation9 + $0x310] sm:$0xff]  ;;  %v4276_v7 = vld [vmem:[#allocation9 + $0x318] sm:$0xff] }
 0xa1d   : > { %8198 = vmatpush3.bf16.msra.mxu1 %v8195_v62  ;;  %v3969_v62 = vld [vmem:[#allocation7 + $0x660] sm:$0xff] }
 0xa1e   : > { %8200 = vmatprep.subr.bf16.mxu1 %v8199_v13  ;;  %v8235_v14 = vpack.c.bf16 %v3970_v9, %v3969_v62  ;;  %v8311_v9 = vpack.c.bf16 %v4276_v7, %v4275_v6  ;;  %v4477_v7 = vld [vmem:[#allocation12 + $0x50] sm:$0xff] }
 0xa21   : > { %8202 = vmatpush3.bf16.msra.mxu1 %v8199_v13 }
 0xa22   : > { %8204 = vmatprep.subr.bf16.mxu1 %v8203_v10 }
 0xa25   : > { %8206 = vmatpush3.bf16.msra.mxu1 %v8203_v10  ;;  %v3972_v10 = vld [vmem:[#allocation7 + $0x678] sm:$0xff] }
 0xa26   : > { %8208 = vmatprep.subr.bf16.mxu1 %v8207_v18  ;;  %v8239_v17 = vpack.c.bf16 %v3972_v10, %v3971_v15  ;;  %v4279_v15 = vld [vmem:[#allocation9 + $0x330] sm:$0xff]  ;;  %v4280_v10 = vld [vmem:[#allocation9 + $0x338] sm:$0xff] }
 0xa29   : > { %8210 = vmatpush3.bf16.msra.mxu1 %v8207_v18 }
 0xa2a   : > { %8212 = vmatprep.subr.bf16.mxu1 %v8211_v21 }
 0xacf   : > { %v7108_v38 = vpop.f32.mrb[8].mxu1 }
 0xad0   : > { %v3643_v45 = vpop.f32.mrb[9].mxu1  ;;  %v8509_v40 = vadd.f32 %v7108_v38, %v5704_v39 }
 0xad1   : > { %v8510_v41 = vadd.f32 %v5704_v39, %v3643_v45  ;;  %v8263_v39 = vpack.c.bf16 %v4074_v37, %v4073_v27  ;;  %v4376_v27 = vld [vmem:[#allocation10 + $0x1c0] sm:$0xff]  ;;  %v4377_v37 = vld [vmem:[#allocation10 + $0x1c8] sm:$0xff] }
 0xad2   : > { %v3655_v42 = vmax.f32 %v8509_v40, 0.0 }
 0xad3   : > { %v3654_v43 = vmax.f32 %v8510_v41, 0.0  ;;  %v4075_v41 = vld [vmem:[#allocation7 + $0x740] sm:$0xff] }
 0xae7   : > { %v7135_v46 = vpop.f32.mrb[10].mxu1 }
 0xae8   : > { %v3745_v48 = vadd.f32 %v7135_v46, %v3655_v42  ;;  %v3735_v49 = vpop.f32.mrb[11].mxu1  ;;  %v4076_v42 = vld [vmem:[#allocation7 + $0x748] sm:$0xff] }
 0xae9   : > { %v3744_v50 = vadd.f32 %v3735_v49, %v3654_v43  ;;  %v8267_v46 = vpack.c.bf16 %v4076_v42, %v4075_v41  ;;  %v4567_v42 = vld [vmem:[#allocation13] sm:$0xff] }
 0xaea   : > { %v9828_v53 = vadd.f32 %v5709_v47, %v3745_v48  ;;  %v4078_v48 = vld [vmem:[#allocation7 + $0x758] sm:$0xff] }
 0xaeb   : > { %v9830_v44 = vadd.f32 %v5709_v47, %v3744_v50  ;;  %v4077_v47 = vld [vmem:[#allocation7 + $0x750] sm:$0xff]  ;;  %v4079_v50 = vld [vmem:[#allocation7 + $0x760] sm:$0xff] }
 0xaec   : > { %v3861_v55 = vrot.slane %v9828_v53, 6  ;;  %v3963_v13 = vrot.slane %v9828_v53, 7  ;;  %v4065_v45 = vrot.slane %v9828_v53, 1  ;;  %v8271_v49 = vpack.c.bf16 %v4078_v48, %v4077_v47  ;;  %v4470_v48 = vld [vmem:[#allocation12 + $0x18] sm:$0xff] }
 0xaed   : > { %7160 = vmatprep.mubr.msk.f32.mxu1 %vm787_vm0, %v9830_v44  ;;  %v3860_v0 = vrot.slane %v9830_v44, 6  ;;  %v3962_v12 = vrot.slane %v9830_v44, 7  ;;  %v4064_v38 = vrot.slane %v9830_v44, 1  ;;  %v8275_v52 = vpack.c.bf16 %v4080_v51, %v4079_v50  ;;  %v4570_v50 = vld [vmem:[#allocation13 + $0x18] sm:$0xff] }
 0xaee   : > { %7161 = vmatmul.mubr.msk.f32.vlgmr.msra.gmra.mrb[12].mxu1 %vm787_vm0, %v9828_v53 }
 0xaef   : > { %8214 = vmatpush3.bf16.msra.mxu1 %v8211_v21  ;;  %v3863_v59 = vsel %vm976_vm1, %v3861_v55, %v3860_v0  ;;  %v3965_v16 = vsel %vm1081_vm3, %v3963_v13, %v3962_v12  ;;  %v3862_v18 = vsel %vm976_vm1, %v3860_v0, %v3861_v55  ;;  %v3964_v40 = vsel %vm1081_vm3, %v3962_v12, %v3963_v13  ;;  %v4082_v55 = vld [vmem:[#allocation7 + $0x778] sm:$0xff]  ;;  %v4277_v12 = vld [vmem:[#allocation9 + $0x320] sm:$0xff]  ;;  %v4278_v13 = vld [vmem:[#allocation9 + $0x328] sm:$0xff] }
 0xaf0   : > { %8216 = vmatprep.subr.bf16.mxu1 %v8215_v54  ;;  %v3864_v60 = vsel %vm980_vm2, %v3863_v59, 0.0  ;;  %v3966_v21 = vsel %vm1084_vm4, %v3965_v16, 0.0  ;;  %v4066_v43 = vsel %vm1186_vm5, %v4064_v38, %v4065_v45  ;;  %v4067_v56 = vsel %vm1186_vm5, %v4065_v45, %v4064_v38  ;;  %v4181_v59 = vld [vmem:[#allocation9 + $0x3b0] sm:$0xff] }
 0xaf1   : > { %7187 = vmatprep.mubr.msk.f32.mxu1 %vm787_vm0, %v3864_v60  ;;  %v4069_v57 = vsel %vm1190_vm6, %v4067_v56, 0.0  ;;  %v4182_v60 = vld [vmem:[#allocation9 + $0x3b8] sm:$0xff]  ;;  %v8319_v16 = vpack.c.bf16 %v4280_v10, %v4279_v15  ;;  %v8347_v38 = vpack.c.bf16 %v4377_v37, %v4376_v27  ;;  %v4378_v45 = vld [vmem:[#allocation10 + $0x1d0] sm:$0xff]  ;;  %v4572_v56 = vld [vmem:[#allocation13 + $0x28] sm:$0xff] }
 0xaf2   : > { %v4662_v15 = vld [vmem:[#allocation15 + $0x8] sm:$0xff]  ;;  %v4667_v37 = vld [vmem:[#allocation15 + $0x30] sm:$0xff] }
 0xaf3   : > { %8218 = vmatpush3.bf16.msra.mxu1 %v8215_v54  ;;  %v4081_v54 = vld [vmem:[#allocation7 + $0x770] sm:$0xff] }
 0xaf4   : > { %8220 = vmatprep.subr.bf16.mxu1 %v8219_v61  ;;  %v8279_v0 = vpack.c.bf16 %v4082_v55, %v4081_v54  ;;  %v4471_v54 = vld [vmem:[#allocation12 + $0x20] sm:$0xff]  ;;  %v4472_v55 = vld [vmem:[#allocation12 + $0x28] sm:$0xff] }
 0xaf7   : > { %8222 = vmatpush3.bf16.msra.mxu1 %v8219_v61  ;;  %v8303_v61 = vpack.c.bf16 %v4182_v60, %v4181_v59  ;;  %v4473_v59 = vld [vmem:[#allocation12 + $0x30] sm:$0xff]  ;;  %v4474_v60 = vld [vmem:[#allocation12 + $0x38] sm:$0xff] }
 0xaf8   : > { %8224 = vmatprep.subr.bf16.mxu1 %v8223_v1 }
 0xaf9   : > { %8304 = vmatprep.subr.bf16.mxu0 %v8303_v61 }
 0xafa   : > { %8306 = vmatpush3.bf16.msra.mxu0 %v8303_v61  ;;  %v4573_v61 = vld [vmem:[#allocation13 + $0x30] sm:$0xff] }
 0xafb   : > { %8226 = vmatpush3.bf16.msra.mxu1 %v8223_v1  ;;  %v8307_v1 = vpack.c.bf16 %v4274_v11, %v4273_v63  ;;  %v4574_v63 = vld [vmem:[#allocation13 + $0x38] sm:$0xff]  ;;  %v8367_v11 = vpack.c.bf16 %v4474_v60, %v4473_v59 }
 0xafc   : > { %8228 = vmatprep.subr.bf16.mxu1 %v8227_v5  ;;  %v5734_v60 = vld [vmem:[%s10046_s6] ss:$0 sm:$0xff] }
 0xafd   : > { %8308 = vmatprep.subr.bf16.mxu0 %v8307_v1 }
 0xaff   : > { %8230 = vmatpush3.bf16.msra.mxu1 %v8227_v5 }
 0xb00   : > { %8232 = vmatprep.subr.bf16.mxu1 %v8231_v8 }
 0xb03   : > { %8234 = vmatpush3.bf16.msra.mxu1 %v8231_v8 }
 0xb04   : > { %8236 = vmatprep.subr.bf16.mxu1 %v8235_v14 }
 0xb06   : > { %7188 = vmatmul.mubr.msk.f32.vlgmr.msra.gmra.mrb[12].mxu1 %vm787_vm0, %v3862_v18  ;;  %v4282_v18 = vld [vmem:[#allocation9 + $0x348] sm:$0xff] }
 0xb07   : > { %8238 = vmatpush3.bf16.msra.mxu1 %v8235_v14  ;;  %7214 = vmatprep.mubr.msk.f32.mxu1 %vm787_vm0, %v3966_v21  ;;  %v8315_v14 = vpack.c.bf16 %v4278_v13, %v4277_v12  ;;  %v4284_v21 = vld [vmem:[#allocation9 + $0x358] sm:$0xff] }
 0xb08   : > { %8240 = vmatprep.subr.bf16.mxu1 %v8239_v17  ;;  %v4578_v12 = vld [vmem:[#allocation13 + $0x58] sm:$0xff] }
 0xb0b   : > { %8242 = vmatpush3.bf16.msra.mxu1 %v8239_v17  ;;  %v4281_v17 = vld [vmem:[#allocation9 + $0x340] sm:$0xff] }
 0xb0c   : > { %8244 = vmatprep.subr.bf16.mxu1 %v8243_v28  ;;  %v8323_v19 = vpack.c.bf16 %v4282_v18, %v4281_v17  ;;  %v5723_v18 = vld [vmem:[%s10040_s28 + $0x4] ss:$0 sm:$0xff] }
 0xb0f   : > { %8246 = vmatpush3.bf16.msra.mxu1 %v8243_v28  ;;  %v8327_v28 = vpack.c.bf16 %v4284_v21, %v4283_v20 }
 0xb10   : > { %8248 = vmatprep.subr.bf16.mxu1 %v8247_v24 }
 0xb13   : > { %8250 = vmatpush3.bf16.msra.mxu1 %v8247_v24  ;;  %v8331_v24 = vpack.c.bf16 %v4369_v23, %v4368_v22 }
 0xb14   : > { %8252 = vmatprep.subr.bf16.mxu1 %v8251_v29 }
 0xb17   : > { %8254 = vmatpush3.bf16.msra.mxu1 %v8251_v29  ;;  %v8335_v29 = vpack.c.bf16 %v4371_v26, %v4370_v25 }
 0xb18   : > { %8256 = vmatprep.subr.bf16.mxu1 %v8255_v32 }
 0xb1b   : > { %8258 = vmatpush3.bf16.msra.mxu1 %v8255_v32  ;;  %v8339_v32 = vpack.c.bf16 %v4373_v31, %v4372_v30  ;;  %v4664_v30 = vld [vmem:[#allocation15 + $0x18] sm:$0xff] }
 0xb1c   : > { %8260 = vmatprep.subr.bf16.mxu1 %v8259_v36 }
 0xb1e   : > { %7215 = vmatmul.mubr.msk.f32.vlgmr.msra.gmra.mrb[12].mxu1 %vm787_vm0, %v3964_v40  ;;  %v4468_v40 = vld [vmem:[#allocation12 + $0x8] sm:$0xff] }
 0xb1f   : > { %8262 = vmatpush3.bf16.msra.mxu1 %v8259_v36  ;;  %7241 = vmatprep.mubr.msk.f32.mxu1 %vm787_vm0, %v4066_v43  ;;  %v8343_v36 = vpack.c.bf16 %v4375_v34, %v4374_v33  ;;  %v4568_v43 = vld [vmem:[#allocation13 + $0x8] sm:$0xff]  ;;  %v4665_v34 = vld [vmem:[#allocation15 + $0x20] sm:$0xff] }
 0xb20   : > { %8264 = vmatprep.subr.bf16.mxu1 %v8263_v39  ;;  %v8379_v47 = vpack.c.bf16 %v4568_v43, %v4567_v42  ;;  %v5731_v43 = vld [vmem:[%s10042_s4] ss:$0 sm:$0xff]  ;;  %s10048_s4 = sld [smem:[#allocation37_spill]] }
 0xb23   : > { %8266 = vmatpush3.bf16.msra.mxu1 %v8263_v39  ;;  %v4379_v39 = vld [vmem:[#allocation10 + $0x1d8] sm:$0xff] }
 0xb24   : > { %8268 = vmatprep.subr.bf16.mxu1 %v8267_v46 }
 0xb27   : > { %8270 = vmatpush3.bf16.msra.mxu1 %v8267_v46  ;;  %v4469_v46 = vld [vmem:[#allocation12 + $0x10] sm:$0xff] }
 0xb28   : > { %8272 = vmatprep.subr.bf16.mxu1 %v8271_v49  ;;  %v8359_v51 = vpack.c.bf16 %v4470_v48, %v4469_v46  ;;  %v5728_v46 = vld [vmem:[%s10043_s22] ss:$0 sm:$0xff]  ;;  %s10049_s22 = sld [smem:[#allocation38_spill]] }
 0xb2b   : > { %8274 = vmatpush3.bf16.msra.mxu1 %v8271_v49  ;;  %v4569_v49 = vld [vmem:[#allocation13 + $0x10] sm:$0xff] }
 0xb2c   : > { %8276 = vmatprep.subr.bf16.mxu1 %v8275_v52 }
 0xb2e   : > { %s765_s0 = scalar_lea.vmem %s10049_s22, %s5760_s18 }
 0xb2f   : > { %8278 = vmatpush3.bf16.msra.mxu1 %v8275_v52  ;;  %v8383_v52 = vpack.c.bf16 %v4570_v50, %v4569_v49 }
 0xb30   : > { %8280 = vmatprep.subr.bf16.mxu1 %v8279_v0 }
 0xb33   : > { %8282 = vmatpush3.bf16.msra.mxu1 %v8279_v0  ;;  %v4571_v0 = vld [vmem:[#allocation13 + $0x20] sm:$0xff] }
 0xb34   : > { %8380 = vmatprep.subr.bf16.mxu1 %v8379_v47 }
 0xb36   : > { %7242 = vmatmul.mubr.msk.f32.vlgmr.msra.gmra.mrb[12].mxu1 %vm787_vm0, %v4069_v57  ;;  %v8387_v57 = vpack.c.bf16 %v4572_v56, %v4571_v0 }
 0xb37   : > { %8382 = vmatpush3.bf16.msra.mxu1 %v8379_v47 }
 0xb38   : > { %8384 = vmatprep.subr.bf16.mxu1 %v8383_v52 }
 0xb3b   : > { %8386 = vmatpush3.bf16.msra.mxu1 %v8383_v52 }
 0xb3c   : > { %8388 = vmatprep.subr.bf16.mxu1 %v8387_v57 }
 0xb3f   : > { %8390 = vmatpush3.bf16.msra.mxu1 %v8387_v57 }
 0xc09   : > { %v7243_v3 = vpop.f32.mrb[12].mxu1 }
 0xc0a   : > { %v8511_v4 = vadd.f32 %v7243_v3, %v5713_v58  ;;  %v4155_v5 = vpop.f32.mrb[13].mxu1  ;;  %v4476_v3 = vld [vmem:[#allocation12 + $0x48] sm:$0xff] }
 0xc0b   : > { %v8512_v2 = vadd.f32 %v5713_v58, %v4155_v5  ;;  %v4475_v58 = vld [vmem:[#allocation12 + $0x40] sm:$0xff]  ;;  %v4576_v5 = vld [vmem:[#allocation13 + $0x48] sm:$0xff] }
 0xc0c   : > { %v4167_v62 = vmax.f32 %v8511_v4, 0.0  ;;  %v4575_v4 = vld [vmem:[#allocation13 + $0x40] sm:$0xff] }
 0xc0d   : > { %v4166_v8 = vmax.f32 %v8512_v2, 0.0  ;;  %v8371_v2 = vpack.c.bf16 %v4476_v3, %v4475_v58  ;;  %v8395_v6 = vpack.c.bf16 %v4576_v5, %v4575_v4 }
 0xc0f   : > { %7268 = vmatprep.mubr.msk.f32.mxu0 %vm787_vm0, %v4166_v8  ;;  %v4478_v8 = vld [vmem:[#allocation12 + $0x58] sm:$0xff] }
 0xc10   : > { %7269 = vmatmul.mubr.msk.f32.vlgmr.msra.gmra.mrb[14].mxu0 %vm787_vm0, %v4167_v62  ;;  %v8375_v62 = vpack.c.bf16 %v4478_v8, %v4477_v7 }
 0xc11   : > { %8310 = vmatpush3.bf16.msra.mxu0 %v8307_v1  ;;  %7295 = vmatprep.mubr.f32.mxu0 %v9108_v35  ;;  %v8391_v1 = vpack.c.bf16 %v4574_v63, %v4573_v61 }
 0xc12   : > { %8312 = vmatprep.subr.bf16.mxu0 %v8311_v9 }
 0xc13   : > { %8392 = vmatprep.subr.bf16.mxu1 %v8391_v1 }
 0xc14   : > { %8394 = vmatpush3.bf16.msra.mxu1 %v8391_v1 }
 0xc15   : > { %8314 = vmatpush3.bf16.msra.mxu0 %v8311_v9  ;;  %8396 = vmatprep.subr.bf16.mxu1 %v8395_v6  ;;  %v4577_v9 = vld [vmem:[#allocation13 + $0x50] sm:$0xff] }
 0xc16   : > { %8316 = vmatprep.subr.bf16.mxu0 %v8315_v14  ;;  %v8399_v13 = vpack.c.bf16 %v4578_v12, %v4577_v9 }
 0xc18   : > { %8398 = vmatpush3.bf16.msra.mxu1 %v8395_v6 }
 0xc19   : > { %8318 = vmatpush3.bf16.msra.mxu0 %v8315_v14  ;;  %8400 = vmatprep.subr.bf16.mxu1 %v8399_v13  ;;  %v4661_v14 = vld [vmem:[#allocation15] sm:$0xff] }
 0xc1a   : > { %8320 = vmatprep.subr.bf16.mxu0 %v8319_v16  ;;  %v8403_v10 = vpack.c.bf16 %v4662_v15, %v4661_v14 }
 0xc1c   : > { %8402 = vmatpush3.bf16.msra.mxu1 %v8399_v13 }
 0xc1d   : > { %8322 = vmatpush3.bf16.msra.mxu0 %v8319_v16 }
 0xc1e   : > { %8324 = vmatprep.subr.bf16.mxu0 %v8323_v19 }
 0xc21   : > { %8326 = vmatpush3.bf16.msra.mxu0 %v8323_v19 }
 0xc22   : > { %8328 = vmatprep.subr.bf16.mxu0 %v8327_v28 }
 0xc25   : > { %8330 = vmatpush3.bf16.msra.mxu0 %v8327_v28 }
 0xc26   : > { %8332 = vmatprep.subr.bf16.mxu0 %v8331_v24 }
 0xc28   : > { %7296 = vmatmul.mubr.f32.vlgmr.msra.gmra.mrb[14].mxu0 %v9108_v35  ;;  %v8351_v35 = vpack.c.bf16 %v4379_v39, %v4378_v45  ;;  %v4669_v39 = vld [vmem:[#allocation15 + $0x40] sm:$0xff] }
 0xc29   : > { %8334 = vmatpush3.bf16.msra.mxu0 %v8331_v24  ;;  %7322 = vmatprep.mubr.msk.f32.mxu0 %vm787_vm0, %v9830_v44  ;;  %v4467_v44 = vld [vmem:[#allocation12] sm:$0xff] }
 0xc2a   : > { %8336 = vmatprep.subr.bf16.mxu0 %v8335_v29  ;;  %v8355_v41 = vpack.c.bf16 %v4468_v40, %v4467_v44  ;;  %v5727_v24 = vld [vmem:[%s10041_s25 + $0x4] ss:$0 sm:$0xff]  ;;  %v4671_v40 = vld [vmem:[#allocation15 + $0x50] sm:$0xff] }
 0xc2d   : > { %8338 = vmatpush3.bf16.msra.mxu0 %v8335_v29  ;;  %v4663_v29 = vld [vmem:[#allocation15 + $0x10] sm:$0xff] }
 0xc2e   : > { %8340 = vmatprep.subr.bf16.mxu0 %v8339_v32  ;;  %v8407_v33 = vpack.c.bf16 %v4664_v30, %v4663_v29  ;;  %v4961_v30 = vld [vmem:[#allocation16 + $0x20] sm:$0xff] }
 0xc31   : > { %8342 = vmatpush3.bf16.msra.mxu0 %v8339_v32 }
 0xc32   : > { %8344 = vmatprep.subr.bf16.mxu0 %v8343_v36 }
 0xc35   : > { %8346 = vmatpush3.bf16.msra.mxu0 %v8343_v36  ;;  %v4666_v36 = vld [vmem:[#allocation15 + $0x28] sm:$0xff] }
 0xc36   : > { %8348 = vmatprep.subr.bf16.mxu0 %v8347_v38  ;;  %v8411_v27 = vpack.c.bf16 %v4666_v36, %v4665_v34 }
 0xc39   : > { %8350 = vmatpush3.bf16.msra.mxu0 %v8347_v38  ;;  %v4668_v38 = vld [vmem:[#allocation15 + $0x38] sm:$0xff] }
 0xc3a   : > { %8352 = vmatprep.subr.bf16.mxu0 %v8351_v35  ;;  %v8415_v45 = vpack.c.bf16 %v4668_v38, %v4667_v37 }
 0xc3d   : > { %8354 = vmatpush3.bf16.msra.mxu0 %v8351_v35  ;;  %v4670_v35 = vld [vmem:[#allocation15 + $0x48] sm:$0xff] }
 0xc3e   : > { %8356 = vmatprep.subr.bf16.mxu0 %v8355_v41  ;;  %v8419_v44 = vpack.c.bf16 %v4670_v35, %v4669_v39 }
 0xc40   : > { %7323 = vmatmul.mubr.msk.f32.vlgmr.msra.gmra.mrb[16].mxu0 %vm787_vm0, %v9828_v53  ;;  %v8363_v53 = vpack.c.bf16 %v4472_v55, %v4471_v54 }
 0xc41   : > { %8358 = vmatpush3.bf16.msra.mxu0 %v8355_v41  ;;  %v4672_v41 = vld [vmem:[#allocation15 + $0x58] sm:$0xff] }
 0xc42   : > { %8360 = vmatprep.subr.bf16.mxu0 %v8359_v51  ;;  %v8423_v42 = vpack.c.bf16 %v4672_v41, %v4671_v40 }
 0xc45   : > { %8362 = vmatpush3.bf16.msra.mxu0 %v8359_v51 }
 0xc46   : > { %8364 = vmatprep.subr.bf16.mxu0 %v8363_v53 }
 0xc49   : > { %8366 = vmatpush3.bf16.msra.mxu0 %v8363_v53 }
 0xc4a   : > { %8368 = vmatprep.subr.bf16.mxu0 %v8367_v11 }
 0xc4d   : > { %8370 = vmatpush3.bf16.msra.mxu0 %v8367_v11 }
 0xc4e   : > { %8372 = vmatprep.subr.bf16.mxu0 %v8371_v2 }
 0xc51   : > { %8374 = vmatpush3.bf16.msra.mxu0 %v8371_v2 }
 0xc52   : > { %8376 = vmatprep.subr.bf16.mxu0 %v8375_v62 }
 0xc55   : > { %8378 = vmatpush3.bf16.msra.mxu0 %v8375_v62 }
 0xc56   : > { %8404 = vmatprep.subr.bf16.mxu0 %v8403_v10 }
 0xcfb   : > { %v7297_v16 = vpop.f32.mrb[14].mxu0 }
 0xcfc   : > { %v4354_v17 = vpop.f32.mrb[15].mxu0  ;;  %v8513_v19 = vadd.f32 %v7297_v16, %v5723_v18 }
 0xcfd   : > { %v8514_v20 = vadd.f32 %v5723_v18, %v4354_v17  ;;  %v4957_v17 = vld [vmem:[#allocation16] sm:$0xff]  ;;  %v4958_v18 = vld [vmem:[#allocation16 + $0x8] sm:$0xff] }
 0xcfe   : > { %v4366_v21 = vmax.f32 %v8513_v19, 0.0  ;;  %v8437_v19 = vpack.c.bf16 %v4958_v18, %v4957_v17  ;;  %v5343_v18 = vld [vmem:[#allocation18 + $0x30] sm:$0xff] }
 0xcff   : > { %v4365_v28 = vmax.f32 %v8514_v20, 0.0 }
 0xd13   : > { %v7324_v22 = vpop.f32.mrb[16].mxu0 }
 0xd14   : > { %v4456_v23 = vadd.f32 %v7324_v22, %v4366_v21  ;;  %v4446_v25 = vpop.f32.mrb[17].mxu0 }
 0xd15   : > { %v4455_v26 = vadd.f32 %v4446_v25, %v4365_v28 }
 0xd16   : > { %v4466_v32 = vadd.f32 %v5727_v24, %v4456_v23  ;;  %v4959_v23 = vld [vmem:[#allocation16 + $0x10] sm:$0xff] }
 0xd17   : > { %v4465_v31 = vadd.f32 %v5727_v24, %v4455_v26  ;;  %v4960_v24 = vld [vmem:[#allocation16 + $0x18] sm:$0xff] }
 0xd18   : > { %v8441_v29 = vpack.c.bf16 %v4960_v24, %v4959_v23 }
 0xd19   : > { %7349 = vmatprep.mubr.msk.f32.mxu0 %vm787_vm0, %v4465_v31  ;;  %7376 = vmatprep.mubr.msk.f32.mxu1 %vm787_vm0, %v4465_v31 }
 0xd1a   : > { %7350 = vmatmul.mubr.msk.f32.vlgmr.msra.gmra.mrb[18].mxu0 %vm787_vm0, %v4466_v32  ;;  %7377 = vmatmul.mubr.msk.f32.vlgmr.msra.gmra.mrb[14].mxu1 %vm787_vm0, %v4466_v32 }
 0xd1b   : > { %8406 = vmatpush3.bf16.msra.mxu0 %v8403_v10  ;;  %7403 = vmatprep.mubr.msk.f32.mxu0 %vm787_vm0, %v4465_v31  ;;  %v4962_v31 = vld [vmem:[#allocation16 + $0x28] sm:$0xff] }
 0xd1c   : > { %8408 = vmatprep.subr.bf16.mxu0 %v8407_v33 }
 0xd1f   : > { %8410 = vmatpush3.bf16.msra.mxu0 %v8407_v33  ;;  %v8445_v33 = vpack.c.bf16 %v4962_v31, %v4961_v30  ;;  %v5737_v30 = vld [vmem:[%s10047_s23] ss:$0 sm:$0xff] }
 0xd20   : > { %8412 = vmatprep.subr.bf16.mxu0 %v8411_v27 }
 0xd23   : > { %8414 = vmatpush3.bf16.msra.mxu0 %v8411_v27 }
 0xd24   : > { %8416 = vmatprep.subr.bf16.mxu0 %v8415_v45 }
 0xd27   : > { %8418 = vmatpush3.bf16.msra.mxu0 %v8415_v45 }
 0xd28   : > { %8420 = vmatprep.subr.bf16.mxu0 %v8419_v44 }
 0xd2b   : > { %8422 = vmatpush3.bf16.msra.mxu0 %v8419_v44 }
 0xd2c   : > { %8424 = vmatprep.subr.bf16.mxu0 %v8423_v42 }
 0xd2f   : > { %8426 = vmatpush3.bf16.msra.mxu0 %v8423_v42 }
 0xd32   : > { %7404 = vmatmul.mubr.msk.f32.vlgmr.msra.gmra.mrb[20].mxu0 %vm787_vm0, %v4466_v32 }
 0xded   : > { %v7351_v47 = vpop.f32.mrb[18].mxu0  ;;  %v7378_v48 = vpop.f32.mrb[14].mxu1 }
 0xdee   : > { %v4658_v49 = vadd.f32 %v7378_v48, %v5731_v43  ;;  %v4558_v50 = vpop.f32.mrb[19].mxu0  ;;  %v4652_v51 = vpop.f32.mrb[15].mxu1  ;;  %v4564_v57 = vadd.f32 %v7351_v47, %v5728_v46 }
 0xdef   : > { %v4559_v52 = vadd.f32 %v5728_v46, %v4558_v50  ;;  %v4653_v54 = vadd.f32 %v5731_v43, %v4652_v51 }
 0xdf0   : > { %v4764_v59 = vmul.f32 0.14433756, %v4564_v57  ;;  %v5248_v57 = vld [vmem:[#allocation16 + $0x30] sm:$0xff] }
 0xdf1   : > { %v4763_v0 = vmul.f32 0.14433756, %v4559_v52  ;;  %v8703_v56 = vpack.i.bf16 %v4658_v49, %v4653_v54  ;;  %v8427_v53 = vpack.c.bf16 %v4658_v49, %v4653_v54 }
 0xdf3   : > { %8429 = vmatprep.subr.msk.bf16.mxu1 %vm9897_vm10, %v8427_v53  ;;  %7410 = vmatprep.mubr.msk.f32.mxu1 %vm4765_vm9, %v4763_v0 }
 0xdf4   : > { %8432 = vmatpush3.bf16.xpose.msk.msra.mxu1 %vm9897_vm10, %v8427_v53 }
 0xdfb   : > { %7411 = vmatmul.mubr.msk.f32.vlgmr.msra.gmra.mrb[16].mxu1 %vm4765_vm9, %v4764_v59 }
 0xe05   : > { %v7405_v61 = vpop.f32.mrb[20].mxu0 }
 0xe06   : > { %v9910_v63 = vadd.f32 %v7405_v61, %v5734_v60  ;;  %v4746_v11 = vpop.f32.mrb[21].mxu0 }
 0xe07   : > { %v9912_v1 = vadd.f32 %v5734_v60, %v4746_v11 }
 0xe09   : > { %v8708_v58 = vpack.i.bf16 %v9910_v63, %v9912_v1  ;;  %v8433_v3 = vpack.c.bf16 %v9910_v63, %v9912_v1 }
 0xe0b   : > { %8434 = vmatprep.subr.bf16.mxu1 %v8433_v3 }
 0xe0c   : > { %8436 = vmatpush3.bf16.msra.mxu1 %v8433_v3  ;;  %v5251_v3 = vld [vmem:[#allocation16 + $0x48] sm:$0xff] }
 0xe0d   : > { %8438 = vmatprep.subr.bf16.mxu1 %v8437_v19 }
 0xece   : > { %v7412_v4 = vpop.f32.mrb[16].mxu1 }
 0xecf   : > { %v4844_v5 = vpop.f32.mrb[17].mxu1  ;;  %v4857_v6 = vsel %vm4853_vm11, %v7412_v4, -inf }
 0xed0   : > { %v4854_v2 = vsel %vm4853_vm11, %v4844_v5, -inf }
 0xed1   : > { %4855 = vmax.xlane.f32.xlu0 %v4854_v2 }
 0xed5   : > { %4858 = vmax.xlane.f32.xlu0 %v4857_v6  ;;  %v5252_v6 = vld [vmem:[#allocation16 + $0x50] sm:$0xff] }
 0xeeb   : > { %8704 = vrot.lane.b32.xlu0 %v8703_v56, %s9109_s12 }
 0xf5e   : > { %v4856_v7 = vpop.xlane.xlu0 %4855 }
 0xf5f   : > { %v4860_v8 = vsub.f32 %v4844_v5, %v4856_v7  ;;  %v5253_v7 = vld [vmem:[#allocation16 + $0x58] sm:$0xff] }
 0xf61   : > { %v4862_v62 = vmul.f32 1.442695, %v4860_v8  ;;  %v8467_v8 = vpack.c.bf16 %v5253_v7, %v5252_v6 }
 0xf62   : > { %v4859_v9 = vpop.xlane.xlu0 %4858 }
 0xf63   : > { %8713 = vpow2.f32 %v4862_v62  ;;  %v4861_v12 = vsub.f32 %v7412_v4, %v4859_v9  ;;  %v5337_v62 = vld [vmem:[#allocation18] sm:$0xff]  ;;  %v5338_v9 = vld [vmem:[#allocation18 + $0x8] sm:$0xff] }
 0xf65   : > { %v4864_v13 = vmul.f32 1.442695, %v4861_v12  ;;  %v5339_v12 = vld [vmem:[#allocation18 + $0x10] sm:$0xff] }
 0xf66   : > { %v8705_v32 = vpop.permute.xlu0 %8704 }
 0xf67   : > { %8715 = vpow2.f32 %v4864_v13  ;;  %v8707_v34 = vunpack.i.h.bf16 %v8705_v32  ;;  %v8706_v36 = vunpack.i.l.bf16 %v8705_v32  ;;  %v8471_v13 = vpack.c.bf16 %v5338_v9, %v5337_v62 }
 0xf69   : > { %v8449_v27 = vpack.c.bf16 %v8707_v34, %v8706_v36  ;;  %8472 = vmatprep.subr.bf16.mxu0 %v8471_v13  ;;  %v5754_v36 = vld [vmem:[%s10048_s4] ss:$0 sm:$0xff] }
 0xf6a   : > { %8474 = vmatpush3.bf16.msra.mxu0 %v8471_v13 }
 0xf6d   : > { %v8714_v14 = vpop.eup %8713 }
 0xf6e   : > { %v4866_v15 = vsel %vm4853_vm11, %v8714_v14, 0.0 }
 0xf6f   : > { %4867 = vadd.xlane.f32.xlu1 %v4866_v15 }
 0xf71   : > { %v8716_v10 = vpop.eup %8715 }
 0xf72   : > { %v4869_v16 = vsel %vm4853_vm11, %v8716_v10, 0.0 }
 0xf73   : > { %4870 = vadd.xlane.f32.xlu1 %v4869_v16  ;;  %v5342_v16 = vld [vmem:[#allocation18 + $0x28] sm:$0xff] }
 0xf84   : > { %5046 = vrot.lane.b32.xlu1 %v4763_v0, %s9109_s12 }
 0xf88   : > { %5048 = vrot.lane.b32.xlu1 %v4764_v59, %s9109_s12  ;;  %v5249_v59 = vld [vmem:[#allocation16 + $0x38] sm:$0xff] }
 0xf89   : > { %v8459_v60 = vpack.c.bf16 %v5249_v59, %v5248_v57 }
 0xffc   : > { %v4868_v20 = vpop.xlane.xlu1 %4867 }
 0xffd   : > { %8717 = vrcp.f32 %v4868_v20 }
0x1000   : > { %v4871_v21 = vpop.xlane.xlu1 %4870 }
0x1001   : > { %8719 = vrcp.f32 %v4871_v21  ;;  %v5345_v21 = vld [vmem:[#allocation18 + $0x40] sm:$0xff] }
0x1004   : > { %v5047_v45 = vpop.permute.xlu1 %5046 }
0x1007   : > { %v8718_v28 = vpop.eup %8717 }
0x1008   : > { %v4874_v22 = vmul.f32 %v8718_v28, %v8714_v14  ;;  %v5049_v39 = vpop.permute.xlu1 %5048  ;;  %v5340_v14 = vld [vmem:[#allocation18 + $0x18] sm:$0xff]  ;;  %v5346_v28 = vld [vmem:[#allocation18 + $0x48] sm:$0xff] }
0x1009   : > { %v8475_v15 = vpack.c.bf16 %v5340_v14, %v5339_v12 }
0x100a   : > { %7417 = vmatprep.mubr.msk.f32.mxu1 %vm4853_vm11, %v4874_v22  ;;  %v8487_v22 = vpack.c.bf16 %v5346_v28, %v5345_v21 }
0x100b   : > { %v8720_v25 = vpop.eup %8719  ;;  %8476 = vmatprep.subr.bf16.mxu0 %v8475_v15 }
0x100c   : > { %v4875_v26 = vmul.f32 %v8720_v25, %v8716_v10  ;;  %v5341_v10 = vld [vmem:[#allocation18 + $0x20] sm:$0xff]  ;;  %8478 = vmatpush3.bf16.msra.mxu0 %v8475_v15  ;;  %v5347_v25 = vld [vmem:[#allocation18 + $0x50] sm:$0xff] }
0x100d   : > { %v8479_v17 = vpack.c.bf16 %v5342_v16, %v5341_v10 }
0x100e   : > { %7418 = vmatmul.mubr.msk.f32.vlgmr.msra.gmra.mrb[18].mxu1 %vm4853_vm11, %v4875_v26  ;;  %v5348_v26 = vld [vmem:[#allocation18 + $0x58] sm:$0xff] }
0x100f   : > { %8440 = vmatpush3.bf16.msra.mxu1 %v8437_v19  ;;  %v5344_v19 = vld [vmem:[#allocation18 + $0x38] sm:$0xff]  ;;  %8480 = vmatprep.subr.bf16.mxu0 %v8479_v17 }
0x1010   : > { %8442 = vmatprep.subr.bf16.mxu1 %v8441_v29  ;;  %v8483_v20 = vpack.c.bf16 %v5344_v19, %v5343_v18  ;;  %8482 = vmatpush3.bf16.msra.mxu0 %v8479_v17 }
0x1012   : > { %8484 = vmatprep.subr.bf16.mxu0 %v8483_v20 }
0x1013   : > { %8444 = vmatpush3.bf16.msra.mxu1 %v8441_v29  ;;  %v8491_v29 = vpack.c.bf16 %v5348_v26, %v5347_v25 }
0x1014   : > { %8446 = vmatprep.subr.bf16.mxu1 %v8445_v33  ;;  %8486 = vmatpush3.bf16.msra.mxu0 %v8483_v20 }
0x1015   : > { %8488 = vmatprep.subr.bf16.mxu0 %v8487_v22 }
0x1017   : > { %8448 = vmatpush3.bf16.msra.mxu1 %v8445_v33 }
0x1018   : > { %8451 = vmatprep.subr.msk.bf16.mxu1 %vm9897_vm10, %v8449_v27  ;;  %8490 = vmatpush3.bf16.msra.mxu0 %v8487_v22 }
0x1019   : > { %8492 = vmatprep.subr.bf16.mxu0 %v8491_v29 }
0x101c   : > { %8494 = vmatpush3.bf16.msra.mxu0 %v8491_v29 }
0x10e1   : > { %v7419_v37 = vpop.f32.mrb[18].mxu1 }
0x10e2   : > { %v4948_v38 = vpop.f32.mrb[19].mxu1 }
0x10e3   : > { %7432 = vmatprep.mubr.msk.f32.mxu1 %vm4765_vm9, %v4948_v38 }
0x10e4   : > { %7433 = vmatmul.mubr.msk.f32.vlgmr.msra.gmra.mrb[20].mxu1 %vm4765_vm9, %v7419_v37 }
0x10e5   : > { %8454 = vmatpush3.bf16.xpose.msk.msra.mxu1 %vm9897_vm10, %v8449_v27  ;;  %7439 = vmatprep.mubr.msk.f32.mxu1 %vm4765_vm9, %v5047_v45 }
0x10ec   : > { %7440 = vmatmul.mubr.msk.f32.vlgmr.msra.gmra.mrb[22].mxu1 %vm4765_vm9, %v5049_v39 }
0x11bf   : > { %v7441_v35 = vpop.f32.mrb[22].mxu1 }
0x11c0   : > { %v5128_v44 = vpop.f32.mrb[23].mxu1  ;;  %v5140_v40 = vsel %vm4853_vm11, %v7441_v35, -inf }
0x11c1   : > { %5141 = vmax.xlane.f32.xlu0 %v5140_v40  ;;  %v5137_v41 = vsel %vm4853_vm11, %v5128_v44, -inf }
0x11c2   : > { %5138 = vmax.xlane.f32.xlu1 %v5137_v41 }
0x11d3   : > { %8709 = vrot.lane.b32.xlu1 %v8708_v58, %s9109_s12  ;;  %v5250_v58 = vld [vmem:[#allocation16 + $0x40] sm:$0xff] }
0x11d4   : > { %v8463_v2 = vpack.c.bf16 %v5251_v3, %v5250_v58 }
0x124e   : > { %v5142_v42 = vpop.xlane.xlu0 %5141 }
0x124f   : > { %v5144_v43 = vsub.f32 %v7441_v35, %v5142_v42  ;;  %v5139_v46 = vpop.xlane.xlu1 %5138 }
0x1250   : > { %v5143_v47 = vsub.f32 %v5128_v44, %v5139_v46 }
0x1251   : > { %v5147_v48 = vmul.f32 1.442695, %v5144_v43 }
0x1252   : > { %v5145_v49 = vmul.f32 1.442695, %v5143_v47 }
0x1253   : > { %v8710_v50 = vpop.permute.xlu1 %8709 }
0x1254   : > { %8721 = vpow2.f32 %v5145_v49  ;;  %v8712_v51 = vunpack.i.h.bf16 %v8710_v50  ;;  %v8711_v52 = vunpack.i.l.bf16 %v8710_v50 }
0x1255   : > { %8723 = vpow2.f32 %v5147_v48 }
0x1256   : > { %v8455_v54 = vpack.c.bf16 %v8712_v51, %v8711_v52 }
0x1258   : > { %8456 = vmatprep.subr.bf16.mxu1 %v8455_v54 }
0x1259   : > { %8458 = vmatpush3.bf16.msra.mxu1 %v8455_v54 }
0x125a   : > { %8460 = vmatprep.subr.bf16.mxu1 %v8459_v60 }
0x125e   : > { %v8722_v55 = vpop.eup %8721 }
0x125f   : > { %v5149_v0 = vsel %vm4853_vm11, %v8722_v55, 0.0  ;;  %v8724_v56 = vpop.eup %8723 }
0x1260   : > { %5150 = vadd.xlane.f32.xlu0 %v5149_v0  ;;  %v5152_v53 = vsel %vm4853_vm11, %v8724_v56, 0.0 }
0x1264   : > { %5153 = vadd.xlane.f32.xlu0 %v5152_v53 }
0x12ed   : > { %v5151_v61 = vpop.xlane.xlu0 %5150 }
0x12ee   : > { %8725 = vrcp.f32 %v5151_v61 }
0x12f1   : > { %v5154_v63 = vpop.xlane.xlu0 %5153 }
0x12f2   : > { %8727 = vrcp.f32 %v5154_v63 }
0x12f8   : > { %v8726_v11 = vpop.eup %8725 }
0x12f9   : > { %v5157_v1 = vmul.f32 %v8726_v11, %v8722_v55 }
0x12fb   : > { %7446 = vmatprep.mubr.msk.f32.mxu1 %vm4853_vm11, %v5157_v1 }
0x12fc   : > { %v8728_v4 = vpop.eup %8727 }
0x12fd   : > { %v5158_v5 = vmul.f32 %v8728_v4, %v8724_v56 }
0x12ff   : > { %7447 = vmatmul.mubr.msk.f32.vlgmr.msra.gmra.mrb[24].mxu1 %vm4853_vm11, %v5158_v5 }
0x1300   : > { %8462 = vmatpush3.bf16.msra.mxu1 %v8459_v60 }
0x1301   : > { %8464 = vmatprep.subr.bf16.mxu1 %v8463_v2 }
0x1304   : > { %8466 = vmatpush3.bf16.msra.mxu1 %v8463_v2 }
0x1305   : > { %8468 = vmatprep.subr.bf16.mxu1 %v8467_v8 }
0x1308   : > { %8470 = vmatpush3.bf16.msra.mxu1 %v8467_v8 }
0x13d2   : > { %v7448_v23 = vpop.f32.mrb[24].mxu1 }
0x13d3   : > { %v5239_v24 = vpop.f32.mrb[25].mxu1 }
0x13d4   : > { %7461 = vmatprep.mubr.msk.f32.mxu1 %vm4765_vm9, %v5239_v24 }
0x13d5   : > { %7462 = vmatmul.mubr.msk.f32.vlgmr.msra.gmra.mrb[20].mxu1 %vm4765_vm9, %v7448_v23 }
0x14a8   : > { %v7463_v31 = vpop.f32.mrb[20].mxu1 }
0x14a9   : > { %v5326_v32 = vpop.f32.mrb[21].mxu1  ;;  %v8515_v34 = vadd.f32 %v7463_v31, %v5737_v30 }
0x14aa   : > { %v8516_v33 = vadd.f32 %v5737_v30, %v5326_v32 }
0x14ac   : > { %7488 = vmatprep.mubr.msk.f32.mxu0 %vm787_vm0, %v8516_v33 }
0x14ad   : > { %7489 = vmatmul.mubr.msk.f32.vlgmr.msra.gmra.mrb[22].mxu0 %vm787_vm0, %v8515_v34 }
0x1580   : > { %v7490_v27 = vpop.f32.mrb[22].mxu0 }
0x1581   : > { %v5434_v37 = vadd.f32 %v7490_v27, %v5754_v36  ;;  %v5428_v38 = vpop.f32.mrb[23].mxu0 }
0x1582   : > { %v5429_v45 = vadd.f32 %v5754_v36, %v5428_v38 }
0x1583   : > { %5438 = vst [vmem:[%s765_s0 + $0x8] sm:$0xff] %v5434_v37 }
0x1584   : > { %5437 = vst [vmem:[%s765_s0] sm:$0xff] %v5429_v45 }
0x1585 PF: > { %p34_p7 = scmp.ge.s32.totalorder %s9483_s3, 4   ;;  %s10050_s0 = smov %s9085_s30 }
0x1586   : > { %s10051_s30 = smov %s9089_s20  ;;  %s10052_s20 = smov %s9495_s27 }
0x1587   : > { %s10053_s21 = smov %s9483_s3  ;;  %36 = sbr.rel (!%p34_p7) target bundleno = 23 (0x17), region = 220 }
0x158e   :  { %5460 = vsyncpa [#allocation3], 1 }
0x158f   :  { %5462 = vsyncpa [#allocation3 + $0x1], 1 }
0x1590   :  { %5463 = vsyncpa [#allocation5], 1 }
0x1591   :  { %5464 = vsyncpa [#allocation8], 1 }
0x1592   :  { %5465 = vsyncpa [#allocation11], 1 }
0x1593   :  { %5466 = vsyncpa [#allocation14], 1 }
0x1594   :  { %5467 = vsyncpa [#allocation17], 1 }

</bundles_post_ra>
